<compile_context>
chip_gen: v6e
topology: v6e:2x2x1
jax: 0.10.0
libtpu: 0.0.40
codegen_flags: <defaults>
</compile_context>

<pallas_src>
import functools
import math

import jax
import jax.numpy as jnp
from jax import lax
from jax.experimental import pallas as pl
from jax.experimental.pallas import tpu as pltpu


# --------------------------------------------------------------------------- #
# helpers
# --------------------------------------------------------------------------- #
def _pick(dim, target, quantum=8):
    """Largest block <= target that divides `dim`, preferring `quantum`-aligned
    divisors.  Falls back to the full dim (always legal) rather than a tiny block."""
    if dim <= target:
        return dim
    best_unaligned = None
    for cand in range(target, 0, -1):
        if dim % cand:
            continue
        if cand % quantum == 0:
            return cand
        if best_unaligned is None:
            best_unaligned = cand
    if best_unaligned is not None and best_unaligned >= quantum:
        return best_unaligned
    return dim


def _round_up(x, m):
    return ((x + m - 1) // m) * m


_SQRT1_2 = 0.7071067811865476


def _erf_f32(x):
    # Abramowitz & Stegun 7.1.26, |err| < ~1e-3 after approx recip -- well below
    # bf16 output resolution.  mul/add on VPU, exp + approx reciprocal on EUP.
    a1, a2, a3, a4, a5 = (0.254829592, -0.284496736, 1.421413741,
                          -1.453152027, 1.061405429)
    p = 0.3275911
    ax = jnp.abs(x)
    t = pl.reciprocal(1.0 + p * ax, approx=True)
    poly = ((((a5 * t + a4) * t + a3) * t + a2) * t + a1) * t
    y = 1.0 - poly * jnp.exp(-ax * ax)
    return jnp.where(x >= 0, y, -y)


def _gelu_exact_f32(x):
    return 0.5 * x * (1.0 + _erf_f32(x * _SQRT1_2))


def _epilogue(y, b_ref, r_ref, activation):
    if b_ref is not None:
        y = y + b_ref[...].astype(jnp.float32)
    if activation == "gelu":
        y = _gelu_exact_f32(y)
    if r_ref is not None:
        y = y + r_ref[...].astype(jnp.float32)
    return y


# --------------------------------------------------------------------------- #
# Tiled linear:  out = act(x @ w + b) + residual      (all fused in-kernel)
# --------------------------------------------------------------------------- #
def _linear_kernel_direct(*refs, has_bias, has_residual, activation):
    """Single-K-step path: no accumulator scratch, dot + epilogue + store."""
    x_ref, w_ref = refs[0], refs[1]
    pos = 2
    b_ref = r_ref = None
    if has_bias:
        b_ref = refs[pos]; pos += 1
    if has_residual:
        r_ref = refs[pos]; pos += 1
    o_ref = refs[pos]
    y = jnp.dot(x_ref[...], w_ref[...], preferred_element_type=jnp.float32)
    o_ref[...] = _epilogue(y, b_ref, r_ref, activation).astype(o_ref.dtype)


def _linear_kernel_acc(*refs, has_bias, has_residual, activation):
    """K-tiled path: f32 VMEM accumulator, init/finalize on the K axis."""
    x_ref, w_ref = refs[0], refs[1]
    pos = 2
    b_ref = r_ref = None
    if has_bias:
        b_ref = refs[pos]; pos += 1
    if has_residual:
        r_ref = refs[pos]; pos += 1
    o_ref, acc_ref = refs[pos], refs[pos + 1]

    k = pl.program_id(2)

    @pl.when(k == 0)
    def _():
        acc_ref[...] = jnp.zeros_like(acc_ref)

    acc_ref[...] += jnp.dot(x_ref[...], w_ref[...],
                            preferred_element_type=jnp.float32)

    @pl.when(k == pl.num_programs(2) - 1)
    def _():
        o_ref[...] = _epilogue(acc_ref[...], b_ref, r_ref,
                               activation).astype(o_ref.dtype)


def linear(x, w_kn, b=None, residual=None, activation=None,
           out_dtype=jnp.bfloat16, bm=512, bn=512, full_k_max=2048,
           vmem_budget=12 * 1024 * 1024, vmem_limit_bytes=None):
    """x: (M, K) bf16;  w_kn: (K, N) bf16 (pre-transposed);  b: (N,) or None."""
    M, K = x.shape
    K2, N = w_kn.shape
    assert K == K2
    itemsize = jnp.dtype(x.dtype).itemsize

    tm = _pick(M, bm, 8)
    tn = _pick(N, bn, 128)
    tk = K if K <= full_k_max else _pick(K, 512, 128)

    def vmem_bytes(tm_, tn_, tk_):
        by = 2 * (tm_ * tk_ + tk_ * tn_ + tm_ * tn_) * itemsize   # double-buffered tiles
        if residual is not None:
            by += 2 * tm_ * tn_ * itemsize
        if tk_ != K:
            by += tm_ * tn_ * 4                                   # f32 accumulator
        return by

    # Shrink tiles until they fit a conservative scoped-VMEM budget (safe on
    # v5e's 16 MiB default and v7x's 64 MiB physical without flag tuning).
    while vmem_bytes(tm, tn, tk) > vmem_budget:
        if tk > 512 and tk % 2 == 0:
            tk //= 2
        elif tn > 128 and tn % 2 == 0:
            tn //= 2
        elif tm > 8 and tm % 2 == 0:
            tm //= 2
        else:
            break

    has_bias, has_res = b is not None, residual is not None
    if tk == K:                                    # ---- single-K-step path
        grid = (M // tm, N // tn)
        in_specs = [pl.BlockSpec((tm, K), lambda i, j: (i, 0)),
                    pl.BlockSpec((K, tn), lambda i, j: (0, j))]
        args = [x, w_kn]
        if has_bias:
            in_specs.append(pl.BlockSpec((1, tn), lambda i, j: (0, j)))
            args.append(b.reshape(1, N))
        if has_res:
            in_specs.append(pl.BlockSpec((tm, tn), lambda i, j: (i, j)))
            args.append(residual)
        kern = functools.partial(_linear_kernel_direct, has_bias=has_bias,
                                 has_residual=has_res, activation=activation)
        out_specs = pl.BlockSpec((tm, tn), lambda i, j: (i, j))
        scratch = []
        sem = ("parallel", "parallel")
    else:                                          # ---- K-tiled accumulator path
        grid = (M // tm, N // tn, K // tk)
        in_specs = [pl.BlockSpec((tm, tk), lambda i, j, k: (i, k)),
                    pl.BlockSpec((tk, tn), lambda i, j, k: (k, j))]
        args = [x, w_kn]
        if has_bias:
            in_specs.append(pl.BlockSpec((1, tn), lambda i, j, k: (0, j)))
            args.append(b.reshape(1, N))
        if has_res:
            in_specs.append(pl.BlockSpec((tm, tn), lambda i, j, k: (i, j)))
            args.append(residual)
        kern = functools.partial(_linear_kernel_acc, has_bias=has_bias,
                                 has_residual=has_res, activation=activation)
        out_specs = pl.BlockSpec((tm, tn), lambda i, j, k: (i, j))
        scratch = [pltpu.VMEM((tm, tn), jnp.float32)]
        sem = ("parallel", "parallel", "arbitrary")

    return pl.pallas_call(
        kern,
        out_shape=jax.ShapeDtypeStruct((M, N), out_dtype),
        grid=grid,
        in_specs=in_specs,
        out_specs=out_specs,
        scratch_shapes=scratch,
        compiler_params=pltpu.CompilerParams(
            dimension_semantics=sem, vmem_limit_bytes=vmem_limit_bytes),
    )(*args)


# --------------------------------------------------------------------------- #
# Fused LayerNorm (+ optional interleaved-pair RoPE of the normalized output)
# --------------------------------------------------------------------------- #
def _ln_kernel(*refs, eps, with_rope):
    x_ref, g_ref, b_ref = refs[0], refs[1], refs[2]
    if with_rope:
        cos_ref, sm_ref, sp_ref, xn_ref, xr_ref = refs[3], refs[4], refs[5], refs[6], refs[7]
    else:
        xn_ref = refs[3]

    x = x_ref[0].astype(jnp.float32)                        # (ts, D)
    mu = jnp.mean(x, axis=-1, keepdims=True)
    var = jnp.mean(jnp.square(x - mu), axis=-1, keepdims=True)
    xn = (x - mu) * lax.rsqrt(var + eps)
    xn = xn * g_ref[...].astype(jnp.float32) + b_ref[...].astype(jnp.float32)
    xn_bf = xn.astype(xn_ref.dtype)
    xn_ref[0] = xn_bf

    if with_rope:
        # interleaved pairs (2i, 2i+1) within each head (torchtune convention):
        #   out[2i]   = x[2i]*c_i - x[2i+1]*s_i
        #   out[2i+1] = x[2i+1]*c_i + x[2i]*s_i
        # realized with two XLU lane rotations and signed, zero-padded sin tables.
        xr = xn_bf.astype(jnp.float32)     # RoPE sees the bf16 LN output (PyTorch parity)
        d = xr.shape[-1]
        rot = (xr * cos_ref[...]
               + pltpu.roll(xr, d - 1, 1) * sm_ref[...]     # == jnp.roll(x, -1)
               + pltpu.roll(xr, 1, 1) * sp_ref[...])        # == jnp.roll(x, +1)
        xr_ref[0] = rot.astype(xr_ref.dtype)


def layernorm_rope(x, g, b, cos_t=None, sin_m=None, sin_p=None,
                   eps=1e-5, block_s=512):
    B, S, D = x.shape
    ts = _pick(S, block_s, 8)
    with_rope = cos_t is not None
    grid = (S // ts, B)                     # largest parallel axis first (megacore)

    x_spec = pl.BlockSpec((1, ts, D), lambda si, bi: (bi, si, 0))
    vec_spec = pl.BlockSpec((1, D), lambda si, bi: (0, 0))
    tab_spec = pl.BlockSpec((ts, D), lambda si, bi: (si, 0))

    in_specs = [x_spec, vec_spec, vec_spec]
    args = [x, g.reshape(1, D), b.reshape(1, D)]
    if with_rope:
        in_specs += [tab_spec, tab_spec, tab_spec]
        args += [cos_t, sin_m, sin_p]
        out_shape = (jax.ShapeDtypeStruct((B, S, D), jnp.bfloat16),
                     jax.ShapeDtypeStruct((B, S, D), jnp.bfloat16))
        out_specs = (x_spec, x_spec)
    else:
        out_shape = jax.ShapeDtypeStruct((B, S, D), jnp.bfloat16)
        out_specs = x_spec

    return pl.pallas_call(
        functools.partial(_ln_kernel, eps=eps, with_rope=with_rope),
        out_shape=out_shape,
        grid=grid,
        in_specs=in_specs,
        out_specs=out_specs,
        compiler_params=pltpu.CompilerParams(
            dimension_semantics=("parallel", "parallel")),
    )(*args)


def rope_tables(S, D, num_heads, base=10000.0):
    """Compact (S, D) cos / signed-sin tables for interleaved-pair RoPE."""
    Dh = D // num_heads
    theta = 1.0 / (base ** (jnp.arange(0, Dh, 2, dtype=jnp.float32) / Dh))  # (Dh//2,)
    ang = jnp.arange(S, dtype=jnp.float32)[:, None] * theta[None, :]        # (S, Dh//2)
    cos, sin = jnp.cos(ang), jnp.sin(ang)
    zeros = jnp.zeros_like(sin)
    cos_i = jnp.stack([cos, cos], axis=-1).reshape(S, Dh)      # [c0,c0,c1,c1,...]
    sin_m = jnp.stack([-sin, zeros], axis=-1).reshape(S, Dh)   # [-s0,0,-s1,0,...]
    sin_p = jnp.stack([zeros, sin], axis=-1).reshape(S, Dh)    # [0,s0,0,s1,...]
    rep = lambda t: jnp.tile(t, (1, num_heads))                # same table per head
    return rep(cos_i), rep(sin_m), rep(sin_p)


# --------------------------------------------------------------------------- #
# Flash (online-softmax) causal attention over lane-dense (B, S, D) tensors
# --------------------------------------------------------------------------- #
def _flash_attn_kernel(q_ref, k_ref, v_ref, o_ref, m_ref, l_ref, acc_ref,
                       *, num_heads, head_dim, block_q, block_k, scale):
    qi = pl.program_id(0)                   # grid = (S//bq, B, S//bk)
    ki = pl.program_id(2)

    @pl.when(ki == 0)
    def _():
        m_ref[...] = jnp.full_like(m_ref, -jnp.inf)
        l_ref[...] = jnp.zeros_like(l_ref)
        acc_ref[...] = jnp.zeros_like(acc_ref)

    # Skip KV tiles entirely above the causal diagonal (bq == bk => every kept
    # q-row sees at least its diagonal element, so m never stays -inf).
    @pl.when(ki <= qi)
    def _():
        q = q_ref[0]                         # (bq, D) bf16
        k = k_ref[0]                         # (bk, D) bf16
        v = v_ref[0]                         # (bk, D) bf16
        row = qi * block_q + lax.broadcasted_iota(jnp.int32, (block_q, block_k), 0)
        col = ki * block_k + lax.broadcasted_iota(jnp.int32, (block_q, block_k), 1)
        keep = (col <= row)[None]            # (1, bq, bk), triu(diagonal=1) masked out

        # Per-head MXU dots issued back-to-back (no VPU/XLU work interleaved);
        # all softmax math below is batched over heads on (H, bq, bk) tensors.
        s = jnp.stack(
            [lax.dot_general(q[:, h * head_dim:(h + 1) * head_dim],
                             k[:, h * head_dim:(h + 1) * head_dim],
                             (((1,), (1,)), ((), ())),
                             preferred_element_type=jnp.float32)
             for h in range(num_heads)])                         # (H, bq, bk)
        s = jnp.where(keep, s * scale, -jnp.inf)

        m_prev = m_ref[...]                                      # (H, bq, 1)
        m_new = jnp.maximum(m_prev, jnp.max(s, axis=-1, keepdims=True))
        alpha = jnp.exp(m_prev - m_new)                          # (H, bq, 1)
        p = jnp.exp(s - m_new)                                   # (H, bq, bk)
        l_ref[...] = alpha * l_ref[...] + jnp.sum(p, axis=-1, keepdims=True)
        m_ref[...] = m_new

        p_bf = p.astype(v.dtype)
        pv = jnp.stack(
            [lax.dot_general(p_bf[h], v[:, h * head_dim:(h + 1) * head_dim],
                             (((1,), (0,)), ((), ())),
                             preferred_element_type=jnp.float32)
             for h in range(num_heads)])                         # (H, bq, Dh)
        acc_ref[...] = alpha * acc_ref[...] + pv                 # one full sweep

    @pl.when(ki == pl.num_programs(2) - 1)
    def _():
        # approx reciprocal: ~12-bit accuracy, below bf16 output resolution.
        inv = pl.reciprocal(l_ref[...], approx=True)             # (H, bq, 1)
        out = acc_ref[...] * inv                                  # (H, bq, Dh)
        o_ref[0] = jnp.concatenate([out[h] for h in range(num_heads)],
                                   axis=-1).astype(o_ref.dtype)   # lane-dense (bq, D)


def flash_attention(q_arr, k_arr, v, num_heads, block=256, k_col_block=0):
    """q_arr / k_arr may be the same packed (B, S, 2D) QK buffer; `k_col_block`
    selects which D-wide column block of k_arr holds the keys."""
    B, S, D = v.shape
    head_dim = D // num_heads
    if q_arr.shape[-1] != D or k_arr.shape[-1] != D:
        assert D % 128 == 0, "packed QK path needs a 128-aligned d_model"
    bq = bk = _pick(S, block, 8)           # bq == bk keeps every processed row non-empty
    grid = (S // bq, B, S // bk)           # largest parallel axis first (megacore)

    q_spec = pl.BlockSpec((1, bq, D), lambda i, b, j: (b, i, 0))
    # Clamp the kv block index: iterations that pl.when skips re-reference the
    # already-resident block, so Pallas elides the K/V DMA (halves causal KV traffic).
    k_spec = pl.BlockSpec((1, bk, D), lambda i, b, j: (b, jnp.minimum(j, i), k_col_block))
    v_spec = pl.BlockSpec((1, bk, D), lambda i, b, j: (b, jnp.minimum(j, i), 0))
    o_spec = pl.BlockSpec((1, bq, D), lambda i, b, j: (b, i, 0))

    return pl.pallas_call(
        functools.partial(_flash_attn_kernel, num_heads=num_heads, head_dim=head_dim,
                          block_q=bq, block_k=bk, scale=1.0 / math.sqrt(head_dim)),
        out_shape=jax.ShapeDtypeStruct((B, S, D), jnp.bfloat16),
        grid=grid,
        in_specs=[q_spec, k_spec, v_spec],
        out_specs=o_spec,
        scratch_shapes=[pltpu.VMEM((num_heads, bq, 1), jnp.float32),        # m
                        pltpu.VMEM((num_heads, bq, 1), jnp.float32),        # l
                        pltpu.VMEM((num_heads, bq, head_dim), jnp.float32)],  # acc
        compiler_params=pltpu.CompilerParams(
            dimension_semantics=("parallel", "parallel", "arbitrary")),
    )(q_arr, k_arr, v)


# --------------------------------------------------------------------------- #
# Model forward (thin JAX glue; no transposes / relayouts between kernels)
# --------------------------------------------------------------------------- #
def transformer_layer(x, p, num_heads, tabs):
    B, S, D = x.shape
    cos_t, sin_m, sin_p = tabs
    # one pass over x: LayerNorm output (for V / residual path) + RoPE'd output (for Q,K).
    # NOTE: matching the PyTorch module, RoPE is applied to the *pre-in_proj* normalized
    # activations for query/key; value uses the un-rotated x_norm.
    xn, xrot = layernorm_rope(x, p["ln_g"], p["ln_b"], cos_t, sin_m, sin_p)
    xn2 = xn.reshape(B * S, D)
    xr2 = xrot.reshape(B * S, D)

    v = linear(xn2, p["wv"], p["bv"]).reshape(B, S, D)
    if D % 128 == 0:
        # Fused Q|K projection; attention reads Q and K straight out of the packed
        # (B, S, 2D) buffer via last-axis block indices 0 / 1 (no split copy).
        qk = linear(xr2, p["wqk"], p["bqk"]).reshape(B, S, 2 * D)
        attn = flash_attention(qk, qk, v, num_heads, k_col_block=1)
    else:
        qk = linear(xr2, p["wqk"], p["bqk"])
        q = qk[:, :D].reshape(B, S, D)
        k = qk[:, D:].reshape(B, S, D)
        attn = flash_attention(q, k, v, num_heads, k_col_block=0)

    # out-projection with bias + residual add fused in the epilogue (dropout = identity)
    out = linear(attn.reshape(B * S, D), p["wo"], p["bo"],
                 residual=x.reshape(B * S, D))
    return out.reshape(B, S, D)


def simple_transformer_forward(x, params, num_heads, num_classes):
    B, S, Din = x.shape
    D = params["emb_w"].shape[1]
    x2 = x.reshape(B * S, Din)
    if Din % 128 == 0:
        h = linear(x2, params["emb_w"]).reshape(B, S, D)           # bias=False
    else:
        # K = d_input is lane-sparse (<128): an MXU tile would waste >85% of the
        # systolic array, so this trivially mem-bound projection stays in XLA.
        h = jnp.dot(x2, params["emb_w"], preferred_element_type=jnp.float32
                    ).astype(jnp.bfloat16).reshape(B, S, D)
    # dropout: identity (eval)
    tabs = rope_tables(S, D, num_heads)
    for lp in params["layers"]:
        h = transformer_layer(h, lp, num_heads, tabs)
    h2 = layernorm_rope(h, params["norm_out_g"], params["norm_out_b"])   # no RoPE
    h1 = linear(h2.reshape(B * S, D), params["mlp_w1"], params["mlp_b1"],
                activation="gelu")                                       # GELU fused
    logits = linear(h1, params["mlp_w2"], params["mlp_b2"])              # N padded to 128
    return logits.reshape(B, S, -1)[..., :num_classes]


# --------------------------------------------------------------------------- #
# Deterministic parameter init (weights stored pre-transposed: (in, out) layout;
# Q|K packed along the output axis; classifier padded to a lane-dense width)
# --------------------------------------------------------------------------- #
def init_params(key, d_input, d_res, num_layers, num_heads, num_classes):
    dt = jnp.bfloat16
    keys = jax.random.split(key, 3 + num_layers)

    def nrm(k, shape, scale=0.02):
        return (scale * jax.random.normal(k, shape, dtype=jnp.float32)).astype(dt)

    nc_pad = _round_up(num_classes, 128)
    w2 = jnp.pad(nrm(keys[2], (4 * d_res, num_classes)),
                 ((0, 0), (0, nc_pad - num_classes)))

    params = {
        "emb_w": nrm(keys[0], (d_input, d_res)),
        "norm_out_g": jnp.ones((d_res,), dt),
        "norm_out_b": jnp.zeros((d_res,), dt),
        "mlp_w1": nrm(keys[1], (d_res, 4 * d_res)),
        "mlp_b1": jnp.zeros((4 * d_res,), dt),
        "mlp_w2": w2,
        "mlp_b2": jnp.zeros((nc_pad,), dt),
        "layers": [],
    }
    for i in range(num_layers):
        lk = jax.random.split(keys[3 + i], 4)
        wq, wk = nrm(lk[0], (d_res, d_res)), nrm(lk[1], (d_res, d_res))
        params["layers"].append({
            "ln_g": jnp.ones((d_res,), dt),
            "ln_b": jnp.zeros((d_res,), dt),
            "wqk": jnp.concatenate([wq, wk], axis=1),   # packed Q|K projection
            "bqk": jnp.zeros((2 * d_res,), dt),
            "wv": nrm(lk[2], (d_res, d_res)), "bv": jnp.zeros((d_res,), dt),
            "wo": nrm(lk[3], (d_res, d_res)), "bo": jnp.zeros((d_res,), dt),
        })
    return params


if __name__ == "__main__":
    # Small but lane-dense shapes (d_res multiple of 128, head_dim = 128) so the
    # kernels exercise their real, unmasked code paths (previous review flagged
    # sub-128 test dims as unrepresentative).  Activations stay tiny (2 x 8 rows).
    B, S = 2, 8
    D_IN, D_RES, N_LAYERS, N_HEADS, N_CLASSES = 16, 256, 2, 2, 10

    key = jax.random.PRNGKey(0)
    kx, kp = jax.random.split(key)
    x = jax.random.normal(kx, (B, S, D_IN), dtype=jnp.float32).astype(jnp.bfloat16)
    params = init_params(kp, D_IN, D_RES, N_LAYERS, N_HEADS, N_CLASSES)

    fwd = jax.jit(functools.partial(simple_transformer_forward,
                                    num_heads=N_HEADS, num_classes=N_CLASSES))
    out = fwd(x, params)
    out = jax.block_until_ready(out)

    assert out.shape == (B, S, N_CLASSES), out.shape
    assert out.dtype == jnp.bfloat16, out.dtype
    assert bool(jnp.all(jnp.isfinite(out.astype(jnp.float32))))
    print("KERNEL_OK")
</pallas_src>

<mosaic_0001>
module attributes {stable_mosaic.version = 11 : i64} {
  func.func @_linear_kernel_direct(%arg0: i32, %arg1: i32, %arg2: memref<16x256xbf16, #tpu.memory_space<vmem>>, %arg3: memref<256x256xbf16, #tpu.memory_space<vmem>>, %arg4: memref<1x256xbf16, #tpu.memory_space<vmem>>, %arg5: memref<16x256xbf16, #tpu.memory_space<vmem>>) attributes {dimension_semantics = [#tpu.dimension_semantics<parallel>, #tpu.dimension_semantics<parallel>], iteration_bounds = array<i64: 1, 1>, scalar_prefetch = 0 : i64, scratch_operands = 0 : i64, tpu.core_type = #tpu.core_type<tc>, window_params = [{transform_indices = @transform_0, window_bounds = array<i64: 16, 256>}, {transform_indices = @transform_1, window_bounds = array<i64: 256, 256>}, {transform_indices = @transform_2, window_bounds = array<i64: 1, 256>}, {transform_indices = @transform_3, window_bounds = array<i64: 16, 256>}]} {
    %c0 = arith.constant 0 : index
    %c0_0 = arith.constant 0 : index
    %0 = vector.load %arg2[%c0, %c0_0] : memref<16x256xbf16, #tpu.memory_space<vmem>>, vector<16x256xbf16>
    %c0_1 = arith.constant 0 : index
    %c0_2 = arith.constant 0 : index
    %1 = vector.load %arg3[%c0_1, %c0_2] : memref<256x256xbf16, #tpu.memory_space<vmem>>, vector<256x256xbf16>
    %cst = arith.constant dense<0.000000e+00> : vector<16x256xf32>
    %2 = tpu.matmul %0, %1, %cst {dimension_numbers = #tpu.dot_dimension_numbers<[1], [0], [0], [1], [0, 0, 1, 1], [], []>} : vector<16x256xbf16>, vector<256x256xbf16>, vector<16x256xf32> -> vector<16x256xf32>
    %c0_3 = arith.constant 0 : index
    %c0_4 = arith.constant 0 : index
    %3 = vector.load %arg4[%c0_3, %c0_4] : memref<1x256xbf16, #tpu.memory_space<vmem>>, vector<1x256xbf16>
    %4 = arith.extf %3 : vector<1x256xbf16> to vector<1x256xf32>
    %5 = vector.broadcast %4 : vector<1x256xf32> to vector<16x256xf32>
    %6 = arith.addf %2, %5 : vector<16x256xf32>
    %7 = arith.truncf %6 : vector<16x256xf32> to vector<16x256xbf16>
    %c0_5 = arith.constant 0 : index
    %c0_6 = arith.constant 0 : index
    %8 = vector.load %arg5[%c0_5, %c0_6] : memref<16x256xbf16, #tpu.memory_space<vmem>>, vector<16x256xbf16>
    tpu.vector_store %arg5[%c0_5, %c0_6], %7 {strides = array<i32>} : memref<16x256xbf16, #tpu.memory_space<vmem>>, vector<16x256xbf16>,
    return
  }
  func.func @transform_0(%arg0: i32, %arg1: i32) -> (i32, i32) {
    %c0_i32 = arith.constant 0 : i32
    %c0_i32_0 = arith.constant 0 : i32
    return %arg0, %c0_i32 : i32, i32
  }
  func.func @transform_1(%arg0: i32, %arg1: i32) -> (i32, i32) {
    %c0_i32 = arith.constant 0 : i32
    %c0_i32_0 = arith.constant 0 : i32
    return %c0_i32, %arg1 : i32, i32
  }
  func.func @transform_2(%arg0: i32, %arg1: i32) -> (i32, i32) {
    %c0_i32 = arith.constant 0 : i32
    %c0_i32_0 = arith.constant 0 : i32
    return %c0_i32, %arg1 : i32, i32
  }
  func.func @transform_3(%arg0: i32, %arg1: i32) -> (i32, i32) {
    %c0_i32 = arith.constant 0 : i32
    return %arg0, %arg1 : i32, i32
  }
}

module attributes {stable_mosaic.version = 11 : i64} {
  func.func @_ln_kernel(%arg0: i32, %arg1: i32, %arg2: memref<1x8x256xbf16, #tpu.memory_space<vmem>>, %arg3: memref<1x256xbf16, #tpu.memory_space<vmem>>, %arg4: memref<1x256xbf16, #tpu.memory_space<vmem>>, %arg5: memref<8x256xf32, #tpu.memory_space<vmem>>, %arg6: memref<8x256xf32, #tpu.memory_space<vmem>>, %arg7: memref<8x256xf32, #tpu.memory_space<vmem>>, %arg8: memref<1x8x256xbf16, #tpu.memory_space<vmem>>, %arg9: memref<1x8x256xbf16, #tpu.memory_space<vmem>>) attributes {dimension_semantics = [#tpu.dimension_semantics<parallel>, #tpu.dimension_semantics<parallel>], iteration_bounds = array<i64: 1, 2>, scalar_prefetch = 0 : i64, scratch_operands = 0 : i64, tpu.core_type = #tpu.core_type<tc>, window_params = [{transform_indices = @transform_0, window_bounds = array<i64: 1, 8, 256>}, {pipeline_mode = #tpu.pipeline_mode<synchronous>, transform_indices = @transform_1, window_bounds = array<i64: 1, 256>}, {pipeline_mode = #tpu.pipeline_mode<synchronous>, transform_indices = @transform_2, window_bounds = array<i64: 1, 256>}, {transform_indices = @transform_3, window_bounds = array<i64: 8, 256>}, {transform_indices = @transform_4, window_bounds = array<i64: 8, 256>}, {transform_indices = @transform_5, window_bounds = array<i64: 8, 256>}, {transform_indices = @transform_6, window_bounds = array<i64: 1, 8, 256>}, {transform_indices = @transform_7, window_bounds = array<i64: 1, 8, 256>}]} {
    %c0 = arith.constant 0 : index
    %c0_0 = arith.constant 0 : index
    %c0_1 = arith.constant 0 : index
    %0 = vector.load %arg2[%c0, %c0_0, %c0_1] : memref<1x8x256xbf16, #tpu.memory_space<vmem>>, vector<1x8x256xbf16>
    %1 = vector.shape_cast %0 : vector<1x8x256xbf16> to vector<8x256xbf16>
    %2 = arith.extf %1 : vector<8x256xbf16> to vector<8x256xf32>
    %cst = arith.constant dense<0.000000e+00> : vector<8xf32>
    %3 = vector.multi_reduction <add>, %2, %cst [1] : vector<8x256xf32> to vector<8xf32>
    %4 = vector.shape_cast %3 : vector<8xf32> to vector<8x1xf32>
    %cst_2 = arith.constant 2.560000e+02 : f32
    %5 = vector.broadcast %cst_2 : f32 to vector<8x1xf32>
    %6 = arith.divf %4, %5 : vector<8x1xf32>
    %7 = vector.broadcast %6 : vector<8x1xf32> to vector<8x256xf32>
    %8 = arith.subf %2, %7 : vector<8x256xf32>
    %9 = arith.mulf %8, %8 : vector<8x256xf32>
    %cst_3 = arith.constant dense<0.000000e+00> : vector<8xf32>
    %10 = vector.multi_reduction <add>, %9, %cst_3 [1] : vector<8x256xf32> to vector<8xf32>
    %11 = vector.shape_cast %10 : vector<8xf32> to vector<8x1xf32>
    %cst_4 = arith.constant 2.560000e+02 : f32
    %12 = vector.broadcast %cst_4 : f32 to vector<8x1xf32>
    %13 = arith.divf %11, %12 : vector<8x1xf32>
    %14 = vector.broadcast %6 : vector<8x1xf32> to vector<8x256xf32>
    %15 = arith.subf %2, %14 : vector<8x256xf32>
    %cst_5 = arith.constant 9.99999974E-6 : f32
    %16 = vector.broadcast %cst_5 : f32 to vector<8x1xf32>
    %17 = arith.addf %13, %16 : vector<8x1xf32>
    %18 = math.rsqrt %17 : vector<8x1xf32>
    %19 = vector.broadcast %18 : vector<8x1xf32> to vector<8x256xf32>
    %20 = arith.mulf %15, %19 : vector<8x256xf32>
    %c0_6 = arith.constant 0 : index
    %c0_7 = arith.constant 0 : index
    %21 = vector.load %arg3[%c0_6, %c0_7] : memref<1x256xbf16, #tpu.memory_space<vmem>>, vector<1x256xbf16>
    %22 = arith.extf %21 : vector<1x256xbf16> to vector<1x256xf32>
    %23 = vector.broadcast %22 : vector<1x256xf32> to vector<8x256xf32>
    %24 = arith.mulf %20, %23 : vector<8x256xf32>
    %c0_8 = arith.constant 0 : index
    %c0_9 = arith.constant 0 : index
    %25 = vector.load %arg4[%c0_8, %c0_9] : memref<1x256xbf16, #tpu.memory_space<vmem>>, vector<1x256xbf16>
    %26 = arith.extf %25 : vector<1x256xbf16> to vector<1x256xf32>
    %27 = vector.broadcast %26 : vector<1x256xf32> to vector<8x256xf32>
    %28 = arith.addf %24, %27 : vector<8x256xf32>
    %29 = arith.truncf %28 : vector<8x256xf32> to vector<8x256xbf16>
    %c0_10 = arith.constant 0 : index
    %c0_11 = arith.constant 0 : index
    %c0_12 = arith.constant 0 : index
    %30 = vector.load %arg8[%c0_10, %c0_11, %c0_12] : memref<1x8x256xbf16, #tpu.memory_space<vmem>>, vector<1x8x256xbf16>
    %31 = vector.shape_cast %30 : vector<1x8x256xbf16> to vector<8x256xbf16>
    %32 = vector.shape_cast %29 : vector<8x256xbf16> to vector<1x8x256xbf16>
    tpu.vector_store %arg8[%c0_10, %c0_11, %c0_12], %32 {strides = array<i32>} : memref<1x8x256xbf16, #tpu.memory_space<vmem>>, vector<1x8x256xbf16>,
    %33 = arith.extf %29 : vector<8x256xbf16> to vector<8x256xf32>
    %c0_13 = arith.constant 0 : index
    %c0_14 = arith.constant 0 : index
    %34 = vector.load %arg5[%c0_13, %c0_14] : memref<8x256xf32, #tpu.memory_space<vmem>>, vector<8x256xf32>
    %35 = arith.mulf %33, %34 : vector<8x256xf32>
    %c255_i32 = arith.constant 255 : i32
    %36 = tpu.dynamic_rotate %33 by %c255_i32 dim 1 : vector<8x256xf32>, i32 -> vector<8x256xf32>
    %c0_15 = arith.constant 0 : index
    %c0_16 = arith.constant 0 : index
    %37 = vector.load %arg6[%c0_15, %c0_16] : memref<8x256xf32, #tpu.memory_space<vmem>>, vector<8x256xf32>
    %38 = arith.mulf %36, %37 : vector<8x256xf32>
    %39 = arith.addf %35, %38 : vector<8x256xf32>
    %c1_i32 = arith.constant 1 : i32
    %40 = tpu.dynamic_rotate %33 by %c1_i32 dim 1 : vector<8x256xf32>, i32 -> vector<8x256xf32>
    %c0_17 = arith.constant 0 : index
    %c0_18 = arith.constant 0 : index
    %41 = vector.load %arg7[%c0_17, %c0_18] : memref<8x256xf32, #tpu.memory_space<vmem>>, vector<8x256xf32>
    %42 = arith.mulf %40, %41 : vector<8x256xf32>
    %43 = arith.addf %39, %42 : vector<8x256xf32>
    %44 = arith.truncf %43 : vector<8x256xf32> to vector<8x256xbf16>
    %c0_19 = arith.constant 0 : index
    %c0_20 = arith.constant 0 : index
    %c0_21 = arith.constant 0 : index
    %45 = vector.load %arg9[%c0_19, %c0_20, %c0_21] : memref<1x8x256xbf16, #tpu.memory_space<vmem>>, vector<1x8x256xbf16>
    %46 = vector.shape_cast %45 : vector<1x8x256xbf16> to vector<8x256xbf16>
    %47 = vector.shape_cast %44 : vector<8x256xbf16> to vector<1x8x256xbf16>
    tpu.vector_store %arg9[%c0_19, %c0_20, %c0_21], %47 {strides = array<i32>} : memref<1x8x256xbf16, #tpu.memory_space<vmem>>, vector<1x8x256xbf16>,
    return
  }
  func.func @transform_0(%arg0: i32, %arg1: i32) -> (i32, i32, i32) {
    %c0_i32 = arith.constant 0 : i32
    %c0_i32_0 = arith.constant 0 : i32
    return %arg1, %arg0, %c0_i32 : i32, i32, i32
  }
  func.func @transform_1(%arg0: i32, %arg1: i32) -> (i32, i32) {
    %c0_i32 = arith.constant 0 : i32
    %c0_i32_0 = arith.constant 0 : i32
    %c0_i32_1 = arith.constant 0 : i32
    return %c0_i32, %c0_i32_0 : i32, i32
  }
  func.func @transform_2(%arg0: i32, %arg1: i32) -> (i32, i32) {
    %c0_i32 = arith.constant 0 : i32
    %c0_i32_0 = arith.constant 0 : i32
    %c0_i32_1 = arith.constant 0 : i32
    return %c0_i32, %c0_i32_0 : i32, i32
  }
  func.func @transform_3(%arg0: i32, %arg1: i32) -> (i32, i32) {
    %c0_i32 = arith.constant 0 : i32
    %c0_i32_0 = arith.constant 0 : i32
    return %arg0, %c0_i32 : i32, i32
  }
  func.func @transform_4(%arg0: i32, %arg1: i32) -> (i32, i32) {
    %c0_i32 = arith.constant 0 : i32
    %c0_i32_0 = arith.constant 0 : i32
    return %arg0, %c0_i32 : i32, i32
  }
  func.func @transform_5(%arg0: i32, %arg1: i32) -> (i32, i32) {
    %c0_i32 = arith.constant 0 : i32
    %c0_i32_0 = arith.constant 0 : i32
    return %arg0, %c0_i32 : i32, i32
  }
  func.func @transform_6(%arg0: i32, %arg1: i32) -> (i32, i32, i32) {
    %c0_i32 = arith.constant 0 : i32
    %c0_i32_0 = arith.constant 0 : i32
    return %arg1, %arg0, %c0_i32 : i32, i32, i32
  }
  func.func @transform_7(%arg0: i32, %arg1: i32) -> (i32, i32, i32) {
    %c0_i32 = arith.constant 0 : i32
    %c0_i32_0 = arith.constant 0 : i32
    return %arg1, %arg0, %c0_i32 : i32, i32, i32
  }
}

module attributes {stable_mosaic.version = 11 : i64} {
  func.func @_linear_kernel_direct(%arg0: i32, %arg1: i32, %arg2: memref<16x256xbf16, #tpu.memory_space<vmem>>, %arg3: memref<256x512xbf16, #tpu.memory_space<vmem>>, %arg4: memref<1x512xbf16, #tpu.memory_space<vmem>>, %arg5: memref<16x512xbf16, #tpu.memory_space<vmem>>) attributes {dimension_semantics = [#tpu.dimension_semantics<parallel>, #tpu.dimension_semantics<parallel>], iteration_bounds = array<i64: 1, 1>, scalar_prefetch = 0 : i64, scratch_operands = 0 : i64, tpu.core_type = #tpu.core_type<tc>, window_params = [{transform_indices = @transform_0, window_bounds = array<i64: 16, 256>}, {transform_indices = @transform_1, window_bounds = array<i64: 256, 512>}, {transform_indices = @transform_2, window_bounds = array<i64: 1, 512>}, {transform_indices = @transform_3, window_bounds = array<i64: 16, 512>}]} {
    %c0 = arith.constant 0 : index
    %c0_0 = arith.constant 0 : index
    %0 = vector.load %arg2[%c0, %c0_0] : memref<16x256xbf16, #tpu.memory_space<vmem>>, vector<16x256xbf16>
    %c0_1 = arith.constant 0 : index
    %c0_2 = arith.constant 0 : index
    %1 = vector.load %arg3[%c0_1, %c0_2] : memref<256x512xbf16, #tpu.memory_space<vmem>>, vector<256x512xbf16>
    %cst = arith.constant dense<0.000000e+00> : vector<16x512xf32>
    %2 = tpu.matmul %0, %1, %cst {dimension_numbers = #tpu.dot_dimension_numbers<[1], [0], [0], [1], [0, 0, 1, 1], [], []>} : vector<16x256xbf16>, vector<256x512xbf16>, vector<16x512xf32> -> vector<16x512xf32>
    %c0_3 = arith.constant 0 : index
    %c0_4 = arith.constant 0 : index
    %3 = vector.load %arg4[%c0_3, %c0_4] : memref<1x512xbf16, #tpu.memory_space<vmem>>, vector<1x512xbf16>
    %4 = arith.extf %3 : vector<1x512xbf16> to vector<1x512xf32>
    %5 = vector.broadcast %4 : vector<1x512xf32> to vector<16x512xf32>
    %6 = arith.addf %2, %5 : vector<16x512xf32>
    %7 = arith.truncf %6 : vector<16x512xf32> to vector<16x512xbf16>
    %c0_5 = arith.constant 0 : index
    %c0_6 = arith.constant 0 : index
    %8 = vector.load %arg5[%c0_5, %c0_6] : memref<16x512xbf16, #tpu.memory_space<vmem>>, vector<16x512xbf16>
    tpu.vector_store %arg5[%c0_5, %c0_6], %7 {strides = array<i32>} : memref<16x512xbf16, #tpu.memory_space<vmem>>, vector<16x512xbf16>,
    return
  }
  func.func @transform_0(%arg0: i32, %arg1: i32) -> (i32, i32) {
    %c0_i32 = arith.constant 0 : i32
    %c0_i32_0 = arith.constant 0 : i32
    return %arg0, %c0_i32 : i32, i32
  }
  func.func @transform_1(%arg0: i32, %arg1: i32) -> (i32, i32) {
    %c0_i32 = arith.constant 0 : i32
    %c0_i32_0 = arith.constant 0 : i32
    return %c0_i32, %arg1 : i32, i32
  }
  func.func @transform_2(%arg0: i32, %arg1: i32) -> (i32, i32) {
    %c0_i32 = arith.constant 0 : i32
    %c0_i32_0 = arith.constant 0 : i32
    return %c0_i32, %arg1 : i32, i32
  }
  func.func @transform_3(%arg0: i32, %arg1: i32) -> (i32, i32) {
    %c0_i32 = arith.constant 0 : i32
    return %arg0, %arg1 : i32, i32
  }
}

module attributes {stable_mosaic.version = 11 : i64} {
  func.func @_flash_attn_kernel(%arg0: i32, %arg1: i32, %arg2: i32, %arg3: memref<1x8x256xbf16, #tpu.memory_space<vmem>>, %arg4: memref<1x8x256xbf16, #tpu.memory_space<vmem>>, %arg5: memref<1x8x256xbf16, #tpu.memory_space<vmem>>, %arg6: memref<1x8x256xbf16, #tpu.memory_space<vmem>>, %arg7: memref<2x8x1xf32, #tpu.memory_space<vmem>>, %arg8: memref<2x8x1xf32, #tpu.memory_space<vmem>>, %arg9: memref<2x8x128xf32, #tpu.memory_space<vmem>>) attributes {dimension_semantics = [#tpu.dimension_semantics<parallel>, #tpu.dimension_semantics<parallel>, #tpu.dimension_semantics<arbitrary>], iteration_bounds = array<i64: 1, 2, 1>, scalar_prefetch = 0 : i64, scratch_operands = 3 : i64, tpu.core_type = #tpu.core_type<tc>, window_params = [{transform_indices = @transform_0, window_bounds = array<i64: 1, 8, 256>}, {transform_indices = @transform_1, window_bounds = array<i64: 1, 8, 256>}, {transform_indices = @transform_2, window_bounds = array<i64: 1, 8, 256>}, {transform_indices = @transform_3, window_bounds = array<i64: 1, 8, 256>}]} {
    %c0_i32 = arith.constant 0 : i32
    %0 = arith.cmpi eq, %arg2, %c0_i32 : i32
    %1 = arith.extui %0 : i1 to i32
    %c0_i32_0 = arith.constant 0 : i32
    %2 = arith.cmpi ne, %1, %c0_i32_0 : i32
    scf.if %2 {
      %cst = arith.constant 0xFF800000 : f32
      %9 = vector.broadcast %cst : f32 to vector<2x8x1xf32>
      %c0 = arith.constant 0 : index
      %c0_4 = arith.constant 0 : index
      %c0_5 = arith.constant 0 : index
      %10 = vector.load %arg7[%c0, %c0_4, %c0_5] : memref<2x8x1xf32, #tpu.memory_space<vmem>>, vector<2x8x1xf32>
      tpu.vector_store %arg7[%c0, %c0_4, %c0_5], %9 {strides = array<i32>} : memref<2x8x1xf32, #tpu.memory_space<vmem>>, vector<2x8x1xf32>,
      %cst_6 = arith.constant 0.000000e+00 : f32
      %11 = vector.broadcast %cst_6 : f32 to vector<2x8x1xf32>
      %c0_7 = arith.constant 0 : index
      %c0_8 = arith.constant 0 : index
      %c0_9 = arith.constant 0 : index
      %12 = vector.load %arg8[%c0_7, %c0_8, %c0_9] : memref<2x8x1xf32, #tpu.memory_space<vmem>>, vector<2x8x1xf32>
      tpu.vector_store %arg8[%c0_7, %c0_8, %c0_9], %11 {strides = array<i32>} : memref<2x8x1xf32, #tpu.memory_space<vmem>>, vector<2x8x1xf32>,
      %cst_10 = arith.constant 0.000000e+00 : f32
      %13 = vector.broadcast %cst_10 : f32 to vector<2x8x128xf32>
      %c0_11 = arith.constant 0 : index
      %c0_12 = arith.constant 0 : index
      %c0_13 = arith.constant 0 : index
      %14 = vector.load %arg9[%c0_11, %c0_12, %c0_13] : memref<2x8x128xf32, #tpu.memory_space<vmem>>, vector<2x8x128xf32>
      tpu.vector_store %arg9[%c0_11, %c0_12, %c0_13], %13 {strides = array<i32>} : memref<2x8x128xf32, #tpu.memory_space<vmem>>, vector<2x8x128xf32>,
    } else {
    }
    %3 = arith.cmpi sle, %arg2, %arg0 : i32
    %4 = arith.extui %3 : i1 to i32
    %c0_i32_1 = arith.constant 0 : i32
    %5 = arith.cmpi ne, %4, %c0_i32_1 : i32
    scf.if %5 {
      %c0 = arith.constant 0 : index
      %c0_4 = arith.constant 0 : index
      %c0_5 = arith.constant 0 : index
      %9 = vector.load %arg3[%c0, %c0_4, %c0_5] : memref<1x8x256xbf16, #tpu.memory_space<vmem>>, vector<1x8x256xbf16>
      %10 = vector.shape_cast %9 : vector<1x8x256xbf16> to vector<8x256xbf16>
      %c0_6 = arith.constant 0 : index
      %c0_7 = arith.constant 0 : index
      %c0_8 = arith.constant 0 : index
      %11 = vector.load %arg4[%c0_6, %c0_7, %c0_8] : memref<1x8x256xbf16, #tpu.memory_space<vmem>>, vector<1x8x256xbf16>
      %12 = vector.shape_cast %11 : vector<1x8x256xbf16> to vector<8x256xbf16>
      %c0_9 = arith.constant 0 : index
      %c0_10 = arith.constant 0 : index
      %c0_11 = arith.constant 0 : index
      %13 = vector.load %arg5[%c0_9, %c0_10, %c0_11] : memref<1x8x256xbf16, #tpu.memory_space<vmem>>, vector<1x8x256xbf16>
      %14 = vector.shape_cast %13 : vector<1x8x256xbf16> to vector<8x256xbf16>
      %c8_i32 = arith.constant 8 : i32
      %15 = arith.muli %arg0, %c8_i32 : i32
      %16 = tpu.iota {dimensions = array<i32: 0>} : vector<8x8xi32>
      %17 = vector.broadcast %15 : i32 to vector<8x8xi32>
      %18 = arith.addi %17, %16 : vector<8x8xi32>
      %c8_i32_12 = arith.constant 8 : i32
      %19 = arith.muli %arg2, %c8_i32_12 : i32
      %20 = tpu.iota {dimensions = array<i32: 1>} : vector<8x8xi32>
      %21 = vector.broadcast %19 : i32 to vector<8x8xi32>
      %22 = arith.addi %21, %20 : vector<8x8xi32>
      %23 = arith.cmpi sle, %22, %18 : vector<8x8xi32>
      %24 = vector.shape_cast %23 : vector<8x8xi1> to vector<1x8x8xi1>
      %25 = vector.extract_strided_slice %10 {offsets = [0, 0], sizes = [8, 128], strides = [1, 1]} : vector<8x256xbf16> to vector<8x128xbf16>
      %26 = vector.extract_strided_slice %12 {offsets = [0, 0], sizes = [8, 128], strides = [1, 1]} : vector<8x256xbf16> to vector<8x128xbf16>
      %cst = arith.constant dense<0.000000e+00> : vector<8x8xf32>
      %27 = tpu.matmul %25, %26, %cst {dimension_numbers = #tpu.dot_dimension_numbers<[1], [1], [0], [0], [0, 0, 1, 0], [], []>} : vector<8x128xbf16>, vector<8x128xbf16>, vector<8x8xf32> -> vector<8x8xf32>
      %28 = vector.extract_strided_slice %10 {offsets = [0, 128], sizes = [8, 128], strides = [1, 1]} : vector<8x256xbf16> to vector<8x128xbf16>
      %29 = vector.extract_strided_slice %12 {offsets = [0, 128], sizes = [8, 128], strides = [1, 1]} : vector<8x256xbf16> to vector<8x128xbf16>
      %cst_13 = arith.constant dense<0.000000e+00> : vector<8x8xf32>
      %30 = tpu.matmul %28, %29, %cst_13 {dimension_numbers = #tpu.dot_dimension_numbers<[1], [1], [0], [0], [0, 0, 1, 0], [], []>} : vector<8x128xbf16>, vector<8x128xbf16>, vector<8x8xf32> -> vector<8x8xf32>
      %31 = vector.shape_cast %27 : vector<8x8xf32> to vector<1x8x8xf32>
      %32 = vector.shape_cast %30 : vector<8x8xf32> to vector<1x8x8xf32>
      %33 = tpu.concatenate %31, %32 in 0 : vector<1x8x8xf32>, vector<1x8x8xf32> -> vector<2x8x8xf32>
      %cst_14 = arith.constant 0.0883883461 : f32
      %34 = vector.broadcast %cst_14 : f32 to vector<2x8x8xf32>
      %35 = arith.mulf %33, %34 : vector<2x8x8xf32>
      %cst_15 = arith.constant 0xFF800000 : f32
      %36 = vector.shape_cast %24 : vector<1x8x8xi1> to vector<1x8x8xi1>
      %37 = vector.broadcast %36 : vector<1x8x8xi1> to vector<2x8x8xi1>
      %38 = vector.broadcast %cst_15 : f32 to vector<2x8x8xf32>
      %39 = arith.select %37, %35, %38 : vector<2x8x8xi1>, vector<2x8x8xf32>
      %c0_16 = arith.constant 0 : index
      %c0_17 = arith.constant 0 : index
      %c0_18 = arith.constant 0 : index
      %40 = vector.load %arg7[%c0_16, %c0_17, %c0_18] : memref<2x8x1xf32, #tpu.memory_space<vmem>>, vector<2x8x1xf32>
      %cst_19 = arith.constant dense<0xFF800000> : vector<2x8xf32>
      %41 = vector.multi_reduction <maximumf>, %39, %cst_19 [2] : vector<2x8x8xf32> to vector<2x8xf32>
      %42 = vector.shape_cast %41 : vector<2x8xf32> to vector<2x8x1xf32>
      %43 = arith.maximumf %40, %42 : vector<2x8x1xf32>
      %44 = arith.subf %40, %43 : vector<2x8x1xf32>
      %45 = math.exp %44 : vector<2x8x1xf32>
      %46 = vector.broadcast %43 : vector<2x8x1xf32> to vector<2x8x8xf32>
      %47 = arith.subf %39, %46 : vector<2x8x8xf32>
      %48 = math.exp %47 : vector<2x8x8xf32>
      %c0_20 = arith.constant 0 : index
      %c0_21 = arith.constant 0 : index
      %c0_22 = arith.constant 0 : index
      %49 = vector.load %arg8[%c0_20, %c0_21, %c0_22] : memref<2x8x1xf32, #tpu.memory_space<vmem>>, vector<2x8x1xf32>
      %50 = arith.mulf %45, %49 : vector<2x8x1xf32>
      %cst_23 = arith.constant dense<0.000000e+00> : vector<2x8xf32>
      %51 = vector.multi_reduction <add>, %48, %cst_23 [2] : vector<2x8x8xf32> to vector<2x8xf32>
      %52 = vector.shape_cast %51 : vector<2x8xf32> to vector<2x8x1xf32>
      %53 = arith.addf %50, %52 : vector<2x8x1xf32>
      %c0_24 = arith.constant 0 : index
      %c0_25 = arith.constant 0 : index
      %c0_26 = arith.constant 0 : index
      %54 = vector.load %arg8[%c0_24, %c0_25, %c0_26] : memref<2x8x1xf32, #tpu.memory_space<vmem>>, vector<2x8x1xf32>
      tpu.vector_store %arg8[%c0_24, %c0_25, %c0_26], %53 {strides = array<i32>} : memref<2x8x1xf32, #tpu.memory_space<vmem>>, vector<2x8x1xf32>,
      %c0_27 = arith.constant 0 : index
      %c0_28 = arith.constant 0 : index
      %c0_29 = arith.constant 0 : index
      %55 = vector.load %arg7[%c0_27, %c0_28, %c0_29] : memref<2x8x1xf32, #tpu.memory_space<vmem>>, vector<2x8x1xf32>
      tpu.vector_store %arg7[%c0_27, %c0_28, %c0_29], %43 {strides = array<i32>} : memref<2x8x1xf32, #tpu.memory_space<vmem>>, vector<2x8x1xf32>,
      %56 = arith.truncf %48 : vector<2x8x8xf32> to vector<2x8x8xbf16>
      %57 = vector.extract_strided_slice %56 {offsets = [0, 0, 0], sizes = [1, 8, 8], strides = [1, 1, 1]} : vector<2x8x8xbf16> to vector<1x8x8xbf16>
      %58 = vector.shape_cast %57 : vector<1x8x8xbf16> to vector<8x8xbf16>
      %59 = vector.extract_strided_slice %14 {offsets = [0, 0], sizes = [8, 128], strides = [1, 1]} : vector<8x256xbf16> to vector<8x128xbf16>
      %cst_30 = arith.constant dense<0.000000e+00> : vector<8x128xf32>
      %60 = tpu.matmul %58, %59, %cst_30 {dimension_numbers = #tpu.dot_dimension_numbers<[1], [0], [0], [1], [0, 0, 1, 1], [], []>} : vector<8x8xbf16>, vector<8x128xbf16>, vector<8x128xf32> -> vector<8x128xf32>
      %61 = vector.extract_strided_slice %56 {offsets = [1, 0, 0], sizes = [1, 8, 8], strides = [1, 1, 1]} : vector<2x8x8xbf16> to vector<1x8x8xbf16>
      %62 = vector.shape_cast %61 : vector<1x8x8xbf16> to vector<8x8xbf16>
      %63 = vector.extract_strided_slice %14 {offsets = [0, 128], sizes = [8, 128], strides = [1, 1]} : vector<8x256xbf16> to vector<8x128xbf16>
      %cst_31 = arith.constant dense<0.000000e+00> : vector<8x128xf32>
      %64 = tpu.matmul %62, %63, %cst_31 {dimension_numbers = #tpu.dot_dimension_numbers<[1], [0], [0], [1], [0, 0, 1, 1], [], []>} : vector<8x8xbf16>, vector<8x128xbf16>, vector<8x128xf32> -> vector<8x128xf32>
      %65 = vector.shape_cast %60 : vector<8x128xf32> to vector<1x8x128xf32>
      %66 = vector.shape_cast %64 : vector<8x128xf32> to vector<1x8x128xf32>
      %67 = tpu.concatenate %65, %66 in 0 : vector<1x8x128xf32>, vector<1x8x128xf32> -> vector<2x8x128xf32>
      %c0_32 = arith.constant 0 : index
      %c0_33 = arith.constant 0 : index
      %c0_34 = arith.constant 0 : index
      %68 = vector.load %arg9[%c0_32, %c0_33, %c0_34] : memref<2x8x128xf32, #tpu.memory_space<vmem>>, vector<2x8x128xf32>
      %69 = vector.broadcast %45 : vector<2x8x1xf32> to vector<2x8x128xf32>
      %70 = arith.mulf %69, %68 : vector<2x8x128xf32>
      %71 = arith.addf %70, %67 : vector<2x8x128xf32>
      %c0_35 = arith.constant 0 : index
      %c0_36 = arith.constant 0 : index
      %c0_37 = arith.constant 0 : index
      %72 = vector.load %arg9[%c0_35, %c0_36, %c0_37] : memref<2x8x128xf32, #tpu.memory_space<vmem>>, vector<2x8x128xf32>
      tpu.vector_store %arg9[%c0_35, %c0_36, %c0_37], %71 {strides = array<i32>} : memref<2x8x128xf32, #tpu.memory_space<vmem>>, vector<2x8x128xf32>,
    } else {
    }
    %c0_i32_2 = arith.constant 0 : i32
    %6 = arith.cmpi eq, %arg2, %c0_i32_2 : i32
    %7 = arith.extui %6 : i1 to i32
    %c0_i32_3 = arith.constant 0 : i32
    %8 = arith.cmpi ne, %7, %c0_i32_3 : i32
    scf.if %8 {
      %c0 = arith.constant 0 : index
      %c0_4 = arith.constant 0 : index
      %c0_5 = arith.constant 0 : index
      %9 = vector.load %arg8[%c0, %c0_4, %c0_5] : memref<2x8x1xf32, #tpu.memory_space<vmem>>, vector<2x8x1xf32>
      %10 = tpu.reciprocal %9 {approx = true} : vector<2x8x1xf32> -> vector<2x8x1xf32>
      %c0_6 = arith.constant 0 : index
      %c0_7 = arith.constant 0 : index
      %c0_8 = arith.constant 0 : index
      %11 = vector.load %arg9[%c0_6, %c0_7, %c0_8] : memref<2x8x128xf32, #tpu.memory_space<vmem>>, vector<2x8x128xf32>
      %12 = vector.broadcast %10 : vector<2x8x1xf32> to vector<2x8x128xf32>
      %13 = arith.mulf %11, %12 : vector<2x8x128xf32>
      %14 = vector.extract_strided_slice %13 {offsets = [0, 0, 0], sizes = [1, 8, 128], strides = [1, 1, 1]} : vector<2x8x128xf32> to vector<1x8x128xf32>
      %15 = vector.shape_cast %14 : vector<1x8x128xf32> to vector<8x128xf32>
      %16 = vector.extract_strided_slice %13 {offsets = [1, 0, 0], sizes = [1, 8, 128], strides = [1, 1, 1]} : vector<2x8x128xf32> to vector<1x8x128xf32>
      %17 = vector.shape_cast %16 : vector<1x8x128xf32> to vector<8x128xf32>
      %18 = tpu.concatenate %15, %17 in 1 : vector<8x128xf32>, vector<8x128xf32> -> vector<8x256xf32>
      %19 = arith.truncf %18 : vector<8x256xf32> to vector<8x256xbf16>
      %c0_9 = arith.constant 0 : index
      %c0_10 = arith.constant 0 : index
      %c0_11 = arith.constant 0 : index
      %20 = vector.load %arg6[%c0_9, %c0_10, %c0_11] : memref<1x8x256xbf16, #tpu.memory_space<vmem>>, vector<1x8x256xbf16>
      %21 = vector.shape_cast %20 : vector<1x8x256xbf16> to vector<8x256xbf16>
      %22 = vector.shape_cast %19 : vector<8x256xbf16> to vector<1x8x256xbf16>
      tpu.vector_store %arg6[%c0_9, %c0_10, %c0_11], %22 {strides = array<i32>} : memref<1x8x256xbf16, #tpu.memory_space<vmem>>, vector<1x8x256xbf16>,
    } else {
    }
    return
  }
  func.func @transform_0(%arg0: i32, %arg1: i32, %arg2: i32) -> (i32, i32, i32) {
    %c0_i32 = arith.constant 0 : i32
    %c0_i32_0 = arith.constant 0 : i32
    return %arg1, %arg0, %c0_i32 : i32, i32, i32
  }
  func.func @transform_1(%arg0: i32, %arg1: i32, %arg2: i32) -> (i32, i32, i32) {
    %0 = arith.minsi %arg2, %arg0 : i32
    %c1_i32 = arith.constant 1 : i32
    %c0_i32 = arith.constant 0 : i32
    return %arg1, %0, %c1_i32 : i32, i32, i32
  }
  func.func @transform_2(%arg0: i32, %arg1: i32, %arg2: i32) -> (i32, i32, i32) {
    %0 = arith.minsi %arg2, %arg0 : i32
    %c0_i32 = arith.constant 0 : i32
    %c0_i32_0 = arith.constant 0 : i32
    return %arg1, %0, %c0_i32 : i32, i32, i32
  }
  func.func @transform_3(%arg0: i32, %arg1: i32, %arg2: i32) -> (i32, i32, i32) {
    %c0_i32 = arith.constant 0 : i32
    %c0_i32_0 = arith.constant 0 : i32
    return %arg1, %arg0, %c0_i32 : i32, i32, i32
  }
}

module attributes {stable_mosaic.version = 11 : i64} {
  func.func @_linear_kernel_direct(%arg0: i32, %arg1: i32, %arg2: memref<16x1024xbf16, #tpu.memory_space<vmem>>, %arg3: memref<1024x128xbf16, #tpu.memory_space<vmem>>, %arg4: memref<1x128xbf16, #tpu.memory_space<vmem>>, %arg5: memref<16x128xbf16, #tpu.memory_space<vmem>>) attributes {dimension_semantics = [#tpu.dimension_semantics<parallel>, #tpu.dimension_semantics<parallel>], iteration_bounds = array<i64: 1, 1>, scalar_prefetch = 0 : i64, scratch_operands = 0 : i64, tpu.core_type = #tpu.core_type<tc>, window_params = [{transform_indices = @transform_0, window_bounds = array<i64: 16, 1024>}, {transform_indices = @transform_1, window_bounds = array<i64: 1024, 128>}, {transform_indices = @transform_2, window_bounds = array<i64: 1, 128>}, {transform_indices = @transform_3, window_bounds = array<i64: 16, 128>}]} {
    %c0 = arith.constant 0 : index
    %c0_0 = arith.constant 0 : index
    %0 = vector.load %arg2[%c0, %c0_0] : memref<16x1024xbf16, #tpu.memory_space<vmem>>, vector<16x1024xbf16>
    %c0_1 = arith.constant 0 : index
    %c0_2 = arith.constant 0 : index
    %1 = vector.load %arg3[%c0_1, %c0_2] : memref<1024x128xbf16, #tpu.memory_space<vmem>>, vector<1024x128xbf16>
    %cst = arith.constant dense<0.000000e+00> : vector<16x128xf32>
    %2 = tpu.matmul %0, %1, %cst {dimension_numbers = #tpu.dot_dimension_numbers<[1], [0], [0], [1], [0, 0, 1, 1], [], []>} : vector<16x1024xbf16>, vector<1024x128xbf16>, vector<16x128xf32> -> vector<16x128xf32>
    %c0_3 = arith.constant 0 : index
    %c0_4 = arith.constant 0 : index
    %3 = vector.load %arg4[%c0_3, %c0_4] : memref<1x128xbf16, #tpu.memory_space<vmem>>, vector<1x128xbf16>
    %4 = arith.extf %3 : vector<1x128xbf16> to vector<1x128xf32>
    %5 = vector.broadcast %4 : vector<1x128xf32> to vector<16x128xf32>
    %6 = arith.addf %2, %5 : vector<16x128xf32>
    %7 = arith.truncf %6 : vector<16x128xf32> to vector<16x128xbf16>
    %c0_5 = arith.constant 0 : index
    %c0_6 = arith.constant 0 : index
    %8 = vector.load %arg5[%c0_5, %c0_6] : memref<16x128xbf16, #tpu.memory_space<vmem>>, vector<16x128xbf16>
    tpu.vector_store %arg5[%c0_5, %c0_6], %7 {strides = array<i32>} : memref<16x128xbf16, #tpu.memory_space<vmem>>, vector<16x128xbf16>,
    return
  }
  func.func @transform_0(%arg0: i32, %arg1: i32) -> (i32, i32) {
    %c0_i32 = arith.constant 0 : i32
    %c0_i32_0 = arith.constant 0 : i32
    return %arg0, %c0_i32 : i32, i32
  }
  func.func @transform_1(%arg0: i32, %arg1: i32) -> (i32, i32) {
    %c0_i32 = arith.constant 0 : i32
    %c0_i32_0 = arith.constant 0 : i32
    return %c0_i32, %arg1 : i32, i32
  }
  func.func @transform_2(%arg0: i32, %arg1: i32) -> (i32, i32) {
    %c0_i32 = arith.constant 0 : i32
    %c0_i32_0 = arith.constant 0 : i32
    return %c0_i32, %arg1 : i32, i32
  }
  func.func @transform_3(%arg0: i32, %arg1: i32) -> (i32, i32) {
    %c0_i32 = arith.constant 0 : i32
    return %arg0, %arg1 : i32, i32
  }
}

module attributes {stable_mosaic.version = 11 : i64} {
  func.func @_linear_kernel_direct(%arg0: i32, %arg1: i32, %arg2: memref<16x256xbf16, #tpu.memory_space<vmem>>, %arg3: memref<256x256xbf16, #tpu.memory_space<vmem>>, %arg4: memref<1x256xbf16, #tpu.memory_space<vmem>>, %arg5: memref<16x256xbf16, #tpu.memory_space<vmem>>, %arg6: memref<16x256xbf16, #tpu.memory_space<vmem>>) attributes {dimension_semantics = [#tpu.dimension_semantics<parallel>, #tpu.dimension_semantics<parallel>], iteration_bounds = array<i64: 1, 1>, scalar_prefetch = 0 : i64, scratch_operands = 0 : i64, tpu.core_type = #tpu.core_type<tc>, window_params = [{transform_indices = @transform_0, window_bounds = array<i64: 16, 256>}, {transform_indices = @transform_1, window_bounds = array<i64: 256, 256>}, {transform_indices = @transform_2, window_bounds = array<i64: 1, 256>}, {transform_indices = @transform_3, window_bounds = array<i64: 16, 256>}, {transform_indices = @transform_4, window_bounds = array<i64: 16, 256>}]} {
    %c0 = arith.constant 0 : index
    %c0_0 = arith.constant 0 : index
    %0 = vector.load %arg2[%c0, %c0_0] : memref<16x256xbf16, #tpu.memory_space<vmem>>, vector<16x256xbf16>
    %c0_1 = arith.constant 0 : index
    %c0_2 = arith.constant 0 : index
    %1 = vector.load %arg3[%c0_1, %c0_2] : memref<256x256xbf16, #tpu.memory_space<vmem>>, vector<256x256xbf16>
    %cst = arith.constant dense<0.000000e+00> : vector<16x256xf32>
    %2 = tpu.matmul %0, %1, %cst {dimension_numbers = #tpu.dot_dimension_numbers<[1], [0], [0], [1], [0, 0, 1, 1], [], []>} : vector<16x256xbf16>, vector<256x256xbf16>, vector<16x256xf32> -> vector<16x256xf32>
    %c0_3 = arith.constant 0 : index
    %c0_4 = arith.constant 0 : index
    %3 = vector.load %arg4[%c0_3, %c0_4] : memref<1x256xbf16, #tpu.memory_space<vmem>>, vector<1x256xbf16>
    %4 = arith.extf %3 : vector<1x256xbf16> to vector<1x256xf32>
    %5 = vector.broadcast %4 : vector<1x256xf32> to vector<16x256xf32>
    %6 = arith.addf %2, %5 : vector<16x256xf32>
    %c0_5 = arith.constant 0 : index
    %c0_6 = arith.constant 0 : index
    %7 = vector.load %arg5[%c0_5, %c0_6] : memref<16x256xbf16, #tpu.memory_space<vmem>>, vector<16x256xbf16>
    %8 = arith.extf %7 : vector<16x256xbf16> to vector<16x256xf32>
    %9 = arith.addf %6, %8 : vector<16x256xf32>
    %10 = arith.truncf %9 : vector<16x256xf32> to vector<16x256xbf16>
    %c0_7 = arith.constant 0 : index
    %c0_8 = arith.constant 0 : index
    %11 = vector.load %arg6[%c0_7, %c0_8] : memref<16x256xbf16, #tpu.memory_space<vmem>>, vector<16x256xbf16>
    tpu.vector_store %arg6[%c0_7, %c0_8], %10 {strides = array<i32>} : memref<16x256xbf16, #tpu.memory_space<vmem>>, vector<16x256xbf16>,
    return
  }
  func.func @transform_0(%arg0: i32, %arg1: i32) -> (i32, i32) {
    %c0_i32 = arith.constant 0 : i32
    %c0_i32_0 = arith.constant 0 : i32
    return %arg0, %c0_i32 : i32, i32
  }
  func.func @transform_1(%arg0: i32, %arg1: i32) -> (i32, i32) {
    %c0_i32 = arith.constant 0 : i32
    %c0_i32_0 = arith.constant 0 : i32
    return %c0_i32, %arg1 : i32, i32
  }
  func.func @transform_2(%arg0: i32, %arg1: i32) -> (i32, i32) {
    %c0_i32 = arith.constant 0 : i32
    %c0_i32_0 = arith.constant 0 : i32
    return %c0_i32, %arg1 : i32, i32
  }
  func.func @transform_3(%arg0: i32, %arg1: i32) -> (i32, i32) {
    %c0_i32 = arith.constant 0 : i32
    return %arg0, %arg1 : i32, i32
  }
  func.func @transform_4(%arg0: i32, %arg1: i32) -> (i32, i32) {
    %c0_i32 = arith.constant 0 : i32
    return %arg0, %arg1 : i32, i32
  }
}

module attributes {stable_mosaic.version = 11 : i64} {
  func.func @_ln_kernel(%arg0: i32, %arg1: i32, %arg2: memref<1x8x256xbf16, #tpu.memory_space<vmem>>, %arg3: memref<1x256xbf16, #tpu.memory_space<vmem>>, %arg4: memref<1x256xbf16, #tpu.memory_space<vmem>>, %arg5: memref<1x8x256xbf16, #tpu.memory_space<vmem>>) attributes {dimension_semantics = [#tpu.dimension_semantics<parallel>, #tpu.dimension_semantics<parallel>], iteration_bounds = array<i64: 1, 2>, scalar_prefetch = 0 : i64, scratch_operands = 0 : i64, tpu.core_type = #tpu.core_type<tc>, window_params = [{transform_indices = @transform_0, window_bounds = array<i64: 1, 8, 256>}, {pipeline_mode = #tpu.pipeline_mode<synchronous>, transform_indices = @transform_1, window_bounds = array<i64: 1, 256>}, {pipeline_mode = #tpu.pipeline_mode<synchronous>, transform_indices = @transform_2, window_bounds = array<i64: 1, 256>}, {transform_indices = @transform_3, window_bounds = array<i64: 1, 8, 256>}]} {
    %c0 = arith.constant 0 : index
    %c0_0 = arith.constant 0 : index
    %c0_1 = arith.constant 0 : index
    %0 = vector.load %arg2[%c0, %c0_0, %c0_1] : memref<1x8x256xbf16, #tpu.memory_space<vmem>>, vector<1x8x256xbf16>
    %1 = vector.shape_cast %0 : vector<1x8x256xbf16> to vector<8x256xbf16>
    %2 = arith.extf %1 : vector<8x256xbf16> to vector<8x256xf32>
    %cst = arith.constant dense<0.000000e+00> : vector<8xf32>
    %3 = vector.multi_reduction <add>, %2, %cst [1] : vector<8x256xf32> to vector<8xf32>
    %4 = vector.shape_cast %3 : vector<8xf32> to vector<8x1xf32>
    %cst_2 = arith.constant 2.560000e+02 : f32
    %5 = vector.broadcast %cst_2 : f32 to vector<8x1xf32>
    %6 = arith.divf %4, %5 : vector<8x1xf32>
    %7 = vector.broadcast %6 : vector<8x1xf32> to vector<8x256xf32>
    %8 = arith.subf %2, %7 : vector<8x256xf32>
    %9 = arith.mulf %8, %8 : vector<8x256xf32>
    %cst_3 = arith.constant dense<0.000000e+00> : vector<8xf32>
    %10 = vector.multi_reduction <add>, %9, %cst_3 [1] : vector<8x256xf32> to vector<8xf32>
    %11 = vector.shape_cast %10 : vector<8xf32> to vector<8x1xf32>
    %cst_4 = arith.constant 2.560000e+02 : f32
    %12 = vector.broadcast %cst_4 : f32 to vector<8x1xf32>
    %13 = arith.divf %11, %12 : vector<8x1xf32>
    %14 = vector.broadcast %6 : vector<8x1xf32> to vector<8x256xf32>
    %15 = arith.subf %2, %14 : vector<8x256xf32>
    %cst_5 = arith.constant 9.99999974E-6 : f32
    %16 = vector.broadcast %cst_5 : f32 to vector<8x1xf32>
    %17 = arith.addf %13, %16 : vector<8x1xf32>
    %18 = math.rsqrt %17 : vector<8x1xf32>
    %19 = vector.broadcast %18 : vector<8x1xf32> to vector<8x256xf32>
    %20 = arith.mulf %15, %19 : vector<8x256xf32>
    %c0_6 = arith.constant 0 : index
    %c0_7 = arith.constant 0 : index
    %21 = vector.load %arg3[%c0_6, %c0_7] : memref<1x256xbf16, #tpu.memory_space<vmem>>, vector<1x256xbf16>
    %22 = arith.extf %21 : vector<1x256xbf16> to vector<1x256xf32>
    %23 = vector.broadcast %22 : vector<1x256xf32> to vector<8x256xf32>
    %24 = arith.mulf %20, %23 : vector<8x256xf32>
    %c0_8 = arith.constant 0 : index
    %c0_9 = arith.constant 0 : index
    %25 = vector.load %arg4[%c0_8, %c0_9] : memref<1x256xbf16, #tpu.memory_space<vmem>>, vector<1x256xbf16>
    %26 = arith.extf %25 : vector<1x256xbf16> to vector<1x256xf32>
    %27 = vector.broadcast %26 : vector<1x256xf32> to vector<8x256xf32>
    %28 = arith.addf %24, %27 : vector<8x256xf32>
    %29 = arith.truncf %28 : vector<8x256xf32> to vector<8x256xbf16>
    %c0_10 = arith.constant 0 : index
    %c0_11 = arith.constant 0 : index
    %c0_12 = arith.constant 0 : index
    %30 = vector.load %arg5[%c0_10, %c0_11, %c0_12] : memref<1x8x256xbf16, #tpu.memory_space<vmem>>, vector<1x8x256xbf16>
    %31 = vector.shape_cast %30 : vector<1x8x256xbf16> to vector<8x256xbf16>
    %32 = vector.shape_cast %29 : vector<8x256xbf16> to vector<1x8x256xbf16>
    tpu.vector_store %arg5[%c0_10, %c0_11, %c0_12], %32 {strides = array<i32>} : memref<1x8x256xbf16, #tpu.memory_space<vmem>>, vector<1x8x256xbf16>,
    return
  }
  func.func @transform_0(%arg0: i32, %arg1: i32) -> (i32, i32, i32) {
    %c0_i32 = arith.constant 0 : i32
    %c0_i32_0 = arith.constant 0 : i32
    return %arg1, %arg0, %c0_i32 : i32, i32, i32
  }
  func.func @transform_1(%arg0: i32, %arg1: i32) -> (i32, i32) {
    %c0_i32 = arith.constant 0 : i32
    %c0_i32_0 = arith.constant 0 : i32
    %c0_i32_1 = arith.constant 0 : i32
    return %c0_i32, %c0_i32_0 : i32, i32
  }
  func.func @transform_2(%arg0: i32, %arg1: i32) -> (i32, i32) {
    %c0_i32 = arith.constant 0 : i32
    %c0_i32_0 = arith.constant 0 : i32
    %c0_i32_1 = arith.constant 0 : i32
    return %c0_i32, %c0_i32_0 : i32, i32
  }
  func.func @transform_3(%arg0: i32, %arg1: i32) -> (i32, i32, i32) {
    %c0_i32 = arith.constant 0 : i32
    %c0_i32_0 = arith.constant 0 : i32
    return %arg1, %arg0, %c0_i32 : i32, i32, i32
  }
}

module attributes {stable_mosaic.version = 11 : i64} {
  func.func @_linear_kernel_direct(%arg0: i32, %arg1: i32, %arg2: memref<16x256xbf16, #tpu.memory_space<vmem>>, %arg3: memref<256x512xbf16, #tpu.memory_space<vmem>>, %arg4: memref<1x512xbf16, #tpu.memory_space<vmem>>, %arg5: memref<16x512xbf16, #tpu.memory_space<vmem>>) attributes {dimension_semantics = [#tpu.dimension_semantics<parallel>, #tpu.dimension_semantics<parallel>], iteration_bounds = array<i64: 1, 2>, scalar_prefetch = 0 : i64, scratch_operands = 0 : i64, tpu.core_type = #tpu.core_type<tc>, window_params = [{transform_indices = @transform_0, window_bounds = array<i64: 16, 256>}, {transform_indices = @transform_1, window_bounds = array<i64: 256, 512>}, {transform_indices = @transform_2, window_bounds = array<i64: 1, 512>}, {transform_indices = @transform_3, window_bounds = array<i64: 16, 512>}]} {
    %c0 = arith.constant 0 : index
    %c0_0 = arith.constant 0 : index
    %0 = vector.load %arg2[%c0, %c0_0] : memref<16x256xbf16, #tpu.memory_space<vmem>>, vector<16x256xbf16>
    %c0_1 = arith.constant 0 : index
    %c0_2 = arith.constant 0 : index
    %1 = vector.load %arg3[%c0_1, %c0_2] : memref<256x512xbf16, #tpu.memory_space<vmem>>, vector<256x512xbf16>
    %cst = arith.constant dense<0.000000e+00> : vector<16x512xf32>
    %2 = tpu.matmul %0, %1, %cst {dimension_numbers = #tpu.dot_dimension_numbers<[1], [0], [0], [1], [0, 0, 1, 1], [], []>} : vector<16x256xbf16>, vector<256x512xbf16>, vector<16x512xf32> -> vector<16x512xf32>
    %c0_3 = arith.constant 0 : index
    %c0_4 = arith.constant 0 : index
    %3 = vector.load %arg4[%c0_3, %c0_4] : memref<1x512xbf16, #tpu.memory_space<vmem>>, vector<1x512xbf16>
    %4 = arith.extf %3 : vector<1x512xbf16> to vector<1x512xf32>
    %5 = vector.broadcast %4 : vector<1x512xf32> to vector<16x512xf32>
    %6 = arith.addf %2, %5 : vector<16x512xf32>
    %cst_5 = arith.constant 5.000000e-01 : f32
    %7 = vector.broadcast %cst_5 : f32 to vector<16x512xf32>
    %8 = arith.mulf %7, %6 : vector<16x512xf32>
    %cst_6 = arith.constant 0.707106769 : f32
    %9 = vector.broadcast %cst_6 : f32 to vector<16x512xf32>
    %10 = arith.mulf %6, %9 : vector<16x512xf32>
    %11 = math.absf %10 : vector<16x512xf32>
    %cst_7 = arith.constant 0.327591091 : f32
    %12 = vector.broadcast %cst_7 : f32 to vector<16x512xf32>
    %13 = arith.mulf %12, %11 : vector<16x512xf32>
    %cst_8 = arith.constant 1.000000e+00 : f32
    %14 = vector.broadcast %cst_8 : f32 to vector<16x512xf32>
    %15 = arith.addf %14, %13 : vector<16x512xf32>
    %16 = tpu.reciprocal %15 {approx = true} : vector<16x512xf32> -> vector<16x512xf32>
    %cst_9 = arith.constant 1.06140542 : f32
    %17 = vector.broadcast %cst_9 : f32 to vector<16x512xf32>
    %18 = arith.mulf %17, %16 : vector<16x512xf32>
    %cst_10 = arith.constant -1.45315206 : f32
    %19 = vector.broadcast %cst_10 : f32 to vector<16x512xf32>
    %20 = arith.addf %18, %19 : vector<16x512xf32>
    %21 = arith.mulf %20, %16 : vector<16x512xf32>
    %cst_11 = arith.constant 1.42141378 : f32
    %22 = vector.broadcast %cst_11 : f32 to vector<16x512xf32>
    %23 = arith.addf %21, %22 : vector<16x512xf32>
    %24 = arith.mulf %23, %16 : vector<16x512xf32>
    %cst_12 = arith.constant -0.284496725 : f32
    %25 = vector.broadcast %cst_12 : f32 to vector<16x512xf32>
    %26 = arith.addf %24, %25 : vector<16x512xf32>
    %27 = arith.mulf %26, %16 : vector<16x512xf32>
    %cst_13 = arith.constant 0.254829586 : f32
    %28 = vector.broadcast %cst_13 : f32 to vector<16x512xf32>
    %29 = arith.addf %27, %28 : vector<16x512xf32>
    %30 = arith.mulf %29, %16 : vector<16x512xf32>
    %cst_14 = arith.constant 0.000000e+00 : f32
    %31 = vector.broadcast %cst_14 : f32 to vector<16x512xf32>
    %32 = arith.subf %31, %11 : vector<16x512xf32>
    %33 = arith.mulf %32, %11 : vector<16x512xf32>
    %34 = math.exp %33 : vector<16x512xf32>
    %35 = arith.mulf %30, %34 : vector<16x512xf32>
    %cst_15 = arith.constant 1.000000e+00 : f32
    %36 = vector.broadcast %cst_15 : f32 to vector<16x512xf32>
    %37 = arith.subf %36, %35 : vector<16x512xf32>
    %cst_16 = arith.constant 0.000000e+00 : f32
    %38 = vector.broadcast %cst_16 : f32 to vector<16x512xf32>
    %39 = arith.cmpf oge, %10, %38 : vector<16x512xf32>
    %cst_17 = arith.constant 0.000000e+00 : f32
    %40 = vector.broadcast %cst_17 : f32 to vector<16x512xf32>
    %41 = arith.subf %40, %37 : vector<16x512xf32>
    %42 = arith.select %39, %37, %41 : vector<16x512xi1>, vector<16x512xf32>
    %cst_18 = arith.constant 1.000000e+00 : f32
    %43 = vector.broadcast %cst_18 : f32 to vector<16x512xf32>
    %44 = arith.addf %43, %42 : vector<16x512xf32>
    %45 = arith.mulf %8, %44 : vector<16x512xf32>
    %46 = arith.truncf %45 : vector<16x512xf32> to vector<16x512xbf16>
    %c0_19 = arith.constant 0 : index
    %c0_20 = arith.constant 0 : index
    %47 = vector.load %arg5[%c0_19, %c0_20] : memref<16x512xbf16, #tpu.memory_space<vmem>>, vector<16x512xbf16>
    tpu.vector_store %arg5[%c0_19, %c0_20], %46 {strides = array<i32>} : memref<16x512xbf16, #tpu.memory_space<vmem>>, vector<16x512xbf16>,
    return
  }
  func.func @transform_0(%arg0: i32, %arg1: i32) -> (i32, i32) {
    %c0_i32 = arith.constant 0 : i32
    %c0_i32_0 = arith.constant 0 : i32
    return %arg0, %c0_i32 : i32, i32
  }
  func.func @transform_1(%arg0: i32, %arg1: i32) -> (i32, i32) {
    %c0_i32 = arith.constant 0 : i32
    %c0_i32_0 = arith.constant 0 : i32
    return %c0_i32, %arg1 : i32, i32
  }
  func.func @transform_2(%arg0: i32, %arg1: i32) -> (i32, i32) {
    %c0_i32 = arith.constant 0 : i32
    %c0_i32_0 = arith.constant 0 : i32
    return %c0_i32, %arg1 : i32, i32
  }
  func.func @transform_3(%arg0: i32, %arg1: i32) -> (i32, i32) {
    %c0_i32 = arith.constant 0 : i32
    return %arg0, %arg1 : i32, i32
  }
}

</mosaic_0001>

<bundles_post_ra>
// kernel: simple_transformer_forward.13
= control target key start
LH: loop header
LB: loop body
LE: loop exit
PB: predicated region body
PF: predicated region fallthrough
CT: control target
= control target key end

     0   :  { %s834_s24 = smov 0   ;;  %s836_s25 = smov 0   ;;  %s899_s0 = inlined_call_operand.vmem [shape: bf16[2,8,256], index: 0, kind: input, shape index: {}]   ;;  %s900_s1 = inlined_call_operand.vmem [shape: bf16[1,256], index: 1, kind: input, shape index: {}]   ;;  %s901_s2 = inlined_call_operand.vmem [shape: bf16[1,256], index: 2, kind: input, shape index: {}]   ;;  %s902_s3 = inlined_call_operand.vmem [shape: f32[8,256], index: 3, kind: input, shape index: {}]   ;;  %s903_s4 = inlined_call_operand.vmem [shape: f32[8,256], index: 4, kind: input, shape index: {}]   ;;  %s904_s5 = inlined_call_operand.vmem [shape: f32[8,256], index: 5, kind: input, shape index: {}]   ;;  %s905_s6 = inlined_call_operand.vmem [shape: bf16[2,8,256], index: 6, kind: output, shape index: {0}]   ;;  %s906_s7 = inlined_call_operand.vmem [shape: bf16[2,8,256], index: 7, kind: output, shape index: {1}]  }
   0x1   :  { %s838_s26 = smov 0  }
   0x2 LB: > { %s27_s27 = sadd.s32 1, %s786_s25  ;;  %p714_p0 = scmp.ge.s32.totalorder %s790_s26, 1  ;;  %s790_s26 = sphi %s838_s26, %s18_s26   ;;  %s786_s25 = sphi %s836_s25, %s908_s25   ;;  %s782_s24 = sphi %s834_s24, %s907_s24  }
   0x3   : > { %p28_p1 = scmp.ge.s32.totalorder %s27_s27, 2  ;;  %p292_p2 = scmp.lt.s32.totalorder %s790_s26, 3 }
   0x5   : > { %s910_s27 = smov (%p28_p1, %s27_s27), 0  ;;  %p293_p3 = pnand %p714_p0, %p292_p2 }
   0x6   : > { %p356_p4 = scmp.lt.s32.totalorder (!%p293_p3), %s782_s24, 1  ;;  %s792_s16 = smov (!%p293_p3), 127  }
   0x7   : > { %296 = sbr.rel (%p293_p3) target bundleno = 463 (0x1cf), region = 44  ;;  %s793_s17 = smov (!%p293_p3), 1  }
   0xc   : > { %s912_s24 = smov (!%p356_p4, %s782_s24), 1  ;;  %v421_v13 = vlaneseq  ;;  %v418_v16 = vld [vmem:[%s900_s1] sm:$0x3]  ;;  %v476_v46 = vld [vmem:[%s902_s3 + $0x8] sm:$0xff] }
   0xd   : > { %s852_s28 = sshll.u32 %s912_s24, 3  ;;  %v441_v17 = vld [vmem:[%s901_s2] sm:$0x3]  ;;  %v419_v18 = vunpack.c.l.bf16 %v418_v16  ;;  %v489_v48 = vld [vmem:[%s903_s4 + $0x8] sm:$0xff] }
   0xe   : > { %s364_s8 = scalar_lea.vmem %s899_s0, %s852_s28  ;;  %v422_v15 = vshrl.u32 %v421_v13, 7  ;;  %v442_v21 = vunpack.c.l.bf16 %v441_v17  ;;  %s388_s15 = scalar_lea.vmem %s905_s6, %s852_s28  ;;  %v484_v43 = vand.u32 127, %v421_v13  ;;  %v475_v44 = vld [vmem:[%s902_s3] sm:$0xff]  ;;  %v502_v59 = vld [vmem:[%s904_s5 + $0x8] sm:$0xff] }
   0xf   : > { %v398_v0 = vld [vmem:[%s364_s8] sm:$0xff]  ;;  %s397_s13 = scalar_lea.vmem %s906_s7, %s852_s28 }
  0x10   : > { %v399_v1 = vunpack.c.l.bf16 %v398_v0  ;;  %v400_v2 = vunpack.c.h.bf16 %v398_v0  ;;  %v423_v19 = vsub.s32 0, %v422_v15  ;;  %v427_v20 = vsub.s32 2, %v422_v15  ;;  %v488_v47 = vld [vmem:[%s903_s4] sm:$0xff] }
  0x11   : > { %vm485_vm0 = vcmp.lt.s32.totalorder %v484_v43, 127  ;;  %vm498_vm1 = vcmp.lt.s32.totalorder %v484_v43, 1  ;;  %v501_v58 = vld [vmem:[%s904_s5] sm:$0xff] }
  0x12   : > { %v401_v3 = vadd.f32 %v400_v2, %v399_v1  ;;  %v424_v22 = vrot.slane %v419_v18, %v423_v19  ;;  %v428_v23 = vrot.slane %v419_v18, %v427_v20  ;;  %v447_v24 = vrot.slane %v442_v21, %v423_v19 }
  0x13   : > { %v451_v25 = vrot.slane %v442_v21, %v427_v20 }
  0x14   : > { %402 = vadd.xlane.f32.xlu0 %v401_v3  ;;  %v434_v26 = vrot.slane %v424_v22, %v423_v19  ;;  %v438_v27 = vrot.slane %v428_v23, %v423_v19  ;;  %v457_v31 = vrot.slane %v447_v24, %v423_v19 }
  0x15   : > { %v461_v32 = vrot.slane %v451_v25, %v423_v19 }
  0x9d   : > { %v403_v4 = vpop.xlane.xlu0 %402 }
  0x9e   : > { %v405_v5 = vmul.f32 0.00390625, %v403_v4 }
  0xa0   : > { %v406_v6 = vsub.f32 %v399_v1, %v405_v5  ;;  %v407_v7 = vsub.f32 %v400_v2, %v405_v5 }
  0xa2   : > { %v408_v8 = vmul.f32 %v406_v6, %v406_v6  ;;  %v409_v9 = vmul.f32 %v407_v7, %v407_v7 }
  0xa4   : > { %v410_v10 = vadd.f32 %v409_v9, %v408_v8 }
  0xa6   : > { %411 = vadd.xlane.f32.xlu0 %v410_v10 }
 0x12f   : > { %v412_v11 = vpop.xlane.xlu0 %411 }
 0x130   : > { %v413_v12 = vmul.f32 0.00390625, %v412_v11 }
 0x132   : > { %v414_v14 = vadd.f32 1e-05, %v413_v12 }
 0x134   : > { %766 = vrsqrt.f32 %v414_v14 }
 0x141   : > { %v767_v28 = vpop.eup %766 }
 0x142   : > { %v416_v29 = vmul.f32 %v767_v28, %v406_v6  ;;  %v417_v30 = vmul.f32 %v767_v28, %v407_v7 }
 0x144   : > { %v439_v33 = vmul.f32 %v434_v26, %v416_v29  ;;  %v440_v34 = vmul.f32 %v438_v27, %v417_v30 }
 0x146   : > { %v462_v35 = vadd.f32 %v457_v31, %v439_v33  ;;  %v463_v36 = vadd.f32 %v461_v32, %v440_v34 }
 0x148   : > { %v464_v37 = vpack.c.bf16 %v462_v35, %v462_v35  ;;  %v465_v38 = vpack.c.bf16 %v463_v36, %v463_v36  ;;  %v728_v39 = vpack.c.bf16 %v463_v36, %v462_v35 }
 0x14a   : > { %472 = vst [vmem:[%s388_s15] sm:$0xff] %v728_v39  ;;  %v473_v40 = vunpack.c.l.bf16 %v464_v37  ;;  %v474_v41 = vunpack.c.l.bf16 %v465_v38 }
 0x14c   : > { %v756_v42 = vpack.i.bf16 %v474_v41, %v473_v40  ;;  %v478_v53 = vmul.f32 %v476_v46, %v474_v41  ;;  %v477_v54 = vmul.f32 %v475_v44, %v473_v40 }
 0x14e   : > { %757 = vrot.lane.b32.xlu1 %v756_v42, %s792_s16 }
 0x152   : > { %762 = vrot.lane.b32.xlu1 %v756_v42, %s793_s17 }
 0x1c0   : > { %v758_v45 = vpop.permute.xlu1 %757 }
 0x1c1   : > { %v760_v49 = vunpack.i.h.bf16 %v758_v45  ;;  %v759_v50 = vunpack.i.l.bf16 %v758_v45 }
 0x1c3   : > { %v486_v51 = vsel %vm485_vm0, %v759_v50, %v760_v49  ;;  %v487_v52 = vsel %vm485_vm0, %v760_v49, %v759_v50 }
 0x1c4   : > { %v490_v55 = vmul.f32 %v488_v47, %v486_v51  ;;  %v491_v56 = vmul.f32 %v489_v48, %v487_v52  ;;  %v763_v57 = vpop.permute.xlu1 %762 }
 0x1c5   : > { %v765_v60 = vunpack.i.h.bf16 %v763_v57  ;;  %v764_v61 = vunpack.i.l.bf16 %v763_v57 }
 0x1c6   : > { %v492_v62 = vadd.f32 %v490_v55, %v477_v54  ;;  %v493_v63 = vadd.f32 %v491_v56, %v478_v53 }
 0x1c7   : > { %v499_v0 = vsel %vm498_vm1, %v764_v61, %v765_v60  ;;  %v500_v1 = vsel %vm498_vm1, %v765_v60, %v764_v61 }
 0x1c8   : > { %v503_v2 = vmul.f32 %v501_v58, %v500_v1  ;;  %v504_v3 = vmul.f32 %v502_v59, %v499_v0 }
 0x1ca   : > { %v505_v4 = vadd.f32 %v503_v2, %v492_v62  ;;  %v506_v5 = vadd.f32 %v504_v3, %v493_v63 }
 0x1cc   : > { %v729_v6 = vpack.c.bf16 %v506_v5, %v505_v4 }
 0x1ce   : > { %515 = vst [vmem:[%s397_s13] sm:$0xff] %v729_v6 }
 0x1cf PF: > { %s18_s26 = sadd.s32 1, %s790_s26   ;;  %s907_s24 = smov %s786_s25 }
 0x1d0   : > { %p15_p5 = scmp.ge.s32.totalorder %s18_s26, 4   ;;  %s908_s25 = smov %s910_s27 }
 0x1d2   :  { %17 = sbr.rel (!%p15_p5) target bundleno = 2 (0x2), region = 95 }

// kernel: simple_transformer_forward.16
= control target key start
LH: loop header
LB: loop body
LE: loop exit
PB: predicated region body
PF: predicated region fallthrough
CT: control target
= control target key end

     0   :  { %s925_s12 = smov 0   ;;  %s927_s13 = smov 0   ;;  %s990_s0 = inlined_call_operand.vmem [shape: bf16[2,8,512], index: 0, kind: input, shape index: {}, may-alias: {0,1}]   ;;  %s991_s1 = inlined_call_operand.vmem [shape: bf16[2,8,512], index: 1, kind: input, shape index: {}, may-alias: {0,1}]   ;;  %s992_s2 = inlined_call_operand.vmem [shape: bf16[2,8,256], index: 2, kind: input, shape index: {}]   ;;  %s993_s3 = inlined_call_operand.vmem [shape: bf16[2,8,256], index: 3, kind: output, shape index: {}]  }
   0x1   :  { %s929_s14 = smov 0  }
   0x2 LB: > { %s28_s15 = sadd.s32 1, %s895_s13  ;;  %p777_p0 = scmp.ge.s32.totalorder %s899_s14, 1  ;;  %s899_s14 = sphi %s929_s14, %s13_s14   ;;  %s895_s13 = sphi %s927_s13, %s995_s13   ;;  %s891_s12 = sphi %s925_s12, %s994_s12  }
   0x3   : > { %p30_p1 = scmp.ge.s32.totalorder %s28_s15, 2  ;;  %p213_p2 = scmp.lt.s32.totalorder %s899_s14, 3 }
   0x5   : > { %s997_s15 = smov (%p30_p1, %s28_s15), 0  ;;  %p214_p3 = pnand %p777_p0, %p213_p2 }
   0x6   : > { %p268_p4 = scmp.lt.s32.totalorder (!%p214_p3), %s891_s12, 1 }
   0x7   : > { %217 = sbr.rel (%p214_p3) target bundleno = 798 (0x31e), region = 32 }
   0xc   : > { %v901_v0 = vmov 0.0   ;;  %s999_s12 = smov (!%p268_p4, %s891_s12), 1  ;;  %vm902_vm0 = vmmov 0   ;;  %vm318_vm1 = vcmask 7168   ;;  %v903_v5 = vmov -inf  }
   0xd   : > { %808 = vmatprep.subr.bf16.mxu0 %v901_v0  ;;  %814 = vmatprep.subr.bf16.mxu1 %v901_v0  ;;  %s795_s16 = sshll.u32 %s999_s12, 4  ;;  %319 = vst.msk [vmem:[#allocation2] sm:$0xff] %vm318_vm1, %v903_v5  ;;  %320 = vst.msk [vmem:[#allocation2 + $0x8] sm:$0xff] %vm318_vm1, %v903_v5  ;;  %v333_v6 = vlaneseq  ;;  %vm439_vm3 = vcmask 64512   ;;  %v904_v23 = vmov 0   ;;  %s797_s23 = sshll.u32 %s999_s12, 3 }
   0xe   : > { %810 = vmatprep.mubr.msk.bf16.mxu0 %vm902_vm0, %v901_v0  ;;  %816 = vmatprep.mubr.msk.bf16.mxu1 %vm902_vm0, %v901_v0  ;;  %s708_s19 = scalar_lea.vmem %s991_s1, %s795_s16  ;;  %s276_s22 = scalar_lea.vmem %s990_s0, %s795_s16  ;;  %321 = vst.msk [vmem:[#allocation3] sm:$0xff] %vm318_vm1, %v901_v0  ;;  %322 = vst.msk [vmem:[#allocation3 + $0x8] sm:$0xff] %vm318_vm1, %v901_v0  ;;  %vm492_vm4 = vcmask 1043456  }
   0xf   : > { %v786_v1 = vld [vmem:[%s708_s19 + $0x8] sm:$0xff]  ;;  %v329_v3 = vld [vmem:[%s276_s22] sm:$0xff]  ;;  %v334_v7 = vshrl.u32 %v333_v6, 7  ;;  %v339_v8 = vand.u32 127, %v333_v6  ;;  %860 = vset.pattern.permute.xlu1 %v904_v23  ;;  %861 = vset.pattern.permute.xlu0 %v904_v23  ;;  %s301_s26 = scalar_lea.vmem %s992_s2, %s797_s23  ;;  %s312_s29 = scalar_lea.vmem %s993_s3, %s797_s23 }
  0x10   : > { %809 = vmatpush3.bf16.xpose.msra.mxu0 %v786_v1  ;;  %v788_v2 = vcombine.high %v786_v1, %v786_v1  ;;  %v787_v4 = vcombine.high %v329_v3, %v329_v3  ;;  %v331_v32 = vld [vmem:[%s301_s26] sm:$0xff] }
  0x11   : > { %820 = vmatprep.subr.bf16.mxu0 %v901_v0  ;;  %vm342_vm2 = vcmp.le.s32.totalorder %v339_v8, %v334_v7  ;;  %v494_v33 = vsel %vm492_vm4, %v331_v32, 0  ;;  %v790_v34 = vcombine.high %v331_v32, %v331_v32 }
  0x12   : > { %815 = vmatpush3.bf16.xpose.msra.mxu1 %v788_v2 }
  0x13   : > { %826 = vmatprep.subr.bf16.mxu1 %v901_v0  ;;  %v543_v35 = vsel %vm492_vm4, %v790_v34, 0 }
  0x14   : > { %v437_v24 = vld [vmem:[#allocation2] sm:$0xff]  ;;  %v438_v27 = vld [vmem:[#allocation2 + $0x8] sm:$0xff] }
  0x15   : > { %v470_v52 = vld [vmem:[#allocation3] sm:$0xff]  ;;  %v471_v55 = vld [vmem:[#allocation3 + $0x8] sm:$0xff] }
  0x17   : > { %811 = vmatmul.mubr.bf16.vlgmr.msra.gmra.mxu0 %v329_v3 }
  0x18   : > { %822 = vmatprep.mubr.msk.bf16.mxu0 %vm902_vm0, %v901_v0  ;;  %821 = vmatpush3.bf16.msra.mxu0 %v494_v33 }
  0x19   : > { %817 = vmatmul.mubr.bf16.vlgmr.msra.gmra.mxu1 %v787_v4 }
  0x1a   : > { %828 = vmatprep.mubr.msk.bf16.mxu1 %vm902_vm0, %v901_v0  ;;  %827 = vmatpush3.bf16.msra.mxu1 %v543_v35 }
  0xd7   : > { %v377_v9 = vpop.f32.mrf.mxu0 }
  0xd8   : > { %v431_v10 = vmul.f32 0.088388346, %v377_v9 }
  0xd9   : > { %v812_v11 = vpop.f32.mrf.mxu0  ;;  %v425_v12 = vpop.f32.mrf.mxu1 }
  0xda   : > { %v432_v13 = vmul.f32 0.088388346, %v425_v12  ;;  %v435_v14 = vsel %vm342_vm2, %v431_v10, -inf }
  0xdb   : > { %v380_v15 = vpop.f32.mrf.mxu0  ;;  %v818_v16 = vpop.f32.mrf.mxu1  ;;  %v440_v17 = vsel %vm439_vm3, %v435_v14, -inf }
  0xdc   : > { %441 = vmax.xlane.f32.xlu0 %v440_v17  ;;  %v436_v18 = vsel %vm342_vm2, %v432_v13, -inf }
  0xdd   : > { %v813_v19 = vpop.f32.mrf.mxu0  ;;  %v428_v20 = vpop.f32.mrf.mxu1  ;;  %v443_v21 = vsel %vm439_vm3, %v436_v18, -inf }
  0xdf   : > { %v819_v22 = vpop.f32.mrf.mxu1 }
  0xe0   : > { %444 = vmax.xlane.f32.xlu0 %v443_v21 }
 0x165   : > { %v442_v25 = vpop.xlane.xlu0 %441 }
 0x166   : > { %v446_v26 = vmax.f32 %v437_v24, %v442_v25 }
 0x168   : > { %v448_v28 = vsub.f32 %v437_v24, %v446_v26  ;;  %485 = vst.msk [vmem:[#allocation2] sm:$0xff] %vm318_vm1, %v446_v26  ;;  %456 = vperm.xlu1 %860, %v446_v26  }
 0x169   : > { %v445_v29 = vpop.xlane.xlu0 %444 }
 0x16a   : > { %v447_v30 = vmax.f32 %v438_v27, %v445_v29  ;;  %v450_v49 = vmul.f32 1.442695, %v448_v28 }
 0x16c   : > { %v449_v31 = vsub.f32 %v438_v27, %v447_v30  ;;  %486 = vst.msk [vmem:[#allocation2 + $0x8] sm:$0xff] %vm318_vm1, %v447_v30  ;;  %461 = vperm.xlu1 %860, %v447_v30  }
 0x16e   : > { %v452_v46 = vmul.f32 1.442695, %v449_v31 }
 0x1e3   : > { %v457_v36 = vpop.permute.xlu1 %456 }
 0x1e4   : > { %v464_v37 = vsub.f32 %v435_v14, %v457_v36 }
 0x1e6   : > { %v466_v38 = vmul.f32 1.442695, %v464_v37 }
 0x1e7   : > { %v462_v39 = vpop.permute.xlu1 %461 }
 0x1e8   : > { %865 = vpow2.f32 %v466_v38  ;;  %v465_v40 = vsub.f32 %v436_v18, %v462_v39 }
 0x1ea   : > { %v468_v41 = vmul.f32 1.442695, %v465_v40 }
 0x1ec   : > { %867 = vpow2.f32 %v468_v41 }
 0x1ed   : > { %869 = vpow2.f32 %v452_v46 }
 0x1ee   : > { %871 = vpow2.f32 %v450_v49 }
 0x1f5   : > { %v866_v42 = vpop.eup %865 }
 0x1f6   : > { %v474_v43 = vsel %vm439_vm3, %v866_v42, 0.0  ;;  %v487_v44 = vpack.c.bf16 %v866_v42, %v866_v42 }
 0x1f7   : > { %475 = vadd.xlane.f32.xlu0 %v474_v43 }
 0x1f8   : > { %823 = vmatmul.mubr.msk.bf16.vlgmr.msra.gmra.mxu0 %vm439_vm3, %v487_v44 }
 0x1f9   : > { %v868_v45 = vpop.eup %867 }
 0x1fa   : > { %v477_v47 = vsel %vm439_vm3, %v868_v45, 0.0  ;;  %v488_v48 = vpack.c.bf16 %v868_v45, %v868_v45  ;;  %v870_v50 = vpop.eup %869 }
 0x1fb   : > { %478 = vadd.xlane.f32.xlu1 %v477_v47  ;;  %v872_v51 = vpop.eup %871  ;;  %v473_v57 = vmul.f32 %v870_v50, %v471_v55 }
 0x1fc   : > { %829 = vmatmul.mubr.msk.bf16.vlgmr.msra.gmra.mxu1 %vm439_vm3, %v488_v48  ;;  %v472_v53 = vmul.f32 %v872_v51, %v470_v52 }
 0x20c   : > { %594 = vperm.xlu1 %860, %v870_v50  }
 0x20d   : > { %589 = vperm.xlu0 %861, %v872_v51  }
 0x280   : > { %v476_v54 = vpop.xlane.xlu0 %475 }
 0x281   : > { %v480_v56 = vadd.f32 %v476_v54, %v472_v53 }
 0x283   : > { %483 = vst.msk [vmem:[#allocation3] sm:$0xff] %vm318_vm1, %v480_v56 }
 0x284   : > { %v479_v58 = vpop.xlane.xlu1 %478 }
 0x285   : > { %v481_v59 = vadd.f32 %v479_v58, %v473_v57 }
 0x287   : > { %484 = vst.msk [vmem:[#allocation3 + $0x8] sm:$0xff] %vm318_vm1, %v481_v59 }
 0x288   : > { %v590_v8 = vpop.permute.xlu0 %589  ;;  %v595_v9 = vpop.permute.xlu1 %594 }
 0x289   : > { %v598_v11 = vmul.f32 0.0, %v595_v9  ;;  %v597_v12 = vmul.f32 0.0, %v590_v8 }
 0x28a   : > { %v606_v60 = vld [vmem:[#allocation3] sm:$0xff] }
 0x28b   : > { %873 = vrcp.f32 %v606_v60 }
 0x28e   : > { %v607_v61 = vld [vmem:[#allocation3 + $0x8] sm:$0xff] }
 0x28f   : > { %875 = vrcp.f32 %v607_v61 }
 0x298   : > { %v874_v62 = vpop.eup %873 }
 0x299   : > { %614 = vperm.xlu0 %861, %v874_v62  }
 0x29c   : > { %v876_v63 = vpop.eup %875 }
 0x29d   : > { %619 = vperm.xlu0 %861, %v876_v63  }
 0x2b8   : > { %v530_v0 = vpop.f32.mrf.mxu0 }
 0x2b9   : > { %v599_v13 = vadd.f32 %v597_v12, %v530_v0 }
 0x2ba   : > { %v824_v1 = vpop.f32.mrf.mxu0 }
 0x2bc   : > { %v533_v2 = vpop.f32.mrf.mxu0  ;;  %v579_v3 = vpop.f32.mrf.mxu1 }
 0x2bd   : > { %v600_v14 = vadd.f32 %v598_v11, %v579_v3 }
 0x2be   : > { %v825_v4 = vpop.f32.mrf.mxu0  ;;  %v830_v5 = vpop.f32.mrf.mxu1 }
 0x2c0   : > { %v582_v6 = vpop.f32.mrf.mxu1 }
 0x2c2   : > { %v831_v7 = vpop.f32.mrf.mxu1 }
 0x314   : > { %v615_v10 = vpop.permute.xlu0 %614 }
 0x315   : > { %v622_v16 = vmul.f32 %v615_v10, %v599_v13 }
 0x318   : > { %v620_v15 = vpop.permute.xlu0 %619 }
 0x319   : > { %v623_v17 = vmul.f32 %v620_v15, %v600_v14 }
 0x31b   : > { %v799_v18 = vpack.c.bf16 %v623_v17, %v622_v16 }
 0x31d   : > { %632 = vst [vmem:[%s312_s29] sm:$0xff] %v799_v18 }
 0x31e PF: > { %s13_s14 = sadd.s32 1, %s899_s14   ;;  %s994_s12 = smov %s895_s13 }
 0x31f   : > { %p10_p5 = scmp.ge.s32.totalorder %s13_s14, 4   ;;  %s995_s13 = smov %s997_s15 }
 0x321   :  { %12 = sbr.rel (!%p10_p5) target bundleno = 2 (0x2), region = 80 }

// kernel: simple_transformer_forward.14
= control target key start
LH: loop header
LB: loop body
LE: loop exit
PB: predicated region body
PF: predicated region fallthrough
CT: control target
= control target key end

     0   :  { %v51_v34 = vlaneseq  ;;  %s520_s1 = inlined_call_operand.vmem [shape: bf16[256,256], index: 1, kind: input, shape index: {}]   ;;  %s521_s0 = inlined_call_operand.vmem [shape: bf16[16,256], index: 0, kind: input, shape index: {}]   ;;  %s522_s2 = inlined_call_operand.vmem [shape: bf16[1,256], index: 2, kind: input, shape index: {}]   ;;  %s523_s3 = inlined_call_operand.vmem [shape: bf16[16,256], index: 3, kind: output, shape index: {}]  }
   0x1   :  { %v338_v0 = vld [vmem:[%s520_s1 + $0x74] ss:$8 sps:$4 sm:$0xff]   ;;  %v340_v1 = vld [vmem:[%s520_s1 + $0x70] ss:$8 sps:$4 sm:$0xff]   ;;  %v341_v2 = vld [vmem:[%s520_s1 + $0x64] ss:$8 sps:$4 sm:$0xff]  }
   0x2   :  { %239 = vmatprep.subr.bf16.mxu0 %v338_v0  ;;  %v343_v3 = vld [vmem:[%s520_s1 + $0x60] ss:$8 sps:$4 sm:$0xff]   ;;  %v344_v4 = vld [vmem:[%s520_s1 + $0x54] ss:$8 sps:$4 sm:$0xff]   ;;  %v346_v5 = vld [vmem:[%s520_s1 + $0x50] ss:$8 sps:$4 sm:$0xff]  }
   0x3   :  { %240 = vmatpush1.bf16.msra.mxu0 %v340_v1  ;;  %v347_v6 = vld [vmem:[%s520_s1 + $0x44] ss:$8 sps:$4 sm:$0xff]   ;;  %v349_v7 = vld [vmem:[%s520_s1 + $0x40] ss:$8 sps:$4 sm:$0xff]   ;;  %v350_v8 = vld [vmem:[%s520_s1 + $0x34] ss:$8 sps:$4 sm:$0xff]  }
   0x4   :  { %241 = vmatprep.subr.bf16.mxu0 %v341_v2  ;;  %v352_v9 = vld [vmem:[%s520_s1 + $0x30] ss:$8 sps:$4 sm:$0xff]   ;;  %v353_v10 = vld [vmem:[%s520_s1 + $0x24] ss:$8 sps:$4 sm:$0xff]   ;;  %v355_v11 = vld [vmem:[%s520_s1 + $0x20] ss:$8 sps:$4 sm:$0xff]  }
   0x5   :  { %v356_v12 = vld [vmem:[%s520_s1 + $0x14] ss:$8 sps:$4 sm:$0xff]   ;;  %v388_v13 = vld [vmem:[%s521_s0 + $0x4] ss:$8 sps:$4 sm:$0xff]   ;;  %v358_v14 = vld [vmem:[%s520_s1 + $0x10] ss:$8 sps:$4 sm:$0xff]  }
   0x6   :  { %v359_v15 = vld [vmem:[%s520_s1 + $0x4] ss:$8 sps:$4 sm:$0xff]   ;;  %271 = vmatprep.mubr.bf16.mxu0 %v388_v13  ;;  %v361_v16 = vld [vmem:[%s520_s1] ss:$8 sps:$4 sm:$0xff]   ;;  %v362_v17 = vld [vmem:[%s520_s1 + $0xf4] ss:$8 sps:$4 sm:$0xff]  }
   0x7   :  { %242 = vmatpush1.bf16.msra.mxu0 %v343_v3  ;;  %v364_v18 = vld [vmem:[%s520_s1 + $0xf0] ss:$8 sps:$4 sm:$0xff]   ;;  %v365_v19 = vld [vmem:[%s520_s1 + $0xe4] ss:$8 sps:$4 sm:$0xff]   ;;  %v367_v20 = vld [vmem:[%s520_s1 + $0xe0] ss:$8 sps:$4 sm:$0xff]  }
   0x8   :  { %243 = vmatprep.subr.bf16.mxu0 %v344_v4  ;;  %v368_v21 = vld [vmem:[%s520_s1 + $0xd4] ss:$8 sps:$4 sm:$0xff]   ;;  %v370_v22 = vld [vmem:[%s520_s1 + $0xd0] ss:$8 sps:$4 sm:$0xff]   ;;  %v371_v23 = vld [vmem:[%s520_s1 + $0xc4] ss:$8 sps:$4 sm:$0xff]  }
   0x9   :  { %v373_v24 = vld [vmem:[%s520_s1 + $0xc0] ss:$8 sps:$4 sm:$0xff]   ;;  %v374_v25 = vld [vmem:[%s520_s1 + $0xb4] ss:$8 sps:$4 sm:$0xff]   ;;  %v376_v26 = vld [vmem:[%s520_s1 + $0xb0] ss:$8 sps:$4 sm:$0xff]  }
   0xa   :  { %v377_v27 = vld [vmem:[%s520_s1 + $0xa4] ss:$8 sps:$4 sm:$0xff]   ;;  %v379_v28 = vld [vmem:[%s520_s1 + $0xa0] ss:$8 sps:$4 sm:$0xff]   ;;  %v380_v29 = vld [vmem:[%s520_s1 + $0x94] ss:$8 sps:$4 sm:$0xff]  }
   0xb   :  { %244 = vmatpush1.bf16.msra.mxu0 %v346_v5  ;;  %v382_v30 = vld [vmem:[%s520_s1 + $0x90] ss:$8 sps:$4 sm:$0xff]   ;;  %v383_v31 = vld [vmem:[%s520_s1 + $0x84] ss:$8 sps:$4 sm:$0xff]   ;;  %v385_v32 = vld [vmem:[%s520_s1 + $0x80] ss:$8 sps:$4 sm:$0xff]  }
   0xc   :  { %245 = vmatprep.subr.bf16.mxu0 %v347_v6  ;;  %v386_v33 = vld [vmem:[%s521_s0] ss:$8 sps:$4 sm:$0xff]   ;;  %v52_v35 = vshrl.u32 %v51_v34, 7 }
   0xd   :  { %v48_v36 = vld [vmem:[%s522_s2] sm:$0x3] }
   0xe   :  { %v49_v37 = vunpack.c.l.bf16 %v48_v36  ;;  %v53_v38 = vsub.s32 0, %v52_v35  ;;  %v57_v39 = vsub.s32 2, %v52_v35 }
   0xf   :  { %246 = vmatpush1.bf16.msra.mxu0 %v349_v7 }
  0x10   :  { %247 = vmatprep.subr.bf16.mxu0 %v350_v8  ;;  %v54_v40 = vrot.slane %v49_v37, %v53_v38  ;;  %v58_v41 = vrot.slane %v49_v37, %v57_v39 }
  0x12   :  { %v64_v42 = vrot.slane %v54_v40, %v53_v38  ;;  %v68_v43 = vrot.slane %v58_v41, %v53_v38 }
  0x13   :  { %248 = vmatpush1.bf16.msra.mxu0 %v352_v9 }
  0x14   :  { %249 = vmatprep.subr.bf16.mxu0 %v353_v10 }
  0x17   :  { %250 = vmatpush1.bf16.msra.mxu0 %v355_v11 }
  0x18   :  { %251 = vmatprep.subr.bf16.mxu0 %v356_v12 }
  0x1b   :  { %252 = vmatpush1.bf16.msra.mxu0 %v358_v14 }
  0x1c   :  { %253 = vmatprep.subr.bf16.mxu0 %v359_v15 }
  0x1f   :  { %254 = vmatpush1.bf16.msra.mxu0 %v361_v16 }
  0x20   :  { %255 = vmatprep.subr.bf16.mxu0 %v362_v17 }
  0x23   :  { %256 = vmatpush2.bf16.msra.mxu0 %v364_v18 }
  0x24   :  { %257 = vmatprep.subr.bf16.mxu0 %v365_v19 }
  0x27   :  { %258 = vmatpush2.bf16.msra.mxu0 %v367_v20 }
  0x28   :  { %259 = vmatprep.subr.bf16.mxu0 %v368_v21 }
  0x2b   :  { %260 = vmatpush2.bf16.msra.mxu0 %v370_v22 }
  0x2c   :  { %261 = vmatprep.subr.bf16.mxu0 %v371_v23 }
  0x2f   :  { %262 = vmatpush2.bf16.msra.mxu0 %v373_v24 }
  0x30   :  { %263 = vmatprep.subr.bf16.mxu0 %v374_v25 }
  0x33   :  { %264 = vmatpush2.bf16.msra.mxu0 %v376_v26 }
  0x34   :  { %265 = vmatprep.subr.bf16.mxu0 %v377_v27 }
  0x37   :  { %266 = vmatpush2.bf16.msra.mxu0 %v379_v28 }
  0x38   :  { %267 = vmatprep.subr.bf16.mxu0 %v380_v29 }
  0x3b   :  { %268 = vmatpush2.bf16.msra.mxu0 %v382_v30 }
  0x3c   :  { %269 = vmatprep.subr.bf16.mxu0 %v383_v31 }
  0x3f   :  { %270 = vmatpush2.bf16.msra.mxu0 %v385_v32 }
  0x42   :  { %272 = vmatmul.mubr.bf16.vlgmr.msra.gmra.mxu0 %v386_v33 }
 0x102   :  { %v273_v44 = vpop.f32.mrf.mxu0 }
 0x103   :  { %v274_v46 = vadd.f32 %v273_v44, %v64_v42 }
 0x104   :  { %v275_v45 = vpop.f32.mrf.mxu0 }
 0x105   :  { %v276_v47 = vadd.f32 %v275_v45, %v68_v43 }
 0x106   :  { %v277_v48 = vpop.f32.mrf.mxu0 }
 0x107   :  { %v336_v49 = vpack.c.bf16 %v276_v47, %v274_v46  ;;  %v278_v51 = vadd.f32 %v277_v48, %v64_v42 }
 0x108   :  { %v279_v50 = vpop.f32.mrf.mxu0 }
 0x109   :  { %294 = vst [vmem:[%s523_s3] sm:$0xff] %v336_v49  ;;  %v280_v52 = vadd.f32 %v279_v50, %v68_v43 }
 0x10b   :  { %v337_v53 = vpack.c.bf16 %v280_v52, %v278_v51 }
 0x10d   :  { %295 = vst [vmem:[%s523_s3 + $0x8] sm:$0xff] %v337_v53 }

// kernel: simple_transformer_forward.15
= control target key start
LH: loop header
LB: loop body
LE: loop exit
PB: predicated region body
PF: predicated region fallthrough
CT: control target
= control target key end

     0   :  { %s973_s1 = inlined_call_operand.vmem [shape: bf16[256,512], index: 1, kind: input, shape index: {}]   ;;  %s974_s0 = inlined_call_operand.vmem [shape: bf16[16,256], index: 0, kind: input, shape index: {}]   ;;  %s975_s2 = inlined_call_operand.vmem [shape: bf16[1,512], index: 2, kind: input, shape index: {}]   ;;  %s976_s3 = inlined_call_operand.vmem [shape: bf16[16,512], index: 3, kind: output, shape index: {}]  }
   0x1   :  { %v641_v0 = vld [vmem:[%s973_s1 + $0xe4] ss:$16 sps:$4 sm:$0xff]   ;;  %v643_v1 = vld [vmem:[%s973_s1 + $0xec] ss:$16 sps:$4 sm:$0xff]   ;;  %v645_v2 = vld [vmem:[%s973_s1 + $0xe0] ss:$16 sps:$4 sm:$0xff]  }
   0x2   :  { %449 = vmatprep.subr.bf16.mxu0 %v641_v0  ;;  %v646_v3 = vld [vmem:[%s973_s1 + $0xe8] ss:$16 sps:$4 sm:$0xff]   ;;  %492 = vmatprep.subr.bf16.mxu1 %v643_v1  ;;  %v647_v4 = vld [vmem:[%s973_s1 + $0xc4] ss:$16 sps:$4 sm:$0xff]   ;;  %v649_v5 = vld [vmem:[%s973_s1 + $0xcc] ss:$16 sps:$4 sm:$0xff]  }
   0x3   :  { %450 = vmatpush1.bf16.msra.mxu0 %v645_v2  ;;  %493 = vmatpush1.bf16.msra.mxu1 %v646_v3  ;;  %v651_v6 = vld [vmem:[%s973_s1 + $0xc0] ss:$16 sps:$4 sm:$0xff]   ;;  %v652_v7 = vld [vmem:[%s973_s1 + $0xc8] ss:$16 sps:$4 sm:$0xff]   ;;  %v653_v8 = vld [vmem:[%s973_s1 + $0xa4] ss:$16 sps:$4 sm:$0xff]   ;;  %v83_v2 = vlaneseq }
   0x4   :  { %451 = vmatprep.subr.bf16.mxu0 %v647_v4  ;;  %494 = vmatprep.subr.bf16.mxu1 %v649_v5  ;;  %v655_v9 = vld [vmem:[%s973_s1 + $0xac] ss:$16 sps:$4 sm:$0xff]   ;;  %v657_v10 = vld [vmem:[%s973_s1 + $0xa0] ss:$16 sps:$4 sm:$0xff]   ;;  %v658_v11 = vld [vmem:[%s973_s1 + $0xa8] ss:$16 sps:$4 sm:$0xff]  }
   0x5   :  { %v659_v12 = vld [vmem:[%s973_s1 + $0x84] ss:$16 sps:$4 sm:$0xff]   ;;  %v661_v13 = vld [vmem:[%s973_s1 + $0x8c] ss:$16 sps:$4 sm:$0xff]   ;;  %v663_v14 = vld [vmem:[%s973_s1 + $0x80] ss:$16 sps:$4 sm:$0xff]  }
   0x6   :  { %v664_v15 = vld [vmem:[%s973_s1 + $0x88] ss:$16 sps:$4 sm:$0xff]   ;;  %v665_v16 = vld [vmem:[%s973_s1 + $0x64] ss:$16 sps:$4 sm:$0xff]   ;;  %v667_v17 = vld [vmem:[%s973_s1 + $0x6c] ss:$16 sps:$4 sm:$0xff]  }
   0x7   :  { %452 = vmatpush1.bf16.msra.mxu0 %v651_v6  ;;  %495 = vmatpush1.bf16.msra.mxu1 %v652_v7  ;;  %v669_v18 = vld [vmem:[%s973_s1 + $0x60] ss:$16 sps:$4 sm:$0xff]   ;;  %v670_v19 = vld [vmem:[%s973_s1 + $0x68] ss:$16 sps:$4 sm:$0xff]   ;;  %v671_v20 = vld [vmem:[%s973_s1 + $0x44] ss:$16 sps:$4 sm:$0xff]  }
   0x8   :  { %453 = vmatprep.subr.bf16.mxu0 %v653_v8  ;;  %496 = vmatprep.subr.bf16.mxu1 %v655_v9  ;;  %v673_v21 = vld [vmem:[%s973_s1 + $0x4c] ss:$16 sps:$4 sm:$0xff]   ;;  %v675_v22 = vld [vmem:[%s973_s1 + $0x40] ss:$16 sps:$4 sm:$0xff]   ;;  %v676_v23 = vld [vmem:[%s973_s1 + $0x48] ss:$16 sps:$4 sm:$0xff]  }
   0x9   :  { %v677_v24 = vld [vmem:[%s973_s1 + $0x24] ss:$16 sps:$4 sm:$0xff]   ;;  %v679_v25 = vld [vmem:[%s973_s1 + $0x2c] ss:$16 sps:$4 sm:$0xff]   ;;  %v681_v26 = vld [vmem:[%s973_s1 + $0x20] ss:$16 sps:$4 sm:$0xff]  }
   0xa   :  { %v682_v27 = vld [vmem:[%s973_s1 + $0x28] ss:$16 sps:$4 sm:$0xff]   ;;  %v683_v28 = vld [vmem:[%s973_s1 + $0x4] ss:$16 sps:$4 sm:$0xff]   ;;  %v685_v29 = vld [vmem:[%s973_s1 + $0xc] ss:$16 sps:$4 sm:$0xff]  }
   0xb   :  { %454 = vmatpush1.bf16.msra.mxu0 %v657_v10  ;;  %497 = vmatpush1.bf16.msra.mxu1 %v658_v11  ;;  %v687_v30 = vld [vmem:[%s973_s1] ss:$16 sps:$4 sm:$0xff]   ;;  %v688_v31 = vld [vmem:[%s973_s1 + $0x8] ss:$16 sps:$4 sm:$0xff]   ;;  %v689_v32 = vld [vmem:[%s973_s1 + $0x1e4] ss:$16 sps:$4 sm:$0xff]  }
   0xc   :  { %455 = vmatprep.subr.bf16.mxu0 %v659_v12  ;;  %498 = vmatprep.subr.bf16.mxu1 %v661_v13  ;;  %v691_v33 = vld [vmem:[%s973_s1 + $0x1ec] ss:$16 sps:$4 sm:$0xff]   ;;  %v693_v34 = vld [vmem:[%s973_s1 + $0x1e0] ss:$16 sps:$4 sm:$0xff]   ;;  %v694_v35 = vld [vmem:[%s973_s1 + $0x1e8] ss:$16 sps:$4 sm:$0xff]  }
   0xd   :  { %v695_v36 = vld [vmem:[%s973_s1 + $0x1c4] ss:$16 sps:$4 sm:$0xff]   ;;  %v697_v37 = vld [vmem:[%s973_s1 + $0x1cc] ss:$16 sps:$4 sm:$0xff]   ;;  %v699_v38 = vld [vmem:[%s973_s1 + $0x1c0] ss:$16 sps:$4 sm:$0xff]  }
   0xe   :  { %v700_v39 = vld [vmem:[%s973_s1 + $0x1c8] ss:$16 sps:$4 sm:$0xff]   ;;  %v701_v40 = vld [vmem:[%s973_s1 + $0x1a4] ss:$16 sps:$4 sm:$0xff]   ;;  %v703_v41 = vld [vmem:[%s973_s1 + $0x1ac] ss:$16 sps:$4 sm:$0xff]  }
   0xf   :  { %456 = vmatpush1.bf16.msra.mxu0 %v663_v14  ;;  %499 = vmatpush1.bf16.msra.mxu1 %v664_v15  ;;  %v705_v42 = vld [vmem:[%s973_s1 + $0x1a0] ss:$16 sps:$4 sm:$0xff]   ;;  %v706_v43 = vld [vmem:[%s973_s1 + $0x1a8] ss:$16 sps:$4 sm:$0xff]   ;;  %v707_v44 = vld [vmem:[%s973_s1 + $0x184] ss:$16 sps:$4 sm:$0xff]  }
  0x10   :  { %457 = vmatprep.subr.bf16.mxu0 %v665_v16  ;;  %500 = vmatprep.subr.bf16.mxu1 %v667_v17  ;;  %v709_v45 = vld [vmem:[%s973_s1 + $0x18c] ss:$16 sps:$4 sm:$0xff]   ;;  %v711_v47 = vld [vmem:[%s973_s1 + $0x180] ss:$16 sps:$4 sm:$0xff]   ;;  %v712_v48 = vld [vmem:[%s973_s1 + $0x188] ss:$16 sps:$4 sm:$0xff]  }
  0x11   :  { %v739_v46 = vld [vmem:[%s974_s0 + $0x4] ss:$8 sps:$4 sm:$0xff]   ;;  %v717_v51 = vld [vmem:[%s973_s1 + $0x160] ss:$16 sps:$4 sm:$0xff]   ;;  %v718_v52 = vld [vmem:[%s973_s1 + $0x168] ss:$16 sps:$4 sm:$0xff]  }
  0x12   :  { %v713_v49 = vld [vmem:[%s973_s1 + $0x164] ss:$16 sps:$4 sm:$0xff]   ;;  %v715_v50 = vld [vmem:[%s973_s1 + $0x16c] ss:$16 sps:$4 sm:$0xff]   ;;  %481 = vmatprep.mubr.bf16.mxu0 %v739_v46  ;;  %524 = vmatprep.mubr.bf16.mxu1 %v739_v46  ;;  %v723_v55 = vld [vmem:[%s973_s1 + $0x140] ss:$16 sps:$4 sm:$0xff]  }
  0x13   :  { %458 = vmatpush1.bf16.msra.mxu0 %v669_v18  ;;  %501 = vmatpush1.bf16.msra.mxu1 %v670_v19  ;;  %v719_v53 = vld [vmem:[%s973_s1 + $0x144] ss:$16 sps:$4 sm:$0xff]   ;;  %v721_v54 = vld [vmem:[%s973_s1 + $0x14c] ss:$16 sps:$4 sm:$0xff]   ;;  %v724_v56 = vld [vmem:[%s973_s1 + $0x148] ss:$16 sps:$4 sm:$0xff]  }
  0x14   :  { %459 = vmatprep.subr.bf16.mxu0 %v671_v20  ;;  %502 = vmatprep.subr.bf16.mxu1 %v673_v21  ;;  %v725_v57 = vld [vmem:[%s973_s1 + $0x124] ss:$16 sps:$4 sm:$0xff]   ;;  %v727_v58 = vld [vmem:[%s973_s1 + $0x12c] ss:$16 sps:$4 sm:$0xff]   ;;  %v729_v59 = vld [vmem:[%s973_s1 + $0x120] ss:$16 sps:$4 sm:$0xff]  }
  0x15   :  { %v730_v60 = vld [vmem:[%s973_s1 + $0x128] ss:$16 sps:$4 sm:$0xff]   ;;  %v731_v61 = vld [vmem:[%s973_s1 + $0x104] ss:$16 sps:$4 sm:$0xff]   ;;  %v733_v62 = vld [vmem:[%s973_s1 + $0x10c] ss:$16 sps:$4 sm:$0xff]  }
  0x16   :  { %v735_v63 = vld [vmem:[%s973_s1 + $0x100] ss:$16 sps:$4 sm:$0xff]   ;;  %v736_v0 = vld [vmem:[%s973_s1 + $0x108] ss:$16 sps:$4 sm:$0xff]   ;;  %v84_v3 = vshrl.u32 %v83_v2, 7 }
  0x17   :  { %460 = vmatpush1.bf16.msra.mxu0 %v675_v22  ;;  %503 = vmatpush1.bf16.msra.mxu1 %v676_v23  ;;  %v737_v1 = vld [vmem:[%s974_s0] ss:$8 sps:$4 sm:$0xff]  }
  0x18   :  { %461 = vmatprep.subr.bf16.mxu0 %v677_v24  ;;  %504 = vmatprep.subr.bf16.mxu1 %v679_v25  ;;  %v80_v4 = vld [vmem:[%s975_s2] sm:$0xf]  ;;  %v85_v5 = vsub.s32 0, %v84_v3  ;;  %v93_v7 = vsub.s32 4, %v84_v3  ;;  %v89_v8 = vsub.s32 2, %v84_v3  ;;  %v97_v9 = vsub.s32 6, %v84_v3 }
  0x19   :  { %v81_v6 = vunpack.c.l.bf16 %v80_v4 }
  0x1b   :  { %462 = vmatpush1.bf16.msra.mxu0 %v681_v26  ;;  %505 = vmatpush1.bf16.msra.mxu1 %v682_v27  ;;  %v86_v10 = vrot.slane %v81_v6, %v85_v5  ;;  %v94_v11 = vrot.slane %v81_v6, %v93_v7  ;;  %v90_v12 = vrot.slane %v81_v6, %v89_v8 }
  0x1c   :  { %463 = vmatprep.subr.bf16.mxu0 %v683_v28  ;;  %506 = vmatprep.subr.bf16.mxu1 %v685_v29  ;;  %v98_v13 = vrot.slane %v81_v6, %v97_v9 }
  0x1d   :  { %v106_v14 = vrot.slane %v86_v10, %v85_v5  ;;  %v114_v15 = vrot.slane %v94_v11, %v85_v5  ;;  %v110_v16 = vrot.slane %v90_v12, %v85_v5 }
  0x1e   :  { %v118_v17 = vrot.slane %v98_v13, %v85_v5 }
  0x1f   :  { %464 = vmatpush1.bf16.msra.mxu0 %v687_v30  ;;  %507 = vmatpush1.bf16.msra.mxu1 %v688_v31 }
  0x20   :  { %465 = vmatprep.subr.bf16.mxu0 %v689_v32  ;;  %508 = vmatprep.subr.bf16.mxu1 %v691_v33 }
  0x23   :  { %466 = vmatpush2.bf16.msra.mxu0 %v693_v34  ;;  %509 = vmatpush2.bf16.msra.mxu1 %v694_v35 }
  0x24   :  { %467 = vmatprep.subr.bf16.mxu0 %v695_v36  ;;  %510 = vmatprep.subr.bf16.mxu1 %v697_v37 }
  0x27   :  { %468 = vmatpush2.bf16.msra.mxu0 %v699_v38  ;;  %511 = vmatpush2.bf16.msra.mxu1 %v700_v39 }
  0x28   :  { %469 = vmatprep.subr.bf16.mxu0 %v701_v40  ;;  %512 = vmatprep.subr.bf16.mxu1 %v703_v41 }
  0x2b   :  { %470 = vmatpush2.bf16.msra.mxu0 %v705_v42  ;;  %513 = vmatpush2.bf16.msra.mxu1 %v706_v43 }
  0x2c   :  { %471 = vmatprep.subr.bf16.mxu0 %v707_v44  ;;  %514 = vmatprep.subr.bf16.mxu1 %v709_v45 }
  0x2f   :  { %472 = vmatpush2.bf16.msra.mxu0 %v711_v47  ;;  %515 = vmatpush2.bf16.msra.mxu1 %v712_v48 }
  0x30   :  { %473 = vmatprep.subr.bf16.mxu0 %v713_v49  ;;  %516 = vmatprep.subr.bf16.mxu1 %v715_v50 }
  0x33   :  { %474 = vmatpush2.bf16.msra.mxu0 %v717_v51  ;;  %517 = vmatpush2.bf16.msra.mxu1 %v718_v52 }
  0x34   :  { %475 = vmatprep.subr.bf16.mxu0 %v719_v53  ;;  %518 = vmatprep.subr.bf16.mxu1 %v721_v54 }
  0x37   :  { %476 = vmatpush2.bf16.msra.mxu0 %v723_v55  ;;  %519 = vmatpush2.bf16.msra.mxu1 %v724_v56 }
  0x38   :  { %477 = vmatprep.subr.bf16.mxu0 %v725_v57  ;;  %520 = vmatprep.subr.bf16.mxu1 %v727_v58 }
  0x3b   :  { %478 = vmatpush2.bf16.msra.mxu0 %v729_v59  ;;  %521 = vmatpush2.bf16.msra.mxu1 %v730_v60 }
  0x3c   :  { %479 = vmatprep.subr.bf16.mxu0 %v731_v61  ;;  %522 = vmatprep.subr.bf16.mxu1 %v733_v62 }
  0x3f   :  { %480 = vmatpush2.bf16.msra.mxu0 %v735_v63  ;;  %523 = vmatpush2.bf16.msra.mxu1 %v736_v0 }
  0x42   :  { %482 = vmatmul.mubr.bf16.vlgmr.msra.gmra.mxu0 %v737_v1  ;;  %525 = vmatmul.mubr.bf16.vlgmr.msra.gmra.mxu1 %v737_v1 }
 0x102   :  { %v483_v18 = vpop.f32.mrf.mxu0  ;;  %v526_v19 = vpop.f32.mrf.mxu1 }
 0x103   :  { %v484_v22 = vadd.f32 %v483_v18, %v106_v14  ;;  %v527_v23 = vadd.f32 %v526_v19, %v114_v15 }
 0x104   :  { %v485_v20 = vpop.f32.mrf.mxu0  ;;  %v528_v21 = vpop.f32.mrf.mxu1 }
 0x105   :  { %v486_v24 = vadd.f32 %v485_v20, %v110_v16  ;;  %v529_v25 = vadd.f32 %v528_v21, %v118_v17 }
 0x106   :  { %v487_v26 = vpop.f32.mrf.mxu0  ;;  %v530_v27 = vpop.f32.mrf.mxu1 }
 0x107   :  { %v637_v28 = vpack.c.bf16 %v486_v24, %v484_v22  ;;  %v638_v29 = vpack.c.bf16 %v529_v25, %v527_v23  ;;  %v488_v32 = vadd.f32 %v487_v26, %v106_v14  ;;  %v531_v33 = vadd.f32 %v530_v27, %v114_v15 }
 0x108   :  { %v489_v30 = vpop.f32.mrf.mxu0  ;;  %v532_v31 = vpop.f32.mrf.mxu1 }
 0x109   :  { %559 = vst [vmem:[%s976_s3] sm:$0xff] %v637_v28  ;;  %560 = vst [vmem:[%s976_s3 + $0x8] sm:$0xff] %v638_v29  ;;  %v490_v34 = vadd.f32 %v489_v30, %v110_v16  ;;  %v533_v35 = vadd.f32 %v532_v31, %v118_v17 }
 0x10b   :  { %v639_v36 = vpack.c.bf16 %v490_v34, %v488_v32  ;;  %v640_v37 = vpack.c.bf16 %v533_v35, %v531_v33 }
 0x10d   :  { %561 = vst [vmem:[%s976_s3 + $0x10] sm:$0xff] %v639_v36  ;;  %562 = vst [vmem:[%s976_s3 + $0x18] sm:$0xff] %v640_v37 }

// kernel: simple_transformer_forward.23
= control target key start
LH: loop header
LB: loop body
LE: loop exit
PB: predicated region body
PF: predicated region fallthrough
CT: control target
= control target key end

     0   :  { %s459_s12 = smov 0   ;;  %s461_s13 = smov 0   ;;  %s505_s0 = inlined_call_operand.vmem [shape: bf16[2,8,256], index: 0, kind: input, shape index: {}]   ;;  %s506_s1 = inlined_call_operand.vmem [shape: bf16[1,256], index: 1, kind: input, shape index: {}]   ;;  %s507_s2 = inlined_call_operand.vmem [shape: bf16[1,256], index: 2, kind: input, shape index: {}]   ;;  %s508_s3 = inlined_call_operand.vmem [shape: bf16[2,8,256], index: 3, kind: output, shape index: {}]  }
   0x1   :  { %s463_s14 = smov 0  }
   0x2 LB: > { %s22_s15 = sadd.s32 1, %s433_s13  ;;  %p378_p0 = scmp.ge.s32.totalorder %s437_s14, 1  ;;  %s437_s14 = sphi %s463_s14, %s13_s14   ;;  %s433_s13 = sphi %s461_s13, %s510_s13   ;;  %s429_s12 = sphi %s459_s12, %s509_s12  }
   0x3   : > { %p23_p1 = scmp.ge.s32.totalorder %s22_s15, 2  ;;  %p157_p2 = scmp.lt.s32.totalorder %s437_s14, 3 }
   0x5   : > { %s512_s15 = smov (%p23_p1, %s22_s15), 0  ;;  %p158_p3 = pnand %p378_p0, %p157_p2 }
   0x6   : > { %p189_p4 = scmp.lt.s32.totalorder (!%p158_p3), %s429_s12, 1 }
   0x7   : > { %161 = sbr.rel (%p158_p3) target bundleno = 331 (0x14b), region = 32 }
   0xc   : > { %s514_s12 = smov (!%p189_p4, %s429_s12), 1  ;;  %v230_v12 = vlaneseq  ;;  %v227_v16 = vld [vmem:[%s506_s1] sm:$0x3] }
   0xd   : > { %s386_s16 = sshll.u32 %s514_s12, 3  ;;  %v250_v17 = vld [vmem:[%s507_s2] sm:$0x3]  ;;  %v228_v18 = vunpack.c.l.bf16 %v227_v16 }
   0xe   : > { %s197_s19 = scalar_lea.vmem %s505_s0, %s386_s16  ;;  %v231_v15 = vshrl.u32 %v230_v12, 7  ;;  %v251_v21 = vunpack.c.l.bf16 %v250_v17  ;;  %s206_s26 = scalar_lea.vmem %s508_s3, %s386_s16 }
   0xf   : > { %v207_v0 = vld [vmem:[%s197_s19] sm:$0xff] }
  0x10   : > { %v208_v1 = vunpack.c.l.bf16 %v207_v0  ;;  %v209_v2 = vunpack.c.h.bf16 %v207_v0  ;;  %v232_v19 = vsub.s32 0, %v231_v15  ;;  %v236_v20 = vsub.s32 2, %v231_v15 }
  0x12   : > { %v210_v3 = vadd.f32 %v209_v2, %v208_v1  ;;  %v233_v22 = vrot.slane %v228_v18, %v232_v19  ;;  %v237_v23 = vrot.slane %v228_v18, %v236_v20  ;;  %v256_v24 = vrot.slane %v251_v21, %v232_v19 }
  0x13   : > { %v260_v25 = vrot.slane %v251_v21, %v236_v20 }
  0x14   : > { %211 = vadd.xlane.f32.xlu0 %v210_v3  ;;  %v243_v26 = vrot.slane %v233_v22, %v232_v19  ;;  %v247_v27 = vrot.slane %v237_v23, %v232_v19  ;;  %v266_v29 = vrot.slane %v256_v24, %v232_v19 }
  0x15   : > { %v270_v30 = vrot.slane %v260_v25, %v232_v19 }
  0x9d   : > { %v212_v4 = vpop.xlane.xlu0 %211 }
  0x9e   : > { %v214_v5 = vmul.f32 0.00390625, %v212_v4 }
  0xa0   : > { %v215_v6 = vsub.f32 %v208_v1, %v214_v5  ;;  %v216_v7 = vsub.f32 %v209_v2, %v214_v5 }
  0xa2   : > { %v217_v8 = vmul.f32 %v215_v6, %v215_v6  ;;  %v218_v9 = vmul.f32 %v216_v7, %v216_v7 }
  0xa4   : > { %v219_v10 = vadd.f32 %v218_v9, %v217_v8 }
  0xa6   : > { %220 = vadd.xlane.f32.xlu0 %v219_v10 }
 0x12f   : > { %v221_v11 = vpop.xlane.xlu0 %220 }
 0x130   : > { %v222_v13 = vmul.f32 0.00390625, %v221_v11 }
 0x132   : > { %v223_v14 = vadd.f32 1e-05, %v222_v13 }
 0x134   : > { %413 = vrsqrt.f32 %v223_v14 }
 0x141   : > { %v414_v28 = vpop.eup %413 }
 0x142   : > { %v225_v31 = vmul.f32 %v414_v28, %v215_v6  ;;  %v226_v32 = vmul.f32 %v414_v28, %v216_v7 }
 0x144   : > { %v248_v33 = vmul.f32 %v243_v26, %v225_v31  ;;  %v249_v34 = vmul.f32 %v247_v27, %v226_v32 }
 0x146   : > { %v271_v35 = vadd.f32 %v266_v29, %v248_v33  ;;  %v272_v36 = vadd.f32 %v270_v30, %v249_v34 }
 0x148   : > { %v388_v37 = vpack.c.bf16 %v272_v36, %v271_v35 }
 0x14a   : > { %281 = vst [vmem:[%s206_s26] sm:$0xff] %v388_v37 }
 0x14b PF: > { %s13_s14 = sadd.s32 1, %s437_s14   ;;  %s509_s12 = smov %s433_s13 }
 0x14c   : > { %p10_p5 = scmp.ge.s32.totalorder %s13_s14, 4   ;;  %s510_s13 = smov %s512_s15 }
 0x14e   :  { %12 = sbr.rel (!%p10_p5) target bundleno = 2 (0x2), region = 62 }

// kernel: simple_transformer_forward.17
= control target key start
LH: loop header
LB: loop body
LE: loop exit
PB: predicated region body
PF: predicated region fallthrough
CT: control target
= control target key end

     0   :  { %v54_v34 = vlaneseq  ;;  %s544_s1 = inlined_call_operand.vmem [shape: bf16[256,256], index: 1, kind: input, shape index: {}]   ;;  %s545_s0 = inlined_call_operand.vmem [shape: bf16[16,256], index: 0, kind: input, shape index: {}]   ;;  %s546_s2 = inlined_call_operand.vmem [shape: bf16[1,256], index: 2, kind: input, shape index: {}]   ;;  %s547_s3 = inlined_call_operand.vmem [shape: bf16[16,256], index: 3, kind: input, shape index: {}]   ;;  %s548_s4 = inlined_call_operand.vmem [shape: bf16[16,256], index: 4, kind: output, shape index: {}]  }
   0x1   :  { %v351_v0 = vld [vmem:[%s544_s1 + $0x74] ss:$8 sps:$4 sm:$0xff]   ;;  %v353_v1 = vld [vmem:[%s544_s1 + $0x70] ss:$8 sps:$4 sm:$0xff]   ;;  %v354_v2 = vld [vmem:[%s544_s1 + $0x64] ss:$8 sps:$4 sm:$0xff]  }
   0x2   :  { %242 = vmatprep.subr.bf16.mxu0 %v351_v0  ;;  %v356_v3 = vld [vmem:[%s544_s1 + $0x60] ss:$8 sps:$4 sm:$0xff]   ;;  %v357_v4 = vld [vmem:[%s544_s1 + $0x54] ss:$8 sps:$4 sm:$0xff]   ;;  %v359_v5 = vld [vmem:[%s544_s1 + $0x50] ss:$8 sps:$4 sm:$0xff]  }
   0x3   :  { %243 = vmatpush1.bf16.msra.mxu0 %v353_v1  ;;  %v360_v6 = vld [vmem:[%s544_s1 + $0x44] ss:$8 sps:$4 sm:$0xff]   ;;  %v362_v7 = vld [vmem:[%s544_s1 + $0x40] ss:$8 sps:$4 sm:$0xff]   ;;  %v363_v8 = vld [vmem:[%s544_s1 + $0x34] ss:$8 sps:$4 sm:$0xff]  }
   0x4   :  { %244 = vmatprep.subr.bf16.mxu0 %v354_v2  ;;  %v365_v9 = vld [vmem:[%s544_s1 + $0x30] ss:$8 sps:$4 sm:$0xff]   ;;  %v366_v10 = vld [vmem:[%s544_s1 + $0x24] ss:$8 sps:$4 sm:$0xff]   ;;  %v368_v11 = vld [vmem:[%s544_s1 + $0x20] ss:$8 sps:$4 sm:$0xff]  }
   0x5   :  { %v369_v12 = vld [vmem:[%s544_s1 + $0x14] ss:$8 sps:$4 sm:$0xff]   ;;  %v401_v13 = vld [vmem:[%s545_s0 + $0x4] ss:$8 sps:$4 sm:$0xff]   ;;  %v371_v14 = vld [vmem:[%s544_s1 + $0x10] ss:$8 sps:$4 sm:$0xff]  }
   0x6   :  { %v372_v15 = vld [vmem:[%s544_s1 + $0x4] ss:$8 sps:$4 sm:$0xff]   ;;  %274 = vmatprep.mubr.bf16.mxu0 %v401_v13  ;;  %v374_v16 = vld [vmem:[%s544_s1] ss:$8 sps:$4 sm:$0xff]   ;;  %v375_v17 = vld [vmem:[%s544_s1 + $0xf4] ss:$8 sps:$4 sm:$0xff]  }
   0x7   :  { %245 = vmatpush1.bf16.msra.mxu0 %v356_v3  ;;  %v377_v18 = vld [vmem:[%s544_s1 + $0xf0] ss:$8 sps:$4 sm:$0xff]   ;;  %v378_v19 = vld [vmem:[%s544_s1 + $0xe4] ss:$8 sps:$4 sm:$0xff]   ;;  %v380_v20 = vld [vmem:[%s544_s1 + $0xe0] ss:$8 sps:$4 sm:$0xff]  }
   0x8   :  { %246 = vmatprep.subr.bf16.mxu0 %v357_v4  ;;  %v381_v21 = vld [vmem:[%s544_s1 + $0xd4] ss:$8 sps:$4 sm:$0xff]   ;;  %v383_v22 = vld [vmem:[%s544_s1 + $0xd0] ss:$8 sps:$4 sm:$0xff]   ;;  %v384_v23 = vld [vmem:[%s544_s1 + $0xc4] ss:$8 sps:$4 sm:$0xff]  }
   0x9   :  { %v386_v24 = vld [vmem:[%s544_s1 + $0xc0] ss:$8 sps:$4 sm:$0xff]   ;;  %v387_v25 = vld [vmem:[%s544_s1 + $0xb4] ss:$8 sps:$4 sm:$0xff]   ;;  %v389_v26 = vld [vmem:[%s544_s1 + $0xb0] ss:$8 sps:$4 sm:$0xff]  }
   0xa   :  { %v390_v27 = vld [vmem:[%s544_s1 + $0xa4] ss:$8 sps:$4 sm:$0xff]   ;;  %v392_v28 = vld [vmem:[%s544_s1 + $0xa0] ss:$8 sps:$4 sm:$0xff]   ;;  %v393_v29 = vld [vmem:[%s544_s1 + $0x94] ss:$8 sps:$4 sm:$0xff]  }
   0xb   :  { %247 = vmatpush1.bf16.msra.mxu0 %v359_v5  ;;  %v395_v30 = vld [vmem:[%s544_s1 + $0x90] ss:$8 sps:$4 sm:$0xff]   ;;  %v396_v31 = vld [vmem:[%s544_s1 + $0x84] ss:$8 sps:$4 sm:$0xff]   ;;  %v398_v32 = vld [vmem:[%s544_s1 + $0x80] ss:$8 sps:$4 sm:$0xff]  }
   0xc   :  { %248 = vmatprep.subr.bf16.mxu0 %v360_v6  ;;  %v399_v33 = vld [vmem:[%s545_s0] ss:$8 sps:$4 sm:$0xff]   ;;  %v55_v35 = vshrl.u32 %v54_v34, 7 }
   0xd   :  { %v51_v36 = vld [vmem:[%s546_s2] sm:$0x3]  ;;  %v286_v49 = vld [vmem:[%s547_s3 + $0x8] sm:$0xff] }
   0xe   :  { %v52_v37 = vunpack.c.l.bf16 %v51_v36  ;;  %v56_v38 = vsub.s32 0, %v55_v35  ;;  %v60_v39 = vsub.s32 2, %v55_v35  ;;  %v285_v43 = vld [vmem:[%s547_s3] sm:$0xff]  ;;  %v289_v53 = vunpack.c.l.bf16 %v286_v49 }
   0xf   :  { %249 = vmatpush1.bf16.msra.mxu0 %v362_v7  ;;  %v287_v47 = vunpack.c.l.bf16 %v285_v43  ;;  %v288_v48 = vunpack.c.h.bf16 %v285_v43  ;;  %v290_v57 = vunpack.c.h.bf16 %v286_v49 }
  0x10   :  { %250 = vmatprep.subr.bf16.mxu0 %v363_v8  ;;  %v57_v40 = vrot.slane %v52_v37, %v56_v38  ;;  %v61_v41 = vrot.slane %v52_v37, %v60_v39 }
  0x12   :  { %v67_v42 = vrot.slane %v57_v40, %v56_v38  ;;  %v71_v44 = vrot.slane %v61_v41, %v56_v38 }
  0x13   :  { %251 = vmatpush1.bf16.msra.mxu0 %v365_v9 }
  0x14   :  { %252 = vmatprep.subr.bf16.mxu0 %v366_v10 }
  0x17   :  { %253 = vmatpush1.bf16.msra.mxu0 %v368_v11 }
  0x18   :  { %254 = vmatprep.subr.bf16.mxu0 %v369_v12 }
  0x1b   :  { %255 = vmatpush1.bf16.msra.mxu0 %v371_v14 }
  0x1c   :  { %256 = vmatprep.subr.bf16.mxu0 %v372_v15 }
  0x1f   :  { %257 = vmatpush1.bf16.msra.mxu0 %v374_v16 }
  0x20   :  { %258 = vmatprep.subr.bf16.mxu0 %v375_v17 }
  0x23   :  { %259 = vmatpush2.bf16.msra.mxu0 %v377_v18 }
  0x24   :  { %260 = vmatprep.subr.bf16.mxu0 %v378_v19 }
  0x27   :  { %261 = vmatpush2.bf16.msra.mxu0 %v380_v20 }
  0x28   :  { %262 = vmatprep.subr.bf16.mxu0 %v381_v21 }
  0x2b   :  { %263 = vmatpush2.bf16.msra.mxu0 %v383_v22 }
  0x2c   :  { %264 = vmatprep.subr.bf16.mxu0 %v384_v23 }
  0x2f   :  { %265 = vmatpush2.bf16.msra.mxu0 %v386_v24 }
  0x30   :  { %266 = vmatprep.subr.bf16.mxu0 %v387_v25 }
  0x33   :  { %267 = vmatpush2.bf16.msra.mxu0 %v389_v26 }
  0x34   :  { %268 = vmatprep.subr.bf16.mxu0 %v390_v27 }
  0x37   :  { %269 = vmatpush2.bf16.msra.mxu0 %v392_v28 }
  0x38   :  { %270 = vmatprep.subr.bf16.mxu0 %v393_v29 }
  0x3b   :  { %271 = vmatpush2.bf16.msra.mxu0 %v395_v30 }
  0x3c   :  { %272 = vmatprep.subr.bf16.mxu0 %v396_v31 }
  0x3f   :  { %273 = vmatpush2.bf16.msra.mxu0 %v398_v32 }
  0x42   :  { %275 = vmatmul.mubr.bf16.vlgmr.msra.gmra.mxu0 %v399_v33 }
 0x102   :  { %v276_v45 = vpop.f32.mrf.mxu0 }
 0x103   :  { %v277_v46 = vadd.f32 %v276_v45, %v67_v42 }
 0x104   :  { %v278_v50 = vpop.f32.mrf.mxu0 }
 0x105   :  { %v279_v51 = vadd.f32 %v278_v50, %v71_v44  ;;  %v291_v54 = vadd.f32 %v287_v47, %v277_v46 }
 0x106   :  { %v280_v52 = vpop.f32.mrf.mxu0 }
 0x107   :  { %v292_v55 = vadd.f32 %v288_v48, %v279_v51  ;;  %v281_v56 = vadd.f32 %v280_v52, %v67_v42 }
 0x108   :  { %v282_v58 = vpop.f32.mrf.mxu0 }
 0x109   :  { %v349_v59 = vpack.c.bf16 %v292_v55, %v291_v54  ;;  %v283_v60 = vadd.f32 %v282_v58, %v71_v44  ;;  %v293_v61 = vadd.f32 %v289_v53, %v281_v56 }
 0x10b   :  { %307 = vst [vmem:[%s548_s4] sm:$0xff] %v349_v59  ;;  %v294_v62 = vadd.f32 %v290_v57, %v283_v60 }
 0x10d   :  { %v350_v63 = vpack.c.bf16 %v294_v62, %v293_v61 }
 0x10f   :  { %308 = vst [vmem:[%s548_s4 + $0x8] sm:$0xff] %v350_v63 }

// kernel: simple_transformer_forward.24
= control target key start
LH: loop header
LB: loop body
LE: loop exit
PB: predicated region body
PF: predicated region fallthrough
CT: control target
= control target key end

     0   :  { %s1581_s12 = smov 0   ;;  %s1583_s13 = smov 0   ;;  %s2010_s0 = inlined_call_operand.vmem [shape: bf16[16,256], index: 0, kind: input, shape index: {}]   ;;  %s2011_s1 = inlined_call_operand.vmem [shape: bf16[256,1024], index: 1, kind: input, shape index: {}]   ;;  %s2012_s2 = inlined_call_operand.vmem [shape: bf16[1,1024], index: 2, kind: input, shape index: {}]   ;;  %s2013_s3 = inlined_call_operand.vmem [shape: bf16[16,1024], index: 3, kind: output, shape index: {}]  }
   0x1   :  { %s1585_s14 = smov 0   ;;  %s1587_s15 = smov 0  }
   0x2   :  { %s1589_s16 = smov 0  }
   0x3 LB: > { %s22_s17 = sadd.s32 1, %s1555_s15  ;;  %s1257_s18 = sadd.s32 4294967295, %s1559_s16   ;;  %s1559_s16 = sphi %s1589_s16, %s13_s16   ;;  %s1555_s15 = sphi %s1587_s15, %s2018_s15   ;;  %s1551_s14 = sphi %s1585_s14, %s2017_s14   ;;  %s1547_s13 = sphi %s1583_s13, %s2016_s13   ;;  %s1543_s12 = sphi %s1581_s12, %s2015_s12  }
   0x4   : > { %p23_p0 = scmp.ge.s32.totalorder %s22_s17, 2  ;;  %p65_p1 = scmp.ne.s32.totalorder %s1547_s13, %s1543_s12 }
   0x5   : > { %p66_p2 = scmp.eq.s32.totalorder %s1559_s16, 0  ;;  %p123_p4 = scmp.eq.s32.totalorder %s1257_s18, 1 }
   0x6   : > { %s2020_s17 = smov (%p23_p0, %s22_s17), 0  ;;  %s58_s20 = sadd.s32 1, %s1547_s13 }
   0x7   : > { %p67_p3 = por %p66_p2, %p65_p1  ;;  %s55_s19 = ssub.s32 %s1555_s15, %s2020_s17 }
   0x8   : > { %p56_p5 = scmp.eq.s32.totalorder %s55_s19, 0  ;;  %p1616_p6 = por %p123_p4, %p65_p1 }
   0x9   : > { %p1261_p7 = scmp.ge.s32.totalorder %s1559_s16, 2 }
   0xa   : > { %s1621_s22 = scalar_select %p56_p5, %s1547_s13, %s58_s20  }
   0xb   : > { %155 = sbr.rel (%p1261_p7) target bundleno = 52 (0x34), region = 20 }
  0x10   : > { %158 = sbr.rel (!%p67_p3) target bundleno = 52 (0x34), region = 24  ;;  %s160_s23 = sand.u32 (%p67_p3), 1, %s1547_s13  }
  0x11   : > { %s1344_s24 = sshll.u32 (%p67_p3), %s1555_s15, 4  ;;  %s1262_s25 = sshll.u32 (%p67_p3), %s160_s23, 9 }
  0x12   : > { %s1629_s28 = scalar_lea.vmem (%p67_p3), %s2011_s1, %s1344_s24  ;;  %s1634_s29 = scalar_lea.vmem (%p67_p3), [#allocation2], %s1262_s25 }
  0x13   : > { %v178_v0 = vld [vmem:[%s1629_s28] sm:$0xff] (%p67_p3)  ;;  %v180_v1 = vld [vmem:[%s1629_s28 + $0x8] sm:$0xff] (%p67_p3) }
  0x14   : > { %v182_v2 = vld [vmem:[%s1629_s28 + $0x20] sm:$0xff] (%p67_p3)  ;;  %179 = vst [vmem:[%s1634_s29] sm:$0xff] (%p67_p3), %v178_v0  ;;  %181 = vst [vmem:[%s1634_s29 + $0x8] sm:$0xff] (%p67_p3), %v180_v1  ;;  %v184_v3 = vld [vmem:[%s1629_s28 + $0x28] sm:$0xff] (%p67_p3) }
  0x15   : > { %183 = vst [vmem:[%s1634_s29 + $0x10] sm:$0xff] %v182_v2  ;;  %v186_v4 = vld [vmem:[%s1629_s28 + $0x40] sm:$0xff]  ;;  %v188_v5 = vld [vmem:[%s1629_s28 + $0x48] sm:$0xff]  ;;  %185 = vst [vmem:[%s1634_s29 + $0x18] sm:$0xff] %v184_v3 }
  0x16   : > { %187 = vst [vmem:[%s1634_s29 + $0x20] sm:$0xff] %v186_v4  ;;  %189 = vst [vmem:[%s1634_s29 + $0x28] sm:$0xff] %v188_v5  ;;  %v190_v6 = vld [vmem:[%s1629_s28 + $0x60] sm:$0xff]  ;;  %v192_v7 = vld [vmem:[%s1629_s28 + $0x68] sm:$0xff] }
  0x17   : > { %v194_v8 = vld [vmem:[%s1629_s28 + $0x80] sm:$0xff]  ;;  %191 = vst [vmem:[%s1634_s29 + $0x30] sm:$0xff] %v190_v6  ;;  %193 = vst [vmem:[%s1634_s29 + $0x38] sm:$0xff] %v192_v7  ;;  %v196_v9 = vld [vmem:[%s1629_s28 + $0x88] sm:$0xff] }
  0x18   : > { %195 = vst [vmem:[%s1634_s29 + $0x40] sm:$0xff] %v194_v8  ;;  %v198_v10 = vld [vmem:[%s1629_s28 + $0xa0] sm:$0xff]  ;;  %v200_v11 = vld [vmem:[%s1629_s28 + $0xa8] sm:$0xff]  ;;  %197 = vst [vmem:[%s1634_s29 + $0x48] sm:$0xff] %v196_v9 }
  0x19   : > { %199 = vst [vmem:[%s1634_s29 + $0x50] sm:$0xff] %v198_v10  ;;  %201 = vst [vmem:[%s1634_s29 + $0x58] sm:$0xff] %v200_v11  ;;  %v202_v12 = vld [vmem:[%s1629_s28 + $0xc0] sm:$0xff]  ;;  %v204_v13 = vld [vmem:[%s1629_s28 + $0xc8] sm:$0xff] }
  0x1a   : > { %v206_v14 = vld [vmem:[%s1629_s28 + $0xe0] sm:$0xff]  ;;  %203 = vst [vmem:[%s1634_s29 + $0x60] sm:$0xff] %v202_v12  ;;  %205 = vst [vmem:[%s1634_s29 + $0x68] sm:$0xff] %v204_v13  ;;  %v208_v15 = vld [vmem:[%s1629_s28 + $0xe8] sm:$0xff] }
  0x1b   : > { %207 = vst [vmem:[%s1634_s29 + $0x70] sm:$0xff] %v206_v14  ;;  %v210_v16 = vld [vmem:[%s1629_s28 + $0x100] sm:$0xff]  ;;  %v212_v17 = vld [vmem:[%s1629_s28 + $0x108] sm:$0xff]  ;;  %209 = vst [vmem:[%s1634_s29 + $0x78] sm:$0xff] %v208_v15 }
  0x1c   : > { %211 = vst [vmem:[%s1634_s29 + $0x80] sm:$0xff] %v210_v16  ;;  %213 = vst [vmem:[%s1634_s29 + $0x88] sm:$0xff] %v212_v17  ;;  %v214_v18 = vld [vmem:[%s1629_s28 + $0x120] sm:$0xff]  ;;  %v216_v19 = vld [vmem:[%s1629_s28 + $0x128] sm:$0xff] }
  0x1d   : > { %v218_v20 = vld [vmem:[%s1629_s28 + $0x140] sm:$0xff]  ;;  %215 = vst [vmem:[%s1634_s29 + $0x90] sm:$0xff] %v214_v18  ;;  %217 = vst [vmem:[%s1634_s29 + $0x98] sm:$0xff] %v216_v19  ;;  %v220_v21 = vld [vmem:[%s1629_s28 + $0x148] sm:$0xff] }
  0x1e   : > { %219 = vst [vmem:[%s1634_s29 + $0xa0] sm:$0xff] %v218_v20  ;;  %v222_v22 = vld [vmem:[%s1629_s28 + $0x160] sm:$0xff]  ;;  %v224_v23 = vld [vmem:[%s1629_s28 + $0x168] sm:$0xff]  ;;  %221 = vst [vmem:[%s1634_s29 + $0xa8] sm:$0xff] %v220_v21 }
  0x1f   : > { %223 = vst [vmem:[%s1634_s29 + $0xb0] sm:$0xff] %v222_v22  ;;  %225 = vst [vmem:[%s1634_s29 + $0xb8] sm:$0xff] %v224_v23  ;;  %v226_v24 = vld [vmem:[%s1629_s28 + $0x180] sm:$0xff]  ;;  %v228_v25 = vld [vmem:[%s1629_s28 + $0x188] sm:$0xff] }
  0x20   : > { %v230_v26 = vld [vmem:[%s1629_s28 + $0x1a0] sm:$0xff]  ;;  %227 = vst [vmem:[%s1634_s29 + $0xc0] sm:$0xff] %v226_v24  ;;  %229 = vst [vmem:[%s1634_s29 + $0xc8] sm:$0xff] %v228_v25  ;;  %v232_v27 = vld [vmem:[%s1629_s28 + $0x1a8] sm:$0xff] }
  0x21   : > { %231 = vst [vmem:[%s1634_s29 + $0xd0] sm:$0xff] %v230_v26  ;;  %v234_v28 = vld [vmem:[%s1629_s28 + $0x1c0] sm:$0xff]  ;;  %v236_v29 = vld [vmem:[%s1629_s28 + $0x1c8] sm:$0xff]  ;;  %233 = vst [vmem:[%s1634_s29 + $0xd8] sm:$0xff] %v232_v27 }
  0x22   : > { %235 = vst [vmem:[%s1634_s29 + $0xe0] sm:$0xff] %v234_v28  ;;  %237 = vst [vmem:[%s1634_s29 + $0xe8] sm:$0xff] %v236_v29  ;;  %v238_v30 = vld [vmem:[%s1629_s28 + $0x1e0] sm:$0xff]  ;;  %v240_v31 = vld [vmem:[%s1629_s28 + $0x1e8] sm:$0xff] }
  0x23   : > { %v242_v32 = vld [vmem:[%s1629_s28 + $0x200] sm:$0xff]  ;;  %239 = vst [vmem:[%s1634_s29 + $0xf0] sm:$0xff] %v238_v30  ;;  %241 = vst [vmem:[%s1634_s29 + $0xf8] sm:$0xff] %v240_v31  ;;  %v244_v33 = vld [vmem:[%s1629_s28 + $0x208] sm:$0xff] }
  0x24   : > { %243 = vst [vmem:[%s1634_s29 + $0x100] sm:$0xff] %v242_v32  ;;  %v246_v34 = vld [vmem:[%s1629_s28 + $0x220] sm:$0xff]  ;;  %v248_v35 = vld [vmem:[%s1629_s28 + $0x228] sm:$0xff]  ;;  %245 = vst [vmem:[%s1634_s29 + $0x108] sm:$0xff] %v244_v33 }
  0x25   : > { %247 = vst [vmem:[%s1634_s29 + $0x110] sm:$0xff] %v246_v34  ;;  %249 = vst [vmem:[%s1634_s29 + $0x118] sm:$0xff] %v248_v35  ;;  %v250_v36 = vld [vmem:[%s1629_s28 + $0x240] sm:$0xff]  ;;  %v252_v37 = vld [vmem:[%s1629_s28 + $0x248] sm:$0xff] }
  0x26   : > { %v254_v38 = vld [vmem:[%s1629_s28 + $0x260] sm:$0xff]  ;;  %251 = vst [vmem:[%s1634_s29 + $0x120] sm:$0xff] %v250_v36  ;;  %253 = vst [vmem:[%s1634_s29 + $0x128] sm:$0xff] %v252_v37  ;;  %v256_v39 = vld [vmem:[%s1629_s28 + $0x268] sm:$0xff] }
  0x27   : > { %255 = vst [vmem:[%s1634_s29 + $0x130] sm:$0xff] %v254_v38  ;;  %v258_v40 = vld [vmem:[%s1629_s28 + $0x280] sm:$0xff]  ;;  %v260_v41 = vld [vmem:[%s1629_s28 + $0x288] sm:$0xff]  ;;  %257 = vst [vmem:[%s1634_s29 + $0x138] sm:$0xff] %v256_v39 }
  0x28   : > { %259 = vst [vmem:[%s1634_s29 + $0x140] sm:$0xff] %v258_v40  ;;  %261 = vst [vmem:[%s1634_s29 + $0x148] sm:$0xff] %v260_v41  ;;  %v262_v42 = vld [vmem:[%s1629_s28 + $0x2a0] sm:$0xff]  ;;  %v264_v43 = vld [vmem:[%s1629_s28 + $0x2a8] sm:$0xff] }
  0x29   : > { %v266_v44 = vld [vmem:[%s1629_s28 + $0x2c0] sm:$0xff]  ;;  %263 = vst [vmem:[%s1634_s29 + $0x150] sm:$0xff] %v262_v42  ;;  %265 = vst [vmem:[%s1634_s29 + $0x158] sm:$0xff] %v264_v43  ;;  %v268_v45 = vld [vmem:[%s1629_s28 + $0x2c8] sm:$0xff] }
  0x2a   : > { %267 = vst [vmem:[%s1634_s29 + $0x160] sm:$0xff] %v266_v44  ;;  %v270_v46 = vld [vmem:[%s1629_s28 + $0x2e0] sm:$0xff]  ;;  %v272_v47 = vld [vmem:[%s1629_s28 + $0x2e8] sm:$0xff]  ;;  %269 = vst [vmem:[%s1634_s29 + $0x168] sm:$0xff] %v268_v45 }
  0x2b   : > { %271 = vst [vmem:[%s1634_s29 + $0x170] sm:$0xff] %v270_v46  ;;  %273 = vst [vmem:[%s1634_s29 + $0x178] sm:$0xff] %v272_v47  ;;  %v274_v48 = vld [vmem:[%s1629_s28 + $0x300] sm:$0xff]  ;;  %v276_v49 = vld [vmem:[%s1629_s28 + $0x308] sm:$0xff] }
  0x2c   : > { %v278_v50 = vld [vmem:[%s1629_s28 + $0x320] sm:$0xff]  ;;  %275 = vst [vmem:[%s1634_s29 + $0x180] sm:$0xff] %v274_v48  ;;  %277 = vst [vmem:[%s1634_s29 + $0x188] sm:$0xff] %v276_v49  ;;  %v280_v51 = vld [vmem:[%s1629_s28 + $0x328] sm:$0xff] }
  0x2d   : > { %279 = vst [vmem:[%s1634_s29 + $0x190] sm:$0xff] %v278_v50  ;;  %v282_v52 = vld [vmem:[%s1629_s28 + $0x340] sm:$0xff]  ;;  %v284_v53 = vld [vmem:[%s1629_s28 + $0x348] sm:$0xff]  ;;  %281 = vst [vmem:[%s1634_s29 + $0x198] sm:$0xff] %v280_v51 }
  0x2e   : > { %283 = vst [vmem:[%s1634_s29 + $0x1a0] sm:$0xff] %v282_v52  ;;  %285 = vst [vmem:[%s1634_s29 + $0x1a8] sm:$0xff] %v284_v53  ;;  %v286_v54 = vld [vmem:[%s1629_s28 + $0x360] sm:$0xff]  ;;  %v288_v55 = vld [vmem:[%s1629_s28 + $0x368] sm:$0xff] }
  0x2f   : > { %v290_v56 = vld [vmem:[%s1629_s28 + $0x380] sm:$0xff]  ;;  %287 = vst [vmem:[%s1634_s29 + $0x1b0] sm:$0xff] %v286_v54  ;;  %289 = vst [vmem:[%s1634_s29 + $0x1b8] sm:$0xff] %v288_v55  ;;  %v292_v57 = vld [vmem:[%s1629_s28 + $0x388] sm:$0xff] }
  0x30   : > { %291 = vst [vmem:[%s1634_s29 + $0x1c0] sm:$0xff] %v290_v56  ;;  %v294_v58 = vld [vmem:[%s1629_s28 + $0x3a0] sm:$0xff]  ;;  %v296_v59 = vld [vmem:[%s1629_s28 + $0x3a8] sm:$0xff]  ;;  %293 = vst [vmem:[%s1634_s29 + $0x1c8] sm:$0xff] %v292_v57 }
  0x31   : > { %295 = vst [vmem:[%s1634_s29 + $0x1d0] sm:$0xff] %v294_v58  ;;  %297 = vst [vmem:[%s1634_s29 + $0x1d8] sm:$0xff] %v296_v59  ;;  %v298_v60 = vld [vmem:[%s1629_s28 + $0x3c0] sm:$0xff]  ;;  %v300_v61 = vld [vmem:[%s1629_s28 + $0x3c8] sm:$0xff] }
  0x32   : > { %v302_v62 = vld [vmem:[%s1629_s28 + $0x3e0] sm:$0xff]  ;;  %299 = vst [vmem:[%s1634_s29 + $0x1e0] sm:$0xff] %v298_v60  ;;  %301 = vst [vmem:[%s1634_s29 + $0x1e8] sm:$0xff] %v300_v61  ;;  %v304_v63 = vld [vmem:[%s1629_s28 + $0x3e8] sm:$0xff] }
  0x33   : > { %303 = vst [vmem:[%s1634_s29 + $0x1f0] sm:$0xff] %v302_v62  ;;  %305 = vst [vmem:[%s1634_s29 + $0x1f8] sm:$0xff] %v304_v63 }
  0x34 PF: > { %p1265_p8 = scmp.ge.s32.totalorder %s1559_s16, 1  ;;  %p318_p9 = scmp.lt.s32.totalorder %s1559_s16, 3 }
  0x36   : > { %p319_p10 = pnand %p1265_p8, %p318_p9 }
  0x37   : > { %s325_s30 = sand.u32 (!%p319_p10), 1, %s1543_s12   ;;  %s1268_s10 = sshll.u32 (!%p319_p10), %s1551_s14, 2 }
  0x38   : > { %322 = sbr.rel (%p319_p10) target bundleno = 399 (0x18f), region = 51  ;;  %s1266_s4 = sshll.u32 (!%p319_p10), %s325_s30, 9 }
  0x39   : > { %s1769_s7 = scalar_lea.vmem (!%p319_p10), [#allocation2], %s1266_s4  ;;  %p366_p11 = scmp.lt.s32.totalorder (!%p319_p10), %s1268_s10, 7 }
  0x3a   : > { %s1267_s20 = sshll.u32 (!%p319_p10), %s325_s30, 5 }
  0x3b   : > { %s1971_s12 = scalar_lea.vmem (!%p319_p10), [#allocation3], %s1267_s20 }
  0x3d   : > { %v1488_v0 = vld [vmem:[%s2010_s0 + $0x4] ss:$8 sps:$4 sm:$0xff]   ;;  %v1394_v3 = vld [vmem:[%s1769_s7 + $0xe0] ss:$16 sps:$4 sm:$0xff]   ;;  %v1395_v4 = vld [vmem:[%s1769_s7 + $0xe8] ss:$16 sps:$4 sm:$0xff]  }
  0x3e   : > { %v1390_v1 = vld [vmem:[%s1769_s7 + $0xe4] ss:$16 sps:$4 sm:$0xff]   ;;  %839 = vmatprep.mubr.bf16.mxu0 %v1488_v0  ;;  %882 = vmatprep.mubr.bf16.mxu1 %v1488_v0  ;;  %v1392_v2 = vld [vmem:[%s1769_s7 + $0xec] ss:$16 sps:$4 sm:$0xff]   ;;  %v1400_v7 = vld [vmem:[%s1769_s7 + $0xc0] ss:$16 sps:$4 sm:$0xff]  }
  0x3f   : > { %807 = vmatprep.subr.bf16.mxu0 %v1390_v1  ;;  %850 = vmatprep.subr.bf16.mxu1 %v1392_v2  ;;  %v1396_v5 = vld [vmem:[%s1769_s7 + $0xc4] ss:$16 sps:$4 sm:$0xff]   ;;  %v1398_v6 = vld [vmem:[%s1769_s7 + $0xcc] ss:$16 sps:$4 sm:$0xff]   ;;  %v1401_v8 = vld [vmem:[%s1769_s7 + $0xc8] ss:$16 sps:$4 sm:$0xff]   ;;  %v441_v2 = vlaneseq }
  0x40   : > { %808 = vmatpush1.bf16.msra.mxu0 %v1394_v3  ;;  %851 = vmatpush1.bf16.msra.mxu1 %v1395_v4  ;;  %v1402_v9 = vld [vmem:[%s1769_s7 + $0xa4] ss:$16 sps:$4 sm:$0xff]   ;;  %v1404_v10 = vld [vmem:[%s1769_s7 + $0xac] ss:$16 sps:$4 sm:$0xff]   ;;  %v1406_v11 = vld [vmem:[%s1769_s7 + $0xa0] ss:$16 sps:$4 sm:$0xff]  }
  0x41   : > { %809 = vmatprep.subr.bf16.mxu0 %v1396_v5  ;;  %852 = vmatprep.subr.bf16.mxu1 %v1398_v6  ;;  %v1407_v12 = vld [vmem:[%s1769_s7 + $0xa8] ss:$16 sps:$4 sm:$0xff]   ;;  %v1408_v13 = vld [vmem:[%s1769_s7 + $0x84] ss:$16 sps:$4 sm:$0xff]   ;;  %v1410_v14 = vld [vmem:[%s1769_s7 + $0x8c] ss:$16 sps:$4 sm:$0xff]  }
  0x42   : > { %v1412_v15 = vld [vmem:[%s1769_s7 + $0x80] ss:$16 sps:$4 sm:$0xff]   ;;  %v1413_v16 = vld [vmem:[%s1769_s7 + $0x88] ss:$16 sps:$4 sm:$0xff]   ;;  %v1414_v17 = vld [vmem:[%s1769_s7 + $0x64] ss:$16 sps:$4 sm:$0xff]  }
  0x43   : > { %v1416_v18 = vld [vmem:[%s1769_s7 + $0x6c] ss:$16 sps:$4 sm:$0xff]   ;;  %v1418_v19 = vld [vmem:[%s1769_s7 + $0x60] ss:$16 sps:$4 sm:$0xff]   ;;  %v1419_v20 = vld [vmem:[%s1769_s7 + $0x68] ss:$16 sps:$4 sm:$0xff]  }
  0x44   : > { %810 = vmatpush1.bf16.msra.mxu0 %v1400_v7  ;;  %853 = vmatpush1.bf16.msra.mxu1 %v1401_v8  ;;  %v1420_v21 = vld [vmem:[%s1769_s7 + $0x44] ss:$16 sps:$4 sm:$0xff]   ;;  %v1422_v22 = vld [vmem:[%s1769_s7 + $0x4c] ss:$16 sps:$4 sm:$0xff]   ;;  %v1424_v23 = vld [vmem:[%s1769_s7 + $0x40] ss:$16 sps:$4 sm:$0xff]  }
  0x45   : > { %811 = vmatprep.subr.bf16.mxu0 %v1402_v9  ;;  %854 = vmatprep.subr.bf16.mxu1 %v1404_v10  ;;  %v1425_v24 = vld [vmem:[%s1769_s7 + $0x48] ss:$16 sps:$4 sm:$0xff]   ;;  %v1426_v25 = vld [vmem:[%s1769_s7 + $0x24] ss:$16 sps:$4 sm:$0xff]   ;;  %v1428_v26 = vld [vmem:[%s1769_s7 + $0x2c] ss:$16 sps:$4 sm:$0xff]  }
  0x46   : > { %v1430_v27 = vld [vmem:[%s1769_s7 + $0x20] ss:$16 sps:$4 sm:$0xff]   ;;  %v1431_v28 = vld [vmem:[%s1769_s7 + $0x28] ss:$16 sps:$4 sm:$0xff]   ;;  %v1432_v29 = vld [vmem:[%s1769_s7 + $0x4] ss:$16 sps:$4 sm:$0xff]  }
  0x47   : > { %v1434_v30 = vld [vmem:[%s1769_s7 + $0xc] ss:$16 sps:$4 sm:$0xff]   ;;  %v1436_v31 = vld [vmem:[%s1769_s7] ss:$16 sps:$4 sm:$0xff]   ;;  %v1437_v32 = vld [vmem:[%s1769_s7 + $0x8] ss:$16 sps:$4 sm:$0xff]  }
  0x48   : > { %812 = vmatpush1.bf16.msra.mxu0 %v1406_v11  ;;  %855 = vmatpush1.bf16.msra.mxu1 %v1407_v12  ;;  %v1438_v33 = vld [vmem:[%s1769_s7 + $0x1e4] ss:$16 sps:$4 sm:$0xff]   ;;  %v1440_v34 = vld [vmem:[%s1769_s7 + $0x1ec] ss:$16 sps:$4 sm:$0xff]   ;;  %v1442_v35 = vld [vmem:[%s1769_s7 + $0x1e0] ss:$16 sps:$4 sm:$0xff]  }
  0x49   : > { %813 = vmatprep.subr.bf16.mxu0 %v1408_v13  ;;  %856 = vmatprep.subr.bf16.mxu1 %v1410_v14  ;;  %v1443_v36 = vld [vmem:[%s1769_s7 + $0x1e8] ss:$16 sps:$4 sm:$0xff]   ;;  %v1444_v37 = vld [vmem:[%s1769_s7 + $0x1c4] ss:$16 sps:$4 sm:$0xff]   ;;  %v1446_v38 = vld [vmem:[%s1769_s7 + $0x1cc] ss:$16 sps:$4 sm:$0xff]  }
  0x4a   : > { %v1448_v39 = vld [vmem:[%s1769_s7 + $0x1c0] ss:$16 sps:$4 sm:$0xff]   ;;  %v1449_v40 = vld [vmem:[%s1769_s7 + $0x1c8] ss:$16 sps:$4 sm:$0xff]   ;;  %v1450_v41 = vld [vmem:[%s1769_s7 + $0x1a4] ss:$16 sps:$4 sm:$0xff]  }
  0x4b   : > { %v1452_v42 = vld [vmem:[%s1769_s7 + $0x1ac] ss:$16 sps:$4 sm:$0xff]   ;;  %v1454_v43 = vld [vmem:[%s1769_s7 + $0x1a0] ss:$16 sps:$4 sm:$0xff]   ;;  %v1455_v44 = vld [vmem:[%s1769_s7 + $0x1a8] ss:$16 sps:$4 sm:$0xff]  }
  0x4c   : > { %814 = vmatpush1.bf16.msra.mxu0 %v1412_v15  ;;  %857 = vmatpush1.bf16.msra.mxu1 %v1413_v16  ;;  %v1456_v45 = vld [vmem:[%s1769_s7 + $0x184] ss:$16 sps:$4 sm:$0xff]   ;;  %v1458_v46 = vld [vmem:[%s1769_s7 + $0x18c] ss:$16 sps:$4 sm:$0xff]   ;;  %v1460_v47 = vld [vmem:[%s1769_s7 + $0x180] ss:$16 sps:$4 sm:$0xff]  }
  0x4d   : > { %815 = vmatprep.subr.bf16.mxu0 %v1414_v17  ;;  %858 = vmatprep.subr.bf16.mxu1 %v1416_v18  ;;  %v1461_v48 = vld [vmem:[%s1769_s7 + $0x188] ss:$16 sps:$4 sm:$0xff]   ;;  %v1462_v49 = vld [vmem:[%s1769_s7 + $0x164] ss:$16 sps:$4 sm:$0xff]   ;;  %v1464_v50 = vld [vmem:[%s1769_s7 + $0x16c] ss:$16 sps:$4 sm:$0xff]  }
  0x4e   : > { %v1466_v51 = vld [vmem:[%s1769_s7 + $0x160] ss:$16 sps:$4 sm:$0xff]   ;;  %v1467_v52 = vld [vmem:[%s1769_s7 + $0x168] ss:$16 sps:$4 sm:$0xff]   ;;  %v1468_v53 = vld [vmem:[%s1769_s7 + $0x144] ss:$16 sps:$4 sm:$0xff]  }
  0x4f   : > { %v1470_v54 = vld [vmem:[%s1769_s7 + $0x14c] ss:$16 sps:$4 sm:$0xff]   ;;  %v1472_v55 = vld [vmem:[%s1769_s7 + $0x140] ss:$16 sps:$4 sm:$0xff]   ;;  %v1473_v56 = vld [vmem:[%s1769_s7 + $0x148] ss:$16 sps:$4 sm:$0xff]  }
  0x50   : > { %816 = vmatpush1.bf16.msra.mxu0 %v1418_v19  ;;  %859 = vmatpush1.bf16.msra.mxu1 %v1419_v20  ;;  %v1474_v57 = vld [vmem:[%s1769_s7 + $0x124] ss:$16 sps:$4 sm:$0xff]   ;;  %v1476_v58 = vld [vmem:[%s1769_s7 + $0x12c] ss:$16 sps:$4 sm:$0xff]   ;;  %v1478_v59 = vld [vmem:[%s1769_s7 + $0x120] ss:$16 sps:$4 sm:$0xff]  }
  0x51   : > { %817 = vmatprep.subr.bf16.mxu0 %v1420_v21  ;;  %860 = vmatprep.subr.bf16.mxu1 %v1422_v22  ;;  %v1479_v60 = vld [vmem:[%s1769_s7 + $0x128] ss:$16 sps:$4 sm:$0xff]   ;;  %v1480_v61 = vld [vmem:[%s1769_s7 + $0x104] ss:$16 sps:$4 sm:$0xff]   ;;  %v1482_v62 = vld [vmem:[%s1769_s7 + $0x10c] ss:$16 sps:$4 sm:$0xff]  }
  0x52   : > { %v1484_v63 = vld [vmem:[%s1769_s7 + $0x100] ss:$16 sps:$4 sm:$0xff]   ;;  %v1485_v0 = vld [vmem:[%s1769_s7 + $0x108] ss:$16 sps:$4 sm:$0xff]   ;;  %s2022_s10 = smov (!%p366_p11, %s1268_s10), 7  ;;  %v442_v3 = vshrl.u32 %v441_v2, 7 }
  0x53   : > { %v1486_v1 = vld [vmem:[%s2010_s0] ss:$8 sps:$4 sm:$0xff]   ;;  %s368_s19 = scalar_lea.vmem %s2012_s2, %s2022_s10  ;;  %s1349_s23 = sshll.u32 (%p1616_p6), %s1551_s14, 4 }
  0x54   : > { %818 = vmatpush1.bf16.msra.mxu0 %v1424_v23  ;;  %861 = vmatpush1.bf16.msra.mxu1 %v1425_v24  ;;  %v438_v4 = vld [vmem:[%s368_s19] sm:$0xf]  ;;  %v443_v6 = vsub.s32 0, %v442_v3  ;;  %v451_v7 = vsub.s32 4, %v442_v3  ;;  %v447_v8 = vsub.s32 2, %v442_v3  ;;  %v455_v9 = vsub.s32 6, %v442_v3  ;;  %s1141_s26 = scalar_lea.vmem (%p1616_p6), %s2013_s3, %s1349_s23 }
  0x55   : > { %819 = vmatprep.subr.bf16.mxu0 %v1426_v25  ;;  %862 = vmatprep.subr.bf16.mxu1 %v1428_v26  ;;  %v439_v5 = vunpack.c.l.bf16 %v438_v4 }
  0x57   : > { %v444_v10 = vrot.slane %v439_v5, %v443_v6  ;;  %v452_v11 = vrot.slane %v439_v5, %v451_v7  ;;  %v448_v12 = vrot.slane %v439_v5, %v447_v8  ;;  %v456_v13 = vrot.slane %v439_v5, %v455_v9 }
  0x58   : > { %820 = vmatpush1.bf16.msra.mxu0 %v1430_v27  ;;  %863 = vmatpush1.bf16.msra.mxu1 %v1431_v28 }
  0x59   : > { %821 = vmatprep.subr.bf16.mxu0 %v1432_v29  ;;  %864 = vmatprep.subr.bf16.mxu1 %v1434_v30  ;;  %v464_v14 = vrot.slane %v444_v10, %v443_v6  ;;  %v472_v15 = vrot.slane %v452_v11, %v443_v6  ;;  %v468_v18 = vrot.slane %v448_v12, %v443_v6 }
  0x5a   : > { %v476_v19 = vrot.slane %v456_v13, %v443_v6 }
  0x5c   : > { %822 = vmatpush1.bf16.msra.mxu0 %v1436_v31  ;;  %865 = vmatpush1.bf16.msra.mxu1 %v1437_v32 }
  0x5d   : > { %823 = vmatprep.subr.bf16.mxu0 %v1438_v33  ;;  %866 = vmatprep.subr.bf16.mxu1 %v1440_v34 }
  0x60   : > { %824 = vmatpush2.bf16.msra.mxu0 %v1442_v35  ;;  %867 = vmatpush2.bf16.msra.mxu1 %v1443_v36 }
  0x61   : > { %825 = vmatprep.subr.bf16.mxu0 %v1444_v37  ;;  %868 = vmatprep.subr.bf16.mxu1 %v1446_v38 }
  0x64   : > { %826 = vmatpush2.bf16.msra.mxu0 %v1448_v39  ;;  %869 = vmatpush2.bf16.msra.mxu1 %v1449_v40 }
  0x65   : > { %827 = vmatprep.subr.bf16.mxu0 %v1450_v41  ;;  %870 = vmatprep.subr.bf16.mxu1 %v1452_v42 }
  0x68   : > { %828 = vmatpush2.bf16.msra.mxu0 %v1454_v43  ;;  %871 = vmatpush2.bf16.msra.mxu1 %v1455_v44 }
  0x69   : > { %829 = vmatprep.subr.bf16.mxu0 %v1456_v45  ;;  %872 = vmatprep.subr.bf16.mxu1 %v1458_v46 }
  0x6c   : > { %830 = vmatpush2.bf16.msra.mxu0 %v1460_v47  ;;  %873 = vmatpush2.bf16.msra.mxu1 %v1461_v48 }
  0x6d   : > { %831 = vmatprep.subr.bf16.mxu0 %v1462_v49  ;;  %874 = vmatprep.subr.bf16.mxu1 %v1464_v50 }
  0x70   : > { %832 = vmatpush2.bf16.msra.mxu0 %v1466_v51  ;;  %875 = vmatpush2.bf16.msra.mxu1 %v1467_v52 }
  0x71   : > { %833 = vmatprep.subr.bf16.mxu0 %v1468_v53  ;;  %876 = vmatprep.subr.bf16.mxu1 %v1470_v54 }
  0x74   : > { %834 = vmatpush2.bf16.msra.mxu0 %v1472_v55  ;;  %877 = vmatpush2.bf16.msra.mxu1 %v1473_v56 }
  0x75   : > { %835 = vmatprep.subr.bf16.mxu0 %v1474_v57  ;;  %878 = vmatprep.subr.bf16.mxu1 %v1476_v58 }
  0x78   : > { %836 = vmatpush2.bf16.msra.mxu0 %v1478_v59  ;;  %879 = vmatpush2.bf16.msra.mxu1 %v1479_v60 }
  0x79   : > { %837 = vmatprep.subr.bf16.mxu0 %v1480_v61  ;;  %880 = vmatprep.subr.bf16.mxu1 %v1482_v62 }
  0x7c   : > { %838 = vmatpush2.bf16.msra.mxu0 %v1484_v63  ;;  %881 = vmatpush2.bf16.msra.mxu1 %v1485_v0 }
  0x7f   : > { %840 = vmatmul.mubr.bf16.vlgmr.msra.gmra.mxu0 %v1486_v1  ;;  %883 = vmatmul.mubr.bf16.vlgmr.msra.gmra.mxu1 %v1486_v1 }
 0x13f   : > { %v841_v16 = vpop.f32.mrf.mxu0  ;;  %v884_v17 = vpop.f32.mrf.mxu1 }
 0x140   : > { %v1842_v20 = vadd.f32 %v841_v16, %v464_v14  ;;  %v1844_v21 = vadd.f32 %v884_v17, %v472_v15 }
 0x141   : > { %v843_v22 = vpop.f32.mrf.mxu0  ;;  %v886_v23 = vpop.f32.mrf.mxu1 }
 0x142   : > { %v1847_v24 = vmul.f32 0.70710677, %v1842_v20  ;;  %v1850_v25 = vmul.f32 0.70710677, %v1844_v21  ;;  %v1852_v26 = vadd.f32 %v843_v22, %v468_v18  ;;  %v1854_v27 = vadd.f32 %v886_v23, %v476_v19 }
 0x143   : > { %v845_v34 = vpop.f32.mrf.mxu0  ;;  %v888_v42 = vpop.f32.mrf.mxu1 }
 0x144   : > { %v909_v28 = vand.u32 2147483647, %v1847_v24  ;;  %v911_v29 = vand.u32 2147483647, %v1850_v25  ;;  %v1859_v30 = vmul.f32 0.70710677, %v1852_v26  ;;  %v1866_v41 = vadd.f32 %v845_v34, %v464_v14 }
 0x145   : > { %v1862_v31 = vmul.f32 0.70710677, %v1854_v27  ;;  %v847_v43 = vpop.f32.mrf.mxu0  ;;  %v1871_v47 = vadd.f32 %v888_v42, %v472_v15  ;;  %v890_v50 = vpop.f32.mrf.mxu1  ;;  %vm1061_vm0 = vcmp.ge.f32.partialorder %v1847_v24, 0.0  ;;  %vm1063_vm1 = vcmp.ge.f32.partialorder %v1850_v25, 0.0 }
 0x146   : > { %v917_v32 = vmul.f32 0.3275911, %v909_v28  ;;  %v919_v33 = vmul.f32 0.3275911, %v911_v29  ;;  %v910_v35 = vand.u32 2147483647, %v1859_v30  ;;  %v1873_v48 = vadd.f32 %v847_v43, %v468_v18 }
 0x147   : > { %v912_v36 = vand.u32 2147483647, %v1862_v31  ;;  %v1869_v46 = vmul.f32 0.70710677, %v1866_v41  ;;  %v1013_v51 = vsub.f32 0.0, %v909_v28  ;;  %v1015_v53 = vsub.f32 0.0, %v911_v29 }
 0x148   : > { %v925_v37 = vadd.f32 1.0, %v917_v32  ;;  %v927_v38 = vadd.f32 1.0, %v919_v33  ;;  %v918_v39 = vmul.f32 0.3275911, %v910_v35  ;;  %v1877_v52 = vmul.f32 0.70710677, %v1871_v47 }
 0x149   : > { %v920_v40 = vmul.f32 0.3275911, %v912_v36  ;;  %v913_v49 = vand.u32 2147483647, %v1869_v46  ;;  %v1880_v55 = vmul.f32 0.70710677, %v1873_v48  ;;  %v1883_v57 = vadd.f32 %v890_v50, %v476_v19 }
 0x14a   : > { %1489 = vrcp.f32 %v925_v37  ;;  %v926_v44 = vadd.f32 1.0, %v918_v39  ;;  %v915_v56 = vand.u32 2147483647, %v1877_v52  ;;  %v1014_v58 = vsub.f32 0.0, %v910_v35 }
 0x14b   : > { %1491 = vrcp.f32 %v927_v38  ;;  %v928_v45 = vadd.f32 1.0, %v920_v40  ;;  %v921_v54 = vmul.f32 0.3275911, %v913_v49  ;;  %v914_v60 = vand.u32 2147483647, %v1880_v55 }
 0x14c   : > { %1493 = vrcp.f32 %v926_v44  ;;  %v1021_v61 = vmul.f32 %v1013_v51, %v909_v28  ;;  %v923_v62 = vmul.f32 0.3275911, %v915_v56  ;;  %v1887_v63 = vmul.f32 0.70710677, %v1883_v57 }
 0x14d   : > { %1495 = vrcp.f32 %v928_v45  ;;  %v929_v59 = vadd.f32 1.0, %v921_v54  ;;  %v1023_v0 = vmul.f32 %v1015_v53, %v911_v29  ;;  %v1016_v1 = vsub.f32 0.0, %v912_v36 }
 0x14e   : > { %v922_v2 = vmul.f32 0.3275911, %v914_v60  ;;  %v1017_v3 = vsub.f32 0.0, %v913_v49  ;;  %v931_v4 = vadd.f32 1.0, %v923_v62  ;;  %v916_v5 = vand.u32 2147483647, %v1887_v63 }
 0x14f   : > { %1497 = vrcp.f32 %v929_v59  ;;  %v1022_v6 = vmul.f32 %v1014_v58, %v910_v35  ;;  %v1029_v9 = vmul.f32 1.442695, %v1021_v61  ;;  %v1019_v10 = vsub.f32 0.0, %v915_v56 }
 0x150   : > { %v930_v7 = vadd.f32 1.0, %v922_v2  ;;  %1499 = vrcp.f32 %v931_v4  ;;  %v924_v11 = vmul.f32 0.3275911, %v916_v5  ;;  %v1033_v14 = vmul.f32 1.442695, %v1023_v0 }
 0x151   : > { %v1024_v15 = vmul.f32 %v1016_v1, %v912_v36  ;;  %v1025_v17 = vmul.f32 %v1017_v3, %v913_v49  ;;  %v1018_v18 = vsub.f32 0.0, %v914_v60  ;;  %v1031_v23 = vmul.f32 1.442695, %v1022_v6 }
 0x152   : > { %1501 = vrcp.f32 %v930_v7  ;;  %v932_v19 = vadd.f32 1.0, %v924_v11  ;;  %v1027_v32 = vmul.f32 %v1019_v10, %v915_v56  ;;  %v1020_v33 = vsub.f32 0.0, %v916_v5 }
 0x153   : > { %v1035_v36 = vmul.f32 1.442695, %v1024_v15  ;;  %v1037_v39 = vmul.f32 1.442695, %v1025_v17  ;;  %v1026_v40 = vmul.f32 %v1018_v18, %v914_v60  ;;  %v1909_v58 = vmul.f32 0.5, %v1842_v20 }
 0x154   : > { %1503 = vrcp.f32 %v932_v19  ;;  %v1041_v49 = vmul.f32 1.442695, %v1027_v32  ;;  %v1028_v50 = vmul.f32 %v1020_v33, %v916_v5  ;;  %v1915_v2 = vmul.f32 0.5, %v1844_v21 }
 0x155   : > { %1505 = vpow2.f32 %v1029_v9  ;;  %v1039_v60 = vmul.f32 1.442695, %v1026_v40  ;;  %vm1062_vm2 = vcmp.ge.f32.partialorder %v1859_v30, 0.0  ;;  %vm1064_vm3 = vcmp.ge.f32.partialorder %v1862_v31, 0.0 }
 0x156   : > { %1507 = vpow2.f32 %v1033_v14  ;;  %v1043_v4 = vmul.f32 1.442695, %v1028_v50  ;;  %vm1065_vm4 = vcmp.ge.f32.partialorder %v1869_v46, 0.0  ;;  %vm1066_vm5 = vcmp.ge.f32.partialorder %v1880_v55, 0.0 }
 0x157   : > { %v1890_v8 = vpop.eup %1489  ;;  %1509 = vpow2.f32 %v1031_v23  ;;  %v897_v46 = vmul.f32 0.5, %v1866_v41  ;;  %vm1067_vm6 = vcmp.ge.f32.partialorder %v1877_v52, 0.0  ;;  %vm1068_vm7 = vcmp.ge.f32.partialorder %v1887_v63, 0.0 }
 0x158   : > { %v1892_v12 = vpop.eup %1491  ;;  %v941_v13 = vmul.f32 1.0614054, %v1890_v8  ;;  %1511 = vpow2.f32 %v1035_v36  ;;  %v899_v41 = vmul.f32 0.5, %v1871_v47  ;;  %v900_v52 = vmul.f32 0.5, %v1883_v57 }
 0x159   : > { %v943_v16 = vmul.f32 1.0614054, %v1892_v12  ;;  %v1896_v28 = vpop.eup %1493  ;;  %1513 = vpow2.f32 %v1037_v39 }
 0x15a   : > { %v949_v22 = vadd.f32 -1.4531521, %v941_v13  ;;  %v942_v35 = vmul.f32 1.0614054, %v1896_v28  ;;  %v1900_v37 = vpop.eup %1495  ;;  %1515 = vpow2.f32 %v1041_v49  ;;  %v1925_v13 = vmul.f32 0.5, %v1852_v26 }
 0x15b   : > { %v951_v29 = vadd.f32 -1.4531521, %v943_v16  ;;  %v944_v44 = vmul.f32 1.0614054, %v1900_v37  ;;  %1517 = vpow2.f32 %v1039_v60 }
 0x15c   : > { %v957_v34 = vmul.f32 %v1890_v8, %v949_v22  ;;  %v950_v43 = vadd.f32 -1.4531521, %v942_v35  ;;  %v1906_v56 = vpop.eup %1497  ;;  %1519 = vpow2.f32 %v1043_v4 }
 0x15d   : > { %v959_v38 = vmul.f32 %v1892_v12, %v951_v29  ;;  %v952_v54 = vadd.f32 -1.4531521, %v944_v44  ;;  %v945_v1 = vmul.f32 1.0614054, %v1906_v56  ;;  %v1917_v5 = vpop.eup %1499 }
 0x15e   : > { %v965_v42 = vadd.f32 1.4214138, %v957_v34  ;;  %v958_v53 = vmul.f32 %v1896_v28, %v950_v43  ;;  %v947_v21 = vmul.f32 1.0614054, %v1917_v5 }
 0x15f   : > { %v967_v45 = vadd.f32 1.4214138, %v959_v38  ;;  %v960_v0 = vmul.f32 %v1900_v37, %v952_v54  ;;  %v953_v9 = vadd.f32 -1.4531521, %v945_v1  ;;  %v1921_v10 = vpop.eup %1501 }
 0x160   : > { %v973_v51 = vmul.f32 %v1890_v8, %v965_v42  ;;  %v966_v62 = vadd.f32 1.4214138, %v958_v53  ;;  %v955_v19 = vadd.f32 -1.4531521, %v947_v21  ;;  %v946_v22 = vmul.f32 1.0614054, %v1921_v10 }
 0x161   : > { %v975_v59 = vmul.f32 %v1892_v12, %v967_v45  ;;  %v968_v7 = vadd.f32 1.4214138, %v960_v0  ;;  %v961_v17 = vmul.f32 %v1906_v56, %v953_v9  ;;  %v1932_v23 = vpop.eup %1503 }
 0x162   : > { %v981_v61 = vadd.f32 -0.28449672, %v973_v51  ;;  %v974_v6 = vmul.f32 %v1896_v28, %v966_v62  ;;  %v1506_v34 = vpop.eup %1505  ;;  %v963_v36 = vmul.f32 %v1917_v5, %v955_v19  ;;  %v954_v38 = vadd.f32 -1.4531521, %v946_v22 }
 0x163   : > { %v983_v3 = vadd.f32 -0.28449672, %v975_v59  ;;  %v976_v16 = vmul.f32 %v1900_v37, %v968_v7  ;;  %v969_v33 = vadd.f32 1.4214138, %v961_v17  ;;  %v948_v39 = vmul.f32 1.0614054, %v1932_v23  ;;  %v1508_v40 = vpop.eup %1507 }
 0x164   : > { %v989_v20 = vmul.f32 %v1890_v8, %v981_v61  ;;  %v982_v15 = vadd.f32 -0.28449672, %v974_v6  ;;  %v971_v49 = vadd.f32 1.4214138, %v963_v36  ;;  %v962_v50 = vmul.f32 %v1921_v10, %v954_v38  ;;  %v1510_v53 = vpop.eup %1509 }
 0x165   : > { %v991_v11 = vmul.f32 %v1892_v12, %v983_v3  ;;  %v984_v32 = vadd.f32 -0.28449672, %v976_v16  ;;  %v956_v51 = vadd.f32 -1.4531521, %v948_v39  ;;  %v1512_v61 = vpop.eup %1511 }
 0x166   : > { %v997_v14 = vadd.f32 0.2548296, %v989_v20  ;;  %v990_v29 = vmul.f32 %v1896_v28, %v982_v15  ;;  %v979_v0 = vmul.f32 %v1917_v5, %v971_v49  ;;  %v970_v1 = vadd.f32 1.4214138, %v962_v50  ;;  %v1514_v4 = vpop.eup %1513 }
 0x167   : > { %v999_v18 = vadd.f32 0.2548296, %v991_v11  ;;  %v992_v44 = vmul.f32 %v1900_v37, %v984_v32  ;;  %v964_v3 = vmul.f32 %v1932_v23, %v956_v51  ;;  %v1516_v15 = vpop.eup %1515  ;;  %v896_v49 = vmul.f32 0.5, %v1854_v27 }
 0x168   : > { %v1005_v26 = vmul.f32 %v1890_v8, %v997_v14  ;;  %v998_v43 = vadd.f32 0.2548296, %v990_v29  ;;  %v977_v8 = vmul.f32 %v1906_v56, %v969_v33  ;;  %v987_v21 = vadd.f32 -0.28449672, %v979_v0  ;;  %v1518_v29 = vpop.eup %1517 }
 0x169   : > { %v1007_v35 = vmul.f32 %v1892_v12, %v999_v18  ;;  %v1000_v59 = vadd.f32 0.2548296, %v992_v44  ;;  %v972_v14 = vadd.f32 1.4214138, %v964_v3  ;;  %v1520_v38 = vpop.eup %1519 }
 0x16a   : > { %v1045_v42 = vmul.f32 %v1506_v34, %v1005_v26  ;;  %v1006_v12 = vmul.f32 %v1896_v28, %v998_v43  ;;  %v985_v60 = vadd.f32 -0.28449672, %v977_v8  ;;  %v978_v28 = vmul.f32 %v1921_v10, %v970_v1 }
 0x16b   : > { %v1047_v45 = vmul.f32 %v1508_v40, %v1007_v35  ;;  %v1008_v7 = vmul.f32 %v1900_v37, %v1000_v59  ;;  %v995_v37 = vmul.f32 %v1917_v5, %v987_v21  ;;  %v980_v25 = vmul.f32 %v1932_v23, %v972_v14 }
 0x16c   : > { %v1053_v54 = vsub.f32 1.0, %v1045_v42  ;;  %v1046_v6 = vmul.f32 %v1510_v53, %v1006_v12  ;;  %v993_v9 = vmul.f32 %v1906_v56, %v985_v60  ;;  %v986_v26 = vadd.f32 -0.28449672, %v978_v28 }
 0x16d   : > { %v1055_v62 = vsub.f32 1.0, %v1047_v45  ;;  %v1048_v18 = vmul.f32 %v1512_v61, %v1008_v7  ;;  %v1003_v24 = vadd.f32 0.2548296, %v995_v37  ;;  %v988_v45 = vadd.f32 -0.28449672, %v980_v25 }
 0x16e   : > { %v1069_v20 = vsub.f32 0.0, %v1053_v54  ;;  %v1054_v17 = vsub.f32 1.0, %v1046_v6  ;;  %v1001_v19 = vadd.f32 0.2548296, %v993_v9  ;;  %v994_v36 = vmul.f32 %v1921_v10, %v986_v26 }
 0x16f   : > { %v1071_v11 = vsub.f32 0.0, %v1055_v62  ;;  %v1056_v34 = vsub.f32 1.0, %v1048_v18  ;;  %v1011_v44 = vmul.f32 %v1917_v5, %v1003_v24  ;;  %v996_v5 = vmul.f32 %v1932_v23, %v988_v45 }
 0x170   : > { %v1077_v16 = vsel %vm1061_vm0, %v1053_v54, %v1069_v20  ;;  %v1070_v33 = vsub.f32 0.0, %v1054_v17  ;;  %v1009_v35 = vmul.f32 %v1906_v56, %v1001_v19  ;;  %v1002_v8 = vadd.f32 0.2548296, %v994_v36 }
 0x171   : > { %v1079_v22 = vsel %vm1063_vm1, %v1055_v62, %v1071_v11  ;;  %v1085_v32 = vadd.f32 1.0, %v1077_v16  ;;  %v1072_v40 = vsub.f32 0.0, %v1056_v34  ;;  %v1051_v12 = vmul.f32 %v1516_v15, %v1011_v44 }
 0x172   : > { %v1087_v39 = vadd.f32 1.0, %v1079_v22  ;;  %v1078_v30 = vsel %vm1062_vm2, %v1054_v17, %v1070_v33  ;;  %v1049_v42 = vmul.f32 %v1514_v4, %v1009_v35  ;;  %v1010_v59 = vmul.f32 %v1921_v10, %v1002_v8 }
 0x173   : > { %v1086_v43 = vadd.f32 1.0, %v1078_v30  ;;  %v1093_v56 = vmul.f32 %v1085_v32, %v1909_v58  ;;  %v1080_v50 = vsel %vm1064_vm3, %v1056_v34, %v1072_v40  ;;  %v1059_v58 = vsub.f32 1.0, %v1051_v12 }
 0x174   : > { %v1057_v51 = vsub.f32 1.0, %v1049_v42  ;;  %v1088_v54 = vadd.f32 1.0, %v1080_v50  ;;  %v1095_v60 = vmul.f32 %v1087_v39, %v1915_v2  ;;  %v1050_v1 = vmul.f32 %v1518_v29, %v1010_v59 }
 0x175   : > { %v1094_v53 = vmul.f32 %v1086_v43, %v1925_v13  ;;  %v1004_v27 = vadd.f32 0.2548296, %v996_v5  ;;  %v1075_v3 = vsub.f32 0.0, %v1059_v58  ;;  %v898_v11 = vmul.f32 0.5, %v1873_v48 }
 0x176   : > { %v1073_v61 = vsub.f32 0.0, %v1057_v51  ;;  %v1096_v0 = vmul.f32 %v1088_v54, %v896_v49  ;;  %v1058_v10 = vsub.f32 1.0, %v1050_v1 }
 0x177   : > { %v1345_v62 = vpack.c.bf16 %v1094_v53, %v1093_v56  ;;  %v1012_v2 = vmul.f32 %v1932_v23, %v1004_v27  ;;  %v1083_v9 = vsel %vm1067_vm6, %v1059_v58, %v1075_v3 }
 0x178   : > { %v1346_v31 = vpack.c.bf16 %v1096_v0, %v1095_v60  ;;  %v1081_v13 = vsel %vm1065_vm4, %v1057_v51, %v1073_v61  ;;  %v1074_v4 = vsub.f32 0.0, %v1058_v10  ;;  %v1091_v16 = vadd.f32 1.0, %v1083_v9 }
 0x179   : > { %1125 = vst [vmem:[%s1971_s12] sm:$0xff] %v1345_v62  ;;  %v1089_v20 = vadd.f32 1.0, %v1081_v13  ;;  %v1052_v6 = vmul.f32 %v1520_v38, %v1012_v2 }
 0x17a   : > { %1126 = vst [vmem:[%s1971_s12 + $0x8] sm:$0xff] %v1346_v31  ;;  %v1082_v7 = vsel %vm1066_vm5, %v1058_v10, %v1074_v4  ;;  %v1099_v19 = vmul.f32 %v1091_v16, %v899_v41 }
 0x17b   : > { %v1090_v21 = vadd.f32 1.0, %v1082_v7  ;;  %v1060_v28 = vsub.f32 1.0, %v1052_v6  ;;  %v1097_v14 = vmul.f32 %v1089_v20, %v897_v46 }
 0x17d   : > { %v1098_v23 = vmul.f32 %v1090_v21, %v898_v11  ;;  %v1076_v15 = vsub.f32 0.0, %v1060_v28 }
 0x17f   : > { %v1347_v55 = vpack.c.bf16 %v1098_v23, %v1097_v14  ;;  %v1084_v17 = vsel %vm1068_vm7, %v1060_v28, %v1076_v15 }
 0x180   : > { %v1092_v18 = vadd.f32 1.0, %v1084_v17  ;;  %v1154_v63 = vld [vmem:[%s1971_s12] sm:$0xff] (%p1616_p6) }
 0x181   : > { %1127 = vst [vmem:[%s1971_s12 + $0x10] sm:$0xff] %v1347_v55  ;;  %v1156_v37 = vld [vmem:[%s1971_s12 + $0x8] sm:$0xff] (%p1616_p6)  ;;  %1155 = vst [vmem:[%s1141_s26] sm:$0xff] (%p1616_p6), %v1154_v63 }
 0x182   : > { %v1100_v22 = vmul.f32 %v1092_v18, %v900_v52  ;;  %1135 = sbr.rel (!%p1616_p6) target bundleno = 399 (0x18f), region = 59  ;;  %1157 = vst [vmem:[%s1141_s26 + $0x8] sm:$0xff] (%p1616_p6), %v1156_v37 }
 0x184   : > { %v1348_v48 = vpack.c.bf16 %v1100_v22, %v1099_v19 }
 0x186   : > { %1128 = vst [vmem:[%s1971_s12 + $0x18] sm:$0xff] %v1348_v48 }
 0x188   : > { %v1158_v47 = vld [vmem:[%s1971_s12 + $0x10] sm:$0xff] }
 0x189   : > { %1159 = vst [vmem:[%s1141_s26 + $0x20] sm:$0xff] %v1158_v47 }
 0x18d   : > { %v1160_v57 = vld [vmem:[%s1971_s12 + $0x18] sm:$0xff] }
 0x18e   : > { %1161 = vst [vmem:[%s1141_s26 + $0x28] sm:$0xff] %v1160_v57 }
 0x18f PF: > { %s13_s16 = sadd.s32 1, %s1559_s16   ;;  %s2015_s12 = smov %s1547_s13 }
 0x190   : > { %p10_p12 = scmp.ge.s32.totalorder %s13_s16, 4   ;;  %s2016_s13 = smov %s1621_s22 }
 0x191   : > { %s2017_s14 = smov %s1555_s15  ;;  %s2018_s15 = smov %s2020_s17 }
 0x192   :  { %12 = sbr.rel (!%p10_p12) target bundleno = 3 (0x3), region = 119 }

// kernel: simple_transformer_forward.25
= control target key start
LH: loop header
LB: loop body
LE: loop exit
PB: predicated region body
PF: predicated region fallthrough
CT: control target
= control target key end

     0   :  { %s1275_s0 = inlined_call_operand.vmem [shape: bf16[16,1024], index: 0, kind: input, shape index: {}]   ;;  %s1276_s1 = inlined_call_operand.vmem [shape: bf16[1024,128], index: 1, kind: input, shape index: {}]   ;;  %s1277_s2 = inlined_call_operand.vmem [shape: bf16[1,128], index: 2, kind: input, shape index: {}]   ;;  %s1278_s3 = inlined_call_operand.hbm [shape: bf16[16,128], index: 3, kind: output, shape index: {}]  }
   0x1   :  { %v944_v0 = vld [vmem:[%s1276_s1 + $0x78] sm:$0xff]   ;;  %v948_v4 = vld [vmem:[%s1276_s1 + $0x70] sm:$0xff]   ;;  %v952_v8 = vld [vmem:[%s1276_s1 + $0x68] sm:$0xff]  }
   0x2   :  { %v945_v1 = vld [vmem:[%s1276_s1 + $0xf8] sm:$0xff]   ;;  %853 = vmatprep.subr.bf16.mxu0 %v944_v0  ;;  %v949_v5 = vld [vmem:[%s1276_s1 + $0xf0] sm:$0xff]   ;;  %v953_v9 = vld [vmem:[%s1276_s1 + $0xe8] sm:$0xff]  }
   0x3   :  { %v946_v2 = vld [vmem:[%s1276_s1 + $0x38] sm:$0xff]   ;;  %875 = vmatprep.subr.bf16.mxu1 %v945_v1  ;;  %v950_v6 = vld [vmem:[%s1276_s1 + $0x30] sm:$0xff]   ;;  %v954_v10 = vld [vmem:[%s1276_s1 + $0x28] sm:$0xff]  }
   0x4   :  { %v947_v3 = vld [vmem:[%s1276_s1 + $0xb8] sm:$0xff]   ;;  %854 = vmatpush3.bf16.msra.mxu0 %v946_v2  ;;  %v951_v7 = vld [vmem:[%s1276_s1 + $0xb0] sm:$0xff]   ;;  %v955_v11 = vld [vmem:[%s1276_s1 + $0xa8] sm:$0xff]  }
   0x5   :  { %876 = vmatpush3.bf16.msra.mxu1 %v947_v3  ;;  %855 = vmatprep.subr.bf16.mxu0 %v948_v4  ;;  %v956_v12 = vld [vmem:[%s1276_s1 + $0x60] sm:$0xff]   ;;  %v960_v16 = vld [vmem:[%s1276_s1 + $0x58] sm:$0xff]   ;;  %v964_v20 = vld [vmem:[%s1276_s1 + $0x50] sm:$0xff]  }
   0x6   :  { %877 = vmatprep.subr.bf16.mxu1 %v949_v5  ;;  %v957_v13 = vld [vmem:[%s1276_s1 + $0xe0] sm:$0xff]   ;;  %v961_v17 = vld [vmem:[%s1276_s1 + $0xd8] sm:$0xff]   ;;  %v965_v21 = vld [vmem:[%s1276_s1 + $0xd0] sm:$0xff]  }
   0x7   :  { %v958_v14 = vld [vmem:[%s1276_s1 + $0x20] sm:$0xff]   ;;  %v962_v18 = vld [vmem:[%s1276_s1 + $0x18] sm:$0xff]   ;;  %v966_v22 = vld [vmem:[%s1276_s1 + $0x10] sm:$0xff]  }
   0x8   :  { %856 = vmatpush3.bf16.msra.mxu0 %v950_v6  ;;  %v959_v15 = vld [vmem:[%s1276_s1 + $0xa0] sm:$0xff]   ;;  %v963_v19 = vld [vmem:[%s1276_s1 + $0x98] sm:$0xff]   ;;  %v967_v23 = vld [vmem:[%s1276_s1 + $0x90] sm:$0xff]  }
   0x9   :  { %878 = vmatpush3.bf16.msra.mxu1 %v951_v7  ;;  %857 = vmatprep.subr.bf16.mxu0 %v952_v8  ;;  %v968_v24 = vld [vmem:[%s1276_s1 + $0x48] sm:$0xff]   ;;  %v972_v28 = vld [vmem:[%s1276_s1 + $0x40] sm:$0xff]   ;;  %v976_v40 = vld [vmem:[%s1276_s1 + $0x178] sm:$0xff]  }
   0xa   :  { %879 = vmatprep.subr.bf16.mxu1 %v953_v9  ;;  %v969_v25 = vld [vmem:[%s1276_s1 + $0xc8] sm:$0xff]   ;;  %v973_v29 = vld [vmem:[%s1276_s1 + $0xc0] sm:$0xff]   ;;  %v977_v41 = vld [vmem:[%s1276_s1 + $0x1f8] sm:$0xff]  }
   0xb   :  { %v970_v26 = vld [vmem:[%s1276_s1 + $0x8] sm:$0xff]   ;;  %v974_v30 = vld [vmem:[%s1276_s1] sm:$0xff]   ;;  %v978_v42 = vld [vmem:[%s1276_s1 + $0x138] sm:$0xff]  }
   0xc   :  { %858 = vmatpush3.bf16.msra.mxu0 %v954_v10  ;;  %v971_v27 = vld [vmem:[%s1276_s1 + $0x88] sm:$0xff]   ;;  %v975_v31 = vld [vmem:[%s1276_s1 + $0x80] sm:$0xff]   ;;  %v979_v43 = vld [vmem:[%s1276_s1 + $0x1b8] sm:$0xff]  }
   0xd   :  { %880 = vmatpush3.bf16.msra.mxu1 %v955_v11  ;;  %859 = vmatprep.subr.bf16.mxu0 %v956_v12  ;;  %v16_v32 = vld [vmem:[%s1275_s0] sm:$0xff]  ;;  %v17_v34 = vld [vmem:[%s1275_s0 + $0x8] sm:$0xff]  ;;  %v980_v44 = vld [vmem:[%s1276_s1 + $0x170] sm:$0xff]  }
   0xe   :  { %881 = vmatprep.subr.bf16.mxu1 %v957_v13  ;;  %v20_v33 = vld [vmem:[%s1275_s0 + $0x20] sm:$0xff]  ;;  %v21_v37 = vld [vmem:[%s1275_s0 + $0x28] sm:$0xff]  ;;  %v981_v45 = vld [vmem:[%s1276_s1 + $0x1f0] sm:$0xff]  }
   0xf   :  { %v772_v35 = vcombine.low %v16_v32, %v20_v33  ;;  %v773_v36 = vcombine.high %v16_v32, %v20_v33  ;;  %v774_v38 = vcombine.low %v17_v34, %v21_v37  ;;  %v775_v39 = vcombine.high %v17_v34, %v21_v37  ;;  %v982_v46 = vld [vmem:[%s1276_s1 + $0x130] sm:$0xff]   ;;  %v984_v48 = vld [vmem:[%s1276_s1 + $0x168] sm:$0xff]   ;;  %v988_v52 = vld [vmem:[%s1276_s1 + $0x160] sm:$0xff]  }
  0x10   :  { %860 = vmatpush3.bf16.msra.mxu0 %v958_v14  ;;  %v983_v47 = vld [vmem:[%s1276_s1 + $0x1b0] sm:$0xff]   ;;  %v985_v49 = vld [vmem:[%s1276_s1 + $0x1e8] sm:$0xff]   ;;  %v989_v53 = vld [vmem:[%s1276_s1 + $0x1e0] sm:$0xff]  }
  0x11   :  { %882 = vmatpush3.bf16.msra.mxu1 %v959_v15  ;;  %861 = vmatprep.subr.bf16.mxu0 %v960_v16  ;;  %v986_v50 = vld [vmem:[%s1276_s1 + $0x128] sm:$0xff]   ;;  %v990_v54 = vld [vmem:[%s1276_s1 + $0x120] sm:$0xff]   ;;  %v992_v56 = vld [vmem:[%s1276_s1 + $0x158] sm:$0xff]  }
  0x12   :  { %883 = vmatprep.subr.bf16.mxu1 %v961_v17  ;;  %614 = vmatprep.mubr.bf16.mxu0 %v773_v36  ;;  %v987_v51 = vld [vmem:[%s1276_s1 + $0x1a8] sm:$0xff]   ;;  %v991_v55 = vld [vmem:[%s1276_s1 + $0x1a0] sm:$0xff]   ;;  %v993_v57 = vld [vmem:[%s1276_s1 + $0x1d8] sm:$0xff]  }
  0x13   :  { %655 = vmatprep.mubr.bf16.mxu1 %v775_v39  ;;  %v994_v58 = vld [vmem:[%s1276_s1 + $0x118] sm:$0xff]   ;;  %v996_v60 = vld [vmem:[%s1276_s1 + $0x150] sm:$0xff]   ;;  %v1000_v0 = vld [vmem:[%s1276_s1 + $0x148] sm:$0xff]  }
  0x14   :  { %862 = vmatpush3.bf16.msra.mxu0 %v962_v18  ;;  %v995_v59 = vld [vmem:[%s1276_s1 + $0x198] sm:$0xff]   ;;  %v997_v61 = vld [vmem:[%s1276_s1 + $0x1d0] sm:$0xff]   ;;  %v1001_v1 = vld [vmem:[%s1276_s1 + $0x1c8] sm:$0xff]  }
  0x15   :  { %884 = vmatpush3.bf16.msra.mxu1 %v963_v19  ;;  %863 = vmatprep.subr.bf16.mxu0 %v964_v20  ;;  %v998_v62 = vld [vmem:[%s1276_s1 + $0x110] sm:$0xff]   ;;  %v1002_v2 = vld [vmem:[%s1276_s1 + $0x108] sm:$0xff]   ;;  %v1004_v4 = vld [vmem:[%s1276_s1 + $0x140] sm:$0xff]  }
  0x16   :  { %885 = vmatprep.subr.bf16.mxu1 %v965_v21  ;;  %v999_v63 = vld [vmem:[%s1276_s1 + $0x190] sm:$0xff]   ;;  %v1003_v3 = vld [vmem:[%s1276_s1 + $0x188] sm:$0xff]   ;;  %v1005_v5 = vld [vmem:[%s1276_s1 + $0x1c0] sm:$0xff]  }
  0x17   :  { %v1006_v6 = vld [vmem:[%s1276_s1 + $0x100] sm:$0xff]   ;;  %v18_v8 = vld [vmem:[%s1275_s0 + $0x10] sm:$0xff]  ;;  %v19_v12 = vld [vmem:[%s1275_s0 + $0x18] sm:$0xff] }
  0x18   :  { %864 = vmatpush3.bf16.msra.mxu0 %v966_v22  ;;  %v1007_v7 = vld [vmem:[%s1276_s1 + $0x180] sm:$0xff]   ;;  %v22_v9 = vld [vmem:[%s1275_s0 + $0x30] sm:$0xff]  ;;  %v23_v13 = vld [vmem:[%s1275_s0 + $0x38] sm:$0xff] }
  0x19   :  { %886 = vmatpush3.bf16.msra.mxu1 %v967_v23  ;;  %865 = vmatprep.subr.bf16.mxu0 %v968_v24  ;;  %v776_v10 = vcombine.low %v18_v8, %v22_v9  ;;  %v777_v11 = vcombine.high %v18_v8, %v22_v9 }
  0x1a   :  { %887 = vmatprep.subr.bf16.mxu1 %v969_v25 }
  0x1c   :  { %866 = vmatpush3.bf16.msra.mxu0 %v970_v26 }
  0x1d   :  { %888 = vmatpush3.bf16.msra.mxu1 %v971_v27  ;;  %867 = vmatprep.subr.bf16.mxu0 %v972_v28 }
  0x1e   :  { %889 = vmatprep.subr.bf16.mxu1 %v973_v29 }
  0x20   :  { %868 = vmatpush3.bf16.msra.mxu0 %v974_v30 }
  0x21   :  { %890 = vmatpush3.bf16.msra.mxu1 %v975_v31  ;;  %897 = vmatprep.subr.bf16.mxu0 %v976_v40 }
  0x22   :  { %919 = vmatprep.subr.bf16.mxu1 %v977_v41 }
  0x23   :  { %615 = vmatmul.mubr.bf16.vlgmr.msra.gmra.mxu0 %v772_v35 }
  0x24   :  { %656 = vmatmul.mubr.bf16.vlgmr.msra.gmra.mxu1 %v774_v38  ;;  %898 = vmatpush3.bf16.msra.mxu0 %v978_v42 }
  0x25   :  { %920 = vmatpush3.bf16.msra.mxu1 %v979_v43  ;;  %899 = vmatprep.subr.bf16.mxu0 %v980_v44 }
  0x26   :  { %921 = vmatprep.subr.bf16.mxu1 %v981_v45 }
  0x28   :  { %900 = vmatpush3.bf16.msra.mxu0 %v982_v46 }
  0x29   :  { %922 = vmatpush3.bf16.msra.mxu1 %v983_v47  ;;  %901 = vmatprep.subr.bf16.mxu0 %v984_v48 }
  0x2a   :  { %923 = vmatprep.subr.bf16.mxu1 %v985_v49 }
  0x2c   :  { %902 = vmatpush3.bf16.msra.mxu0 %v986_v50 }
  0x2d   :  { %924 = vmatpush3.bf16.msra.mxu1 %v987_v51  ;;  %903 = vmatprep.subr.bf16.mxu0 %v988_v52 }
  0x2e   :  { %925 = vmatprep.subr.bf16.mxu1 %v989_v53 }
  0x30   :  { %904 = vmatpush3.bf16.msra.mxu0 %v990_v54 }
  0x31   :  { %926 = vmatpush3.bf16.msra.mxu1 %v991_v55  ;;  %905 = vmatprep.subr.bf16.mxu0 %v992_v56 }
  0x32   :  { %927 = vmatprep.subr.bf16.mxu1 %v993_v57 }
  0x34   :  { %906 = vmatpush3.bf16.msra.mxu0 %v994_v58 }
  0x35   :  { %928 = vmatpush3.bf16.msra.mxu1 %v995_v59  ;;  %907 = vmatprep.subr.bf16.mxu0 %v996_v60 }
  0x36   :  { %929 = vmatprep.subr.bf16.mxu1 %v997_v61 }
  0x38   :  { %908 = vmatpush3.bf16.msra.mxu0 %v998_v62 }
  0x39   :  { %930 = vmatpush3.bf16.msra.mxu1 %v999_v63  ;;  %909 = vmatprep.subr.bf16.mxu0 %v1000_v0 }
  0x3a   :  { %931 = vmatprep.subr.bf16.mxu1 %v1001_v1 }
  0x3c   :  { %910 = vmatpush3.bf16.msra.mxu0 %v1002_v2 }
  0x3d   :  { %932 = vmatpush3.bf16.msra.mxu1 %v1003_v3  ;;  %911 = vmatprep.subr.bf16.mxu0 %v1004_v4 }
  0x3e   :  { %933 = vmatprep.subr.bf16.mxu1 %v1005_v5 }
  0x40   :  { %912 = vmatpush3.bf16.msra.mxu0 %v1006_v6 }
  0x41   :  { %8 = vsyncpa [#allocation3], 0  ;;  %934 = vmatpush3.bf16.msra.mxu1 %v1007_v7  ;;  %v778_v14 = vcombine.low %v19_v12, %v23_v13  ;;  %v779_v15 = vcombine.high %v19_v12, %v23_v13  ;;  %696 = vmatprep.mubr.bf16.mxu0 %v777_v11  ;;  %v154_v17 = vlaneseq  ;;  %v152_v21 = vld [vmem:[%s1277_s2] sm:$0x1]  ;;  %s1030_s0 = smov [#allocation2]  }
  0x42   :  { %v153_v24 = vunpack.c.l.bf16 %v152_v21  ;;  %s761_s2 = sshll.u32 %s1030_s0, 4  ;;  %s762_s2 = int_to_ptr.vmem [resolvable:$true] %s761_s2 }
  0x43   :  { %737 = vmatprep.mubr.bf16.mxu1 %v779_v15  ;;  %697 = vmatmul.mubr.bf16.vlgmr.msra.gmra.mxu0 %v776_v10  ;;  %v155_v20 = vshrl.u32 %v154_v17, 7  ;;  %s1008_s22 = scalar_lea.vmem %s762_s2, 128  ;;  %p1013_p1 = scmp.lt.s32.totalorder %s762_s2, %s762_s2 }
  0x44   :  { %738 = vmatmul.mubr.bf16.vlgmr.msra.gmra.mxu1 %v778_v14  ;;  %p1009_p0 = scmp.ne.s32.totalorder %s762_s2, %s1008_s22  ;;  %p1014_p2 = scmp.lt.s32.totalorder %s1008_s22, %s1008_s22 }
  0x45   :  { %v156_v25 = vsub.s32 0, %v155_v20 }
  0x46   :  { %p1015_p3 = por %p1014_p2, %p1013_p1 }
  0x47   :  { %v157_v28 = vrot.slane %v153_v24, %v156_v25 }
  0x48   :  { %p1016_p4 = pnand %p1015_p3, %p1009_p0 }
  0xe3   :  { %v869_v16 = vpop.f32.mrf.mxu0 }
  0xe4   :  { %v891_v18 = vpop.f32.mrf.mxu1 }
  0xe5   :  { %v870_v19 = vpop.f32.mrf.mxu0 }
  0xe6   :  { %v892_v22 = vpop.f32.mrf.mxu1  ;;  %v871_v29 = vadd.f32 %v870_v19, %v869_v16 }
  0xe7   :  { %v872_v23 = vpop.f32.mrf.mxu0  ;;  %v893_v34 = vadd.f32 %v892_v22, %v891_v18 }
  0xe8   :  { %v894_v26 = vpop.f32.mrf.mxu1  ;;  %v617_v33 = vadd.f32 %v871_v29, %v157_v28 }
  0xe9   :  { %v873_v27 = vpop.f32.mrf.mxu0 }
  0xea   :  { %v874_v30 = vadd.f32 %v873_v27, %v872_v23  ;;  %v895_v31 = vpop.f32.mrf.mxu1  ;;  %v658_v41 = vadd.f32 %v893_v34, %v617_v33 }
  0xeb   :  { %v896_v42 = vadd.f32 %v895_v31, %v894_v26 }
  0xec   :  { %v620_v37 = vadd.f32 %v874_v30, %v157_v28 }
  0xee   :  { %v661_v45 = vadd.f32 %v896_v42, %v620_v37 }
 0x103   :  { %v913_v32 = vpop.f32.mrf.mxu0 }
 0x104   :  { %v935_v35 = vpop.f32.mrf.mxu1 }
 0x105   :  { %v914_v36 = vpop.f32.mrf.mxu0 }
 0x106   :  { %v915_v38 = vadd.f32 %v914_v36, %v913_v32  ;;  %v936_v39 = vpop.f32.mrf.mxu1 }
 0x107   :  { %v916_v40 = vpop.f32.mrf.mxu0  ;;  %v937_v49 = vadd.f32 %v936_v39, %v935_v35 }
 0x108   :  { %v938_v43 = vpop.f32.mrf.mxu1  ;;  %v699_v46 = vadd.f32 %v915_v38, %v658_v41 }
 0x109   :  { %v917_v44 = vpop.f32.mrf.mxu0 }
 0x10a   :  { %v918_v47 = vadd.f32 %v917_v44, %v916_v40  ;;  %v939_v48 = vpop.f32.mrf.mxu1  ;;  %v740_v52 = vadd.f32 %v937_v49, %v699_v46 }
 0x10b   :  { %v940_v51 = vadd.f32 %v939_v48, %v938_v43 }
 0x10c   :  { %v702_v50 = vadd.f32 %v918_v47, %v661_v45 }
 0x10e   :  { %v743_v53 = vadd.f32 %v940_v51, %v702_v50 }
 0x110   :  { %v851_v54 = vpack.c.bf16 %v743_v53, %v740_v52 }
 0x112   :  { %852 = vst [vmem:[#allocation2] sm:$0xff] %v851_v54  }
 0x113   :  { %1019 = shalt.err (!%p1016_p4)
}
 0x114   :  { %s1031_s23 = smov 64   ;;  %s1032_s24 = smov 4  }
 0x115   :  { %767 = dma.vmem_to_hbm [thread:$0]  %s762_s2, 128, %s1278_s3, [#allocation3], %s1031_s23, %s1031_s23, %s1032_s24  }
 0x116   :  { %1028 = dma.done.wait [#allocation3], 128  }
 0x117   :  { %1029 = vsyncadd [#allocation3], 4294967168 }
 0x118   :  { %771 = vsyncpa [#allocation3], 1 }

</bundles_post_ra>
